<compile_context>
chip_gen: v7x
topology: tpu7x:2x2x1
jax: 0.10.0
libtpu: 0.0.40
codegen_flags: <defaults>
</compile_context>

<pallas_src>
import functools

import jax
import jax.numpy as jnp
from jax.experimental import pallas as pl
from jax.experimental.pallas import tpu as pltpu


def _layernorm(x, w, b, eps=1e-5):
    mu = jnp.mean(x, axis=-1, keepdims=True)
    xc = x - mu
    var = jnp.mean(xc * xc, axis=-1, keepdims=True)
    inv = jax.lax.rsqrt(var + eps)
    return xc * inv * w + b


def _encoder_kernel(nhead,
                    x_ref, pos_ref,
                    wqkv_ref, bqkv_ref, wo_ref, bo_ref,
                    ln1w_ref, ln1b_ref,
                    w1_ref, b1_ref, w2_ref, b2_ref,
                    ln2w_ref, ln2b_ref,
                    o_ref):
    # x_ref block: (Bt, S, D) -- Bt batch elements per grid step.
    Bt, S, D = x_ref.shape
    dh = D // nhead
    scale = float(dh) ** -0.5
    R = Bt * S

    x = x_ref[...].astype(jnp.float32) + pos_ref[...].astype(jnp.float32)   # (Bt, S, D)
    xf = x.reshape(R, D)                                                    # token-flat view

    # ---- self-attention ----------------------------------------------------
    # Weights arrive pre-transposed: wqkv (D, 3D), wo (D, D), w1 (D, F), w2 (F, D).
    qkv = jnp.dot(xf, wqkv_ref[...], preferred_element_type=jnp.float32) + bqkv_ref[...]
    q = (qkv[:, 0 * D:1 * D] * scale).reshape(Bt, S, D)
    k = qkv[:, 1 * D:2 * D].reshape(Bt, S, D)
    v = qkv[:, 2 * D:3 * D].reshape(Bt, S, D)

    heads = []
    for h in range(nhead):                            # static unroll; batched over Bt
        sl = slice(h * dh, (h + 1) * dh)
        s = jnp.einsum('bqd,bkd->bqk', q[..., sl], k[..., sl],
                       preferred_element_type=jnp.float32)                  # (Bt, S, S)
        s = s - jnp.max(s, axis=-1, keepdims=True)
        p = jnp.exp(s)
        p = p * pl.reciprocal(jnp.sum(p, axis=-1, keepdims=True), approx=True)
        heads.append(jnp.einsum('bqk,bkd->bqd', p, v[..., sl],
                                preferred_element_type=jnp.float32))        # (Bt, S, dh)
    ctx = jnp.concatenate(heads, axis=-1).reshape(R, D)                     # (R, D)
    attn = jnp.dot(ctx, wo_ref[...], preferred_element_type=jnp.float32) + bo_ref[...]

    # residual + LayerNorm1 (dropout is identity in eval mode)
    x1 = _layernorm(xf + attn, ln1w_ref[...], ln1b_ref[...])

    # ---- feed-forward ------------------------------------------------------
    h1 = jnp.dot(x1, w1_ref[...], preferred_element_type=jnp.float32) + b1_ref[...]
    h1 = jnp.maximum(h1, 0.0)                                               # ReLU
    ff = jnp.dot(h1, w2_ref[...], preferred_element_type=jnp.float32) + b2_ref[...]

    x2 = _layernorm(x1 + ff, ln2w_ref[...], ln2b_ref[...])
    o_ref[...] = x2.reshape(Bt, S, D).astype(o_ref.dtype)


def _choose_batch_tile(B, S, target_rows=256, max_rows=1024):
    """Largest-enough divisor of B so Bt*S approaches an MXU-friendly M dimension."""
    divisors = [d for d in range(1, B + 1) if B % d == 0]
    for d in divisors:
        if d * S >= target_rows and d * S <= max_rows:
            return d
    fitting = [d for d in divisors if d * S <= max_rows]
    return fitting[-1] if fitting else 1


def custom_transformer_layer(src, params, *, nhead):
    """src: (B, N, model_dim). Returns (B, N+1, model_dim)."""
    B, N, D = src.shape
    S = N + 1
    assert D % nhead == 0, "model_dim must be divisible by nhead"

    # ---- glue: prepend cls token, slice positional embedding (plain JAX) ---
    cls = jnp.broadcast_to(params["cls_token"], (B, 1, D))
    x = jnp.concatenate([cls, src], axis=1)                                 # (B, S, D)
    max_len = params["pos_embedding"].shape[1]
    if S > max_len:
        rep = S // max_len + 1
        pos = jnp.tile(params["pos_embedding"], (1, rep, 1))[:, :S, :]
    else:
        pos = params["pos_embedding"][:, :S, :]                             # (1, S, D)

    F = params["w1"].shape[0]
    Bt = _choose_batch_tile(B, S)
    kernel = functools.partial(_encoder_kernel, nhead)

    # Pre-transpose weights once in the wrapper so every in-kernel matmul is x @ W.
    wqkv_t = params["in_proj_w"].T            # (D, 3D)
    wo_t = params["out_proj_w"].T             # (D, D)
    w1_t = params["w1"].T                     # (D, F)
    w2_t = params["w2"].T                     # (F, D)

    full2d = lambda shape: pl.BlockSpec(shape, lambda b: (0, 0))
    grid_spec = pltpu.PrefetchScalarGridSpec(
        num_scalar_prefetch=0,
        grid=(B // Bt,),
        in_specs=[
            pl.BlockSpec((Bt, S, D), lambda b: (b, 0, 0)),  # x (Bt batch elems / step)
            pl.BlockSpec((1, S, D), lambda b: (0, 0, 0)),   # pos (shared)
            full2d((D, 3 * D)),                             # in_proj_weight^T
            full2d((1, 3 * D)),                             # in_proj_bias
            full2d((D, D)),                                 # out_proj.weight^T
            full2d((1, D)),                                 # out_proj.bias
            full2d((1, D)),                                 # ln1.weight
            full2d((1, D)),                                 # ln1.bias
            full2d((D, F)),                                 # linear1.weight^T
            full2d((1, F)),                                 # linear1.bias
            full2d((F, D)),                                 # linear2.weight^T
            full2d((1, D)),                                 # linear2.bias
            full2d((1, D)),                                 # ln2.weight
            full2d((1, D)),                                 # ln2.bias
        ],
        out_specs=pl.BlockSpec((Bt, S, D), lambda b: (b, 0, 0)),
    )

    flops = 2 * B * S * (4 * D * D + 2 * D * F + 2 * S * D)
    transcendentals = B * nhead * S * S + 2 * B * S
    bytes_accessed = 4 * (2 * B * S * D + S * D + 4 * D * D + 2 * D * F + 10 * D + 4 * F)

    return pl.pallas_call(
        kernel,
        out_shape=jax.ShapeDtypeStruct((B, S, D), src.dtype),
        grid_spec=grid_spec,
        compiler_params=pltpu.CompilerParams(
            dimension_semantics=("parallel",)),
        cost_estimate=pl.CostEstimate(
            flops=flops, transcendentals=transcendentals,
            bytes_accessed=bytes_accessed),
    )(
        x, pos,
        wqkv_t, params["in_proj_b"],
        wo_t, params["out_proj_b"],
        params["ln1_w"], params["ln1_b"],
        w1_t, params["b1"],
        w2_t, params["b2"],
        params["ln2_w"], params["ln2_b"],
    )


def init_params(key, model_dim, dim_feedforward=2048, max_len=5269):
    ks = jax.random.split(key, 10)
    D, F = model_dim, dim_feedforward
    return {
        "cls_token": jax.random.normal(ks[0], (1, 1, D), jnp.float32),
        "pos_embedding": jax.random.normal(ks[1], (1, max_len, D), jnp.float32),
        # nn.MultiheadAttention packed in-projection (3D, D) + out projection (PyTorch layout)
        "in_proj_w": jax.random.normal(ks[2], (3 * D, D), jnp.float32) * 0.05,
        "in_proj_b": jax.random.normal(ks[3], (1, 3 * D), jnp.float32) * 0.05,
        "out_proj_w": jax.random.normal(ks[4], (D, D), jnp.float32) * 0.05,
        "out_proj_b": jax.random.normal(ks[5], (1, D), jnp.float32) * 0.05,
        # feed-forward (Linear stores (out, in))
        "w1": jax.random.normal(ks[6], (F, D), jnp.float32) * 0.05,
        "b1": jax.random.normal(ks[7], (1, F), jnp.float32) * 0.05,
        "w2": jax.random.normal(ks[8], (D, F), jnp.float32) * 0.05,
        "b2": jax.random.normal(ks[9], (1, D), jnp.float32) * 0.05,
        # layer norms
        "ln1_w": jnp.ones((1, D), jnp.float32),
        "ln1_b": jnp.zeros((1, D), jnp.float32),
        "ln2_w": jnp.ones((1, D), jnp.float32),
        "ln2_b": jnp.zeros((1, D), jnp.float32),
    }


def _reference(src, params, *, nhead):
    """Pure-JAX reference of the same eval-mode forward (for correctness check)."""
    B, N, D = src.shape
    S = N + 1
    dh = D // nhead
    x = jnp.concatenate([jnp.broadcast_to(params["cls_token"], (B, 1, D)), src], axis=1)
    x = x + params["pos_embedding"][:, :S, :]
    qkv = jnp.einsum('bsd,ed->bse', x, params["in_proj_w"]) + params["in_proj_b"][0]
    q, k, v = jnp.split(qkv, 3, axis=-1)
    q = q.reshape(B, S, nhead, dh) * (dh ** -0.5)
    k = k.reshape(B, S, nhead, dh)
    v = v.reshape(B, S, nhead, dh)
    s = jnp.einsum('bqhd,bkhd->bhqk', q, k)
    p = jax.nn.softmax(s, axis=-1)
    ctx = jnp.einsum('bhqk,bkhd->bqhd', p, v).reshape(B, S, D)
    attn = jnp.einsum('bsd,ed->bse', ctx, params["out_proj_w"]) + params["out_proj_b"][0]

    def ln(y, w, b, eps=1e-5):
        mu = jnp.mean(y, axis=-1, keepdims=True)
        var = jnp.mean((y - mu) ** 2, axis=-1, keepdims=True)
        return (y - mu) * jax.lax.rsqrt(var + eps) * w[0] + b[0]

    x1 = ln(x + attn, params["ln1_w"], params["ln1_b"])
    h1 = jax.nn.relu(jnp.einsum('bsd,fd->bsf', x1, params["w1"]) + params["b1"][0])
    ff = jnp.einsum('bsf,df->bsd', h1, params["w2"]) + params["b2"][0]
    return ln(x1 + ff, params["ln2_w"], params["ln2_b"])


if __name__ == "__main__":
    key = jax.random.PRNGKey(0)
    B, N, MODEL_DIM, NHEAD = 4, 15, 32, 4          # S = N + 1 = 16
    # TODO(synk): dropout layers are identity here (eval-mode semantics only).
    pkey, xkey = jax.random.split(key)
    params = init_params(pkey, MODEL_DIM)
    src = jax.random.normal(xkey, (B, N, MODEL_DIM), jnp.float32)

    out = custom_transformer_layer(src, params, nhead=NHEAD)
    out = jax.block_until_ready(out)
    assert out.shape == (B, N + 1, MODEL_DIM)
    assert jnp.all(jnp.isfinite(out))

    ref = _reference(src, params, nhead=NHEAD)
    assert jnp.allclose(out, ref, rtol=1e-2, atol=1e-2), float(jnp.max(jnp.abs(out - ref)))
    print("KERNEL_OK")
</pallas_src>

<mosaic_0001>
module attributes {stable_mosaic.version = 11 : i64} {
  func.func @_encoder_kernel(%arg0: i32, %arg1: memref<4x16x32xf32, #tpu.memory_space<vmem>>, %arg2: memref<1x16x32xf32, #tpu.memory_space<vmem>>, %arg3: memref<32x96xf32, #tpu.memory_space<vmem>>, %arg4: memref<1x96xf32, #tpu.memory_space<vmem>>, %arg5: memref<32x32xf32, #tpu.memory_space<vmem>>, %arg6: memref<1x32xf32, #tpu.memory_space<vmem>>, %arg7: memref<1x32xf32, #tpu.memory_space<vmem>>, %arg8: memref<1x32xf32, #tpu.memory_space<vmem>>, %arg9: memref<32x2048xf32, #tpu.memory_space<vmem>>, %arg10: memref<1x2048xf32, #tpu.memory_space<vmem>>, %arg11: memref<2048x32xf32, #tpu.memory_space<vmem>>, %arg12: memref<1x32xf32, #tpu.memory_space<vmem>>, %arg13: memref<1x32xf32, #tpu.memory_space<vmem>>, %arg14: memref<1x32xf32, #tpu.memory_space<vmem>>, %arg15: memref<4x16x32xf32, #tpu.memory_space<vmem>>) attributes {dimension_semantics = [#tpu.dimension_semantics<parallel>], iteration_bounds = array<i64: 1>, scalar_prefetch = 0 : i64, scratch_operands = 0 : i64, tpu.core_type = #tpu.core_type<tc>, window_params = [{transform_indices = @transform_0, window_bounds = array<i64: 4, 16, 32>}, {pipeline_mode = #tpu.pipeline_mode<synchronous>, transform_indices = @transform_1, window_bounds = array<i64: 1, 16, 32>}, {pipeline_mode = #tpu.pipeline_mode<synchronous>, transform_indices = @transform_2, window_bounds = array<i64: 32, 96>}, {pipeline_mode = #tpu.pipeline_mode<synchronous>, transform_indices = @transform_3, window_bounds = array<i64: 1, 96>}, {pipeline_mode = #tpu.pipeline_mode<synchronous>, transform_indices = @transform_4, window_bounds = array<i64: 32, 32>}, {pipeline_mode = #tpu.pipeline_mode<synchronous>, transform_indices = @transform_5, window_bounds = array<i64: 1, 32>}, {pipeline_mode = #tpu.pipeline_mode<synchronous>, transform_indices = @transform_6, window_bounds = array<i64: 1, 32>}, {pipeline_mode = #tpu.pipeline_mode<synchronous>, transform_indices = @transform_7, window_bounds = array<i64: 1, 32>}, {pipeline_mode = #tpu.pipeline_mode<synchronous>, transform_indices = @transform_8, window_bounds = array<i64: 32, 2048>}, {pipeline_mode = #tpu.pipeline_mode<synchronous>, transform_indices = @transform_9, window_bounds = array<i64: 1, 2048>}, {pipeline_mode = #tpu.pipeline_mode<synchronous>, transform_indices = @transform_10, window_bounds = array<i64: 2048, 32>}, {pipeline_mode = #tpu.pipeline_mode<synchronous>, transform_indices = @transform_11, window_bounds = array<i64: 1, 32>}, {pipeline_mode = #tpu.pipeline_mode<synchronous>, transform_indices = @transform_12, window_bounds = array<i64: 1, 32>}, {pipeline_mode = #tpu.pipeline_mode<synchronous>, transform_indices = @transform_13, window_bounds = array<i64: 1, 32>}, {transform_indices = @transform_14, window_bounds = array<i64: 4, 16, 32>}]} {
    %c0 = arith.constant 0 : index
    %c0_0 = arith.constant 0 : index
    %c0_1 = arith.constant 0 : index
    %0 = vector.load %arg1[%c0, %c0_0, %c0_1] : memref<4x16x32xf32, #tpu.memory_space<vmem>>, vector<4x16x32xf32>
    %c0_2 = arith.constant 0 : index
    %c0_3 = arith.constant 0 : index
    %c0_4 = arith.constant 0 : index
    %1 = vector.load %arg2[%c0_2, %c0_3, %c0_4] : memref<1x16x32xf32, #tpu.memory_space<vmem>>, vector<1x16x32xf32>
    %2 = vector.broadcast %1 : vector<1x16x32xf32> to vector<4x16x32xf32>
    %3 = arith.addf %0, %2 : vector<4x16x32xf32>
    %4 = vector.shape_cast %3 : vector<4x16x32xf32> to vector<64x32xf32>
    %c0_5 = arith.constant 0 : index
    %c0_6 = arith.constant 0 : index
    %5 = vector.load %arg3[%c0_5, %c0_6] : memref<32x96xf32, #tpu.memory_space<vmem>>, vector<32x96xf32>
    %cst = arith.constant dense<0.000000e+00> : vector<64x96xf32>
    %6 = tpu.matmul %4, %5, %cst {dimension_numbers = #tpu.dot_dimension_numbers<[1], [0], [0], [1], [0, 0, 1, 1], [], []>} : vector<64x32xf32>, vector<32x96xf32>, vector<64x96xf32> -> vector<64x96xf32>
    %c0_7 = arith.constant 0 : index
    %c0_8 = arith.constant 0 : index
    %7 = vector.load %arg4[%c0_7, %c0_8] : memref<1x96xf32, #tpu.memory_space<vmem>>, vector<1x96xf32>
    %8 = vector.broadcast %7 : vector<1x96xf32> to vector<64x96xf32>
    %9 = arith.addf %6, %8 : vector<64x96xf32>
    %10 = vector.extract_strided_slice %9 {offsets = [0, 0], sizes = [64, 32], strides = [1, 1]} : vector<64x96xf32> to vector<64x32xf32>
    %cst_9 = arith.constant 0.353553385 : f32
    %11 = vector.broadcast %cst_9 : f32 to vector<64x32xf32>
    %12 = arith.mulf %10, %11 : vector<64x32xf32>
    %13 = vector.shape_cast %12 : vector<64x32xf32> to vector<4x16x32xf32>
    %14 = vector.extract_strided_slice %9 {offsets = [0, 32], sizes = [64, 32], strides = [1, 1]} : vector<64x96xf32> to vector<64x32xf32>
    %15 = vector.shape_cast %14 : vector<64x32xf32> to vector<4x16x32xf32>
    %16 = vector.extract_strided_slice %9 {offsets = [0, 64], sizes = [64, 32], strides = [1, 1]} : vector<64x96xf32> to vector<64x32xf32>
    %17 = vector.shape_cast %16 : vector<64x32xf32> to vector<4x16x32xf32>
    %18 = vector.extract_strided_slice %13 {offsets = [0, 0, 0], sizes = [4, 16, 8], strides = [1, 1, 1]} : vector<4x16x32xf32> to vector<4x16x8xf32>
    %19 = vector.extract_strided_slice %15 {offsets = [0, 0, 0], sizes = [4, 16, 8], strides = [1, 1, 1]} : vector<4x16x32xf32> to vector<4x16x8xf32>
    "tpu.trace_start"() <{level = 10 : i32, message = "bqd,bkd->bqk"}> : () -> ()
    %cst_10 = arith.constant dense<0.000000e+00> : vector<4x16x16xf32>
    %20 = tpu.matmul %18, %19, %cst_10 {dimension_numbers = #tpu.dot_dimension_numbers<[2], [2], [1], [1], [0, 0, 0, 1, 1, 1], [0], [0]>} : vector<4x16x8xf32>, vector<4x16x8xf32>, vector<4x16x16xf32> -> vector<4x16x16xf32>
    "tpu.trace_stop"() : () -> ()
    %cst_11 = arith.constant dense<0xFF800000> : vector<4x16xf32>
    %21 = vector.multi_reduction <maximumf>, %20, %cst_11 [2] : vector<4x16x16xf32> to vector<4x16xf32>
    %22 = vector.shape_cast %21 : vector<4x16xf32> to vector<4x16x1xf32>
    %23 = vector.broadcast %22 : vector<4x16x1xf32> to vector<4x16x16xf32>
    %24 = arith.subf %20, %23 : vector<4x16x16xf32>
    %25 = math.exp %24 : vector<4x16x16xf32>
    %cst_12 = arith.constant dense<0.000000e+00> : vector<4x16xf32>
    %26 = vector.multi_reduction <add>, %25, %cst_12 [2] : vector<4x16x16xf32> to vector<4x16xf32>
    %27 = vector.shape_cast %26 : vector<4x16xf32> to vector<4x16x1xf32>
    %28 = tpu.reciprocal %27 {approx = true} : vector<4x16x1xf32> -> vector<4x16x1xf32>
    %29 = vector.broadcast %28 : vector<4x16x1xf32> to vector<4x16x16xf32>
    %30 = arith.mulf %25, %29 : vector<4x16x16xf32>
    %31 = vector.extract_strided_slice %17 {offsets = [0, 0, 0], sizes = [4, 16, 8], strides = [1, 1, 1]} : vector<4x16x32xf32> to vector<4x16x8xf32>
    "tpu.trace_start"() <{level = 10 : i32, message = "bqk,bkd->bqd"}> : () -> ()
    %cst_13 = arith.constant dense<0.000000e+00> : vector<4x16x8xf32>
    %32 = tpu.matmul %30, %31, %cst_13 {dimension_numbers = #tpu.dot_dimension_numbers<[2], [1], [1], [2], [0, 0, 0, 1, 1, 2], [0], [0]>} : vector<4x16x16xf32>, vector<4x16x8xf32>, vector<4x16x8xf32> -> vector<4x16x8xf32>
    "tpu.trace_stop"() : () -> ()
    %33 = vector.extract_strided_slice %13 {offsets = [0, 0, 8], sizes = [4, 16, 8], strides = [1, 1, 1]} : vector<4x16x32xf32> to vector<4x16x8xf32>
    %34 = vector.extract_strided_slice %15 {offsets = [0, 0, 8], sizes = [4, 16, 8], strides = [1, 1, 1]} : vector<4x16x32xf32> to vector<4x16x8xf32>
    "tpu.trace_start"() <{level = 10 : i32, message = "bqd,bkd->bqk"}> : () -> ()
    %cst_14 = arith.constant dense<0.000000e+00> : vector<4x16x16xf32>
    %35 = tpu.matmul %33, %34, %cst_14 {dimension_numbers = #tpu.dot_dimension_numbers<[2], [2], [1], [1], [0, 0, 0, 1, 1, 1], [0], [0]>} : vector<4x16x8xf32>, vector<4x16x8xf32>, vector<4x16x16xf32> -> vector<4x16x16xf32>
    "tpu.trace_stop"() : () -> ()
    %cst_15 = arith.constant dense<0xFF800000> : vector<4x16xf32>
    %36 = vector.multi_reduction <maximumf>, %35, %cst_15 [2] : vector<4x16x16xf32> to vector<4x16xf32>
    %37 = vector.shape_cast %36 : vector<4x16xf32> to vector<4x16x1xf32>
    %38 = vector.broadcast %37 : vector<4x16x1xf32> to vector<4x16x16xf32>
    %39 = arith.subf %35, %38 : vector<4x16x16xf32>
    %40 = math.exp %39 : vector<4x16x16xf32>
    %cst_16 = arith.constant dense<0.000000e+00> : vector<4x16xf32>
    %41 = vector.multi_reduction <add>, %40, %cst_16 [2] : vector<4x16x16xf32> to vector<4x16xf32>
    %42 = vector.shape_cast %41 : vector<4x16xf32> to vector<4x16x1xf32>
    %43 = tpu.reciprocal %42 {approx = true} : vector<4x16x1xf32> -> vector<4x16x1xf32>
    %44 = vector.broadcast %43 : vector<4x16x1xf32> to vector<4x16x16xf32>
    %45 = arith.mulf %40, %44 : vector<4x16x16xf32>
    %46 = vector.extract_strided_slice %17 {offsets = [0, 0, 8], sizes = [4, 16, 8], strides = [1, 1, 1]} : vector<4x16x32xf32> to vector<4x16x8xf32>
    "tpu.trace_start"() <{level = 10 : i32, message = "bqk,bkd->bqd"}> : () -> ()
    %cst_17 = arith.constant dense<0.000000e+00> : vector<4x16x8xf32>
    %47 = tpu.matmul %45, %46, %cst_17 {dimension_numbers = #tpu.dot_dimension_numbers<[2], [1], [1], [2], [0, 0, 0, 1, 1, 2], [0], [0]>} : vector<4x16x16xf32>, vector<4x16x8xf32>, vector<4x16x8xf32> -> vector<4x16x8xf32>
    "tpu.trace_stop"() : () -> ()
    %48 = vector.extract_strided_slice %13 {offsets = [0, 0, 16], sizes = [4, 16, 8], strides = [1, 1, 1]} : vector<4x16x32xf32> to vector<4x16x8xf32>
    %49 = vector.extract_strided_slice %15 {offsets = [0, 0, 16], sizes = [4, 16, 8], strides = [1, 1, 1]} : vector<4x16x32xf32> to vector<4x16x8xf32>
    "tpu.trace_start"() <{level = 10 : i32, message = "bqd,bkd->bqk"}> : () -> ()
    %cst_18 = arith.constant dense<0.000000e+00> : vector<4x16x16xf32>
    %50 = tpu.matmul %48, %49, %cst_18 {dimension_numbers = #tpu.dot_dimension_numbers<[2], [2], [1], [1], [0, 0, 0, 1, 1, 1], [0], [0]>} : vector<4x16x8xf32>, vector<4x16x8xf32>, vector<4x16x16xf32> -> vector<4x16x16xf32>
    "tpu.trace_stop"() : () -> ()
    %cst_19 = arith.constant dense<0xFF800000> : vector<4x16xf32>
    %51 = vector.multi_reduction <maximumf>, %50, %cst_19 [2] : vector<4x16x16xf32> to vector<4x16xf32>
    %52 = vector.shape_cast %51 : vector<4x16xf32> to vector<4x16x1xf32>
    %53 = vector.broadcast %52 : vector<4x16x1xf32> to vector<4x16x16xf32>
    %54 = arith.subf %50, %53 : vector<4x16x16xf32>
    %55 = math.exp %54 : vector<4x16x16xf32>
    %cst_20 = arith.constant dense<0.000000e+00> : vector<4x16xf32>
    %56 = vector.multi_reduction <add>, %55, %cst_20 [2] : vector<4x16x16xf32> to vector<4x16xf32>
    %57 = vector.shape_cast %56 : vector<4x16xf32> to vector<4x16x1xf32>
    %58 = tpu.reciprocal %57 {approx = true} : vector<4x16x1xf32> -> vector<4x16x1xf32>
    %59 = vector.broadcast %58 : vector<4x16x1xf32> to vector<4x16x16xf32>
    %60 = arith.mulf %55, %59 : vector<4x16x16xf32>
    %61 = vector.extract_strided_slice %17 {offsets = [0, 0, 16], sizes = [4, 16, 8], strides = [1, 1, 1]} : vector<4x16x32xf32> to vector<4x16x8xf32>
    "tpu.trace_start"() <{level = 10 : i32, message = "bqk,bkd->bqd"}> : () -> ()
    %cst_21 = arith.constant dense<0.000000e+00> : vector<4x16x8xf32>
    %62 = tpu.matmul %60, %61, %cst_21 {dimension_numbers = #tpu.dot_dimension_numbers<[2], [1], [1], [2], [0, 0, 0, 1, 1, 2], [0], [0]>} : vector<4x16x16xf32>, vector<4x16x8xf32>, vector<4x16x8xf32> -> vector<4x16x8xf32>
    "tpu.trace_stop"() : () -> ()
    %63 = vector.extract_strided_slice %13 {offsets = [0, 0, 24], sizes = [4, 16, 8], strides = [1, 1, 1]} : vector<4x16x32xf32> to vector<4x16x8xf32>
    %64 = vector.extract_strided_slice %15 {offsets = [0, 0, 24], sizes = [4, 16, 8], strides = [1, 1, 1]} : vector<4x16x32xf32> to vector<4x16x8xf32>
    "tpu.trace_start"() <{level = 10 : i32, message = "bqd,bkd->bqk"}> : () -> ()
    %cst_22 = arith.constant dense<0.000000e+00> : vector<4x16x16xf32>
    %65 = tpu.matmul %63, %64, %cst_22 {dimension_numbers = #tpu.dot_dimension_numbers<[2], [2], [1], [1], [0, 0, 0, 1, 1, 1], [0], [0]>} : vector<4x16x8xf32>, vector<4x16x8xf32>, vector<4x16x16xf32> -> vector<4x16x16xf32>
    "tpu.trace_stop"() : () -> ()
    %cst_23 = arith.constant dense<0xFF800000> : vector<4x16xf32>
    %66 = vector.multi_reduction <maximumf>, %65, %cst_23 [2] : vector<4x16x16xf32> to vector<4x16xf32>
    %67 = vector.shape_cast %66 : vector<4x16xf32> to vector<4x16x1xf32>
    %68 = vector.broadcast %67 : vector<4x16x1xf32> to vector<4x16x16xf32>
    %69 = arith.subf %65, %68 : vector<4x16x16xf32>
    %70 = math.exp %69 : vector<4x16x16xf32>
    %cst_24 = arith.constant dense<0.000000e+00> : vector<4x16xf32>
    %71 = vector.multi_reduction <add>, %70, %cst_24 [2] : vector<4x16x16xf32> to vector<4x16xf32>
    %72 = vector.shape_cast %71 : vector<4x16xf32> to vector<4x16x1xf32>
    %73 = tpu.reciprocal %72 {approx = true} : vector<4x16x1xf32> -> vector<4x16x1xf32>
    %74 = vector.broadcast %73 : vector<4x16x1xf32> to vector<4x16x16xf32>
    %75 = arith.mulf %70, %74 : vector<4x16x16xf32>
    %76 = vector.extract_strided_slice %17 {offsets = [0, 0, 24], sizes = [4, 16, 8], strides = [1, 1, 1]} : vector<4x16x32xf32> to vector<4x16x8xf32>
    "tpu.trace_start"() <{level = 10 : i32, message = "bqk,bkd->bqd"}> : () -> ()
    %cst_25 = arith.constant dense<0.000000e+00> : vector<4x16x8xf32>
    %77 = tpu.matmul %75, %76, %cst_25 {dimension_numbers = #tpu.dot_dimension_numbers<[2], [1], [1], [2], [0, 0, 0, 1, 1, 2], [0], [0]>} : vector<4x16x16xf32>, vector<4x16x8xf32>, vector<4x16x8xf32> -> vector<4x16x8xf32>
    "tpu.trace_stop"() : () -> ()
    %78 = tpu.concatenate %32, %47, %62, %77 in 2 : vector<4x16x8xf32>, vector<4x16x8xf32>, vector<4x16x8xf32>, vector<4x16x8xf32> -> vector<4x16x32xf32>
    %79 = vector.shape_cast %78 : vector<4x16x32xf32> to vector<64x32xf32>
    %c0_26 = arith.constant 0 : index
    %c0_27 = arith.constant 0 : index
    %80 = vector.load %arg5[%c0_26, %c0_27] : memref<32x32xf32, #tpu.memory_space<vmem>>, vector<32x32xf32>
    %cst_28 = arith.constant dense<0.000000e+00> : vector<64x32xf32>
    %81 = tpu.matmul %79, %80, %cst_28 {dimension_numbers = #tpu.dot_dimension_numbers<[1], [0], [0], [1], [0, 0, 1, 1], [], []>} : vector<64x32xf32>, vector<32x32xf32>, vector<64x32xf32> -> vector<64x32xf32>
    %c0_29 = arith.constant 0 : index
    %c0_30 = arith.constant 0 : index
    %82 = vector.load %arg6[%c0_29, %c0_30] : memref<1x32xf32, #tpu.memory_space<vmem>>, vector<1x32xf32>
    %83 = vector.broadcast %82 : vector<1x32xf32> to vector<64x32xf32>
    %84 = arith.addf %81, %83 : vector<64x32xf32>
    %85 = arith.addf %4, %84 : vector<64x32xf32>
    %c0_31 = arith.constant 0 : index
    %c0_32 = arith.constant 0 : index
    %86 = vector.load %arg7[%c0_31, %c0_32] : memref<1x32xf32, #tpu.memory_space<vmem>>, vector<1x32xf32>
    %c0_33 = arith.constant 0 : index
    %c0_34 = arith.constant 0 : index
    %87 = vector.load %arg8[%c0_33, %c0_34] : memref<1x32xf32, #tpu.memory_space<vmem>>, vector<1x32xf32>
    %cst_35 = arith.constant dense<0.000000e+00> : vector<64xf32>
    %88 = vector.multi_reduction <add>, %85, %cst_35 [1] : vector<64x32xf32> to vector<64xf32>
    %89 = vector.shape_cast %88 : vector<64xf32> to vector<64x1xf32>
    %cst_36 = arith.constant 3.200000e+01 : f32
    %90 = vector.broadcast %cst_36 : f32 to vector<64x1xf32>
    %91 = arith.divf %89, %90 : vector<64x1xf32>
    %92 = vector.broadcast %91 : vector<64x1xf32> to vector<64x32xf32>
    %93 = arith.subf %85, %92 : vector<64x32xf32>
    %94 = arith.mulf %93, %93 : vector<64x32xf32>
    %cst_37 = arith.constant dense<0.000000e+00> : vector<64xf32>
    %95 = vector.multi_reduction <add>, %94, %cst_37 [1] : vector<64x32xf32> to vector<64xf32>
    %96 = vector.shape_cast %95 : vector<64xf32> to vector<64x1xf32>
    %cst_38 = arith.constant 3.200000e+01 : f32
    %97 = vector.broadcast %cst_38 : f32 to vector<64x1xf32>
    %98 = arith.divf %96, %97 : vector<64x1xf32>
    %cst_39 = arith.constant 9.99999974E-6 : f32
    %99 = vector.broadcast %cst_39 : f32 to vector<64x1xf32>
    %100 = arith.addf %98, %99 : vector<64x1xf32>
    %101 = math.rsqrt %100 : vector<64x1xf32>
    %102 = vector.broadcast %101 : vector<64x1xf32> to vector<64x32xf32>
    %103 = arith.mulf %93, %102 : vector<64x32xf32>
    %104 = vector.broadcast %86 : vector<1x32xf32> to vector<64x32xf32>
    %105 = arith.mulf %103, %104 : vector<64x32xf32>
    %106 = vector.broadcast %87 : vector<1x32xf32> to vector<64x32xf32>
    %107 = arith.addf %105, %106 : vector<64x32xf32>
    %c0_40 = arith.constant 0 : index
    %c0_41 = arith.constant 0 : index
    %108 = vector.load %arg9[%c0_40, %c0_41] : memref<32x2048xf32, #tpu.memory_space<vmem>>, vector<32x2048xf32>
    %cst_42 = arith.constant dense<0.000000e+00> : vector<64x2048xf32>
    %109 = tpu.matmul %107, %108, %cst_42 {dimension_numbers = #tpu.dot_dimension_numbers<[1], [0], [0], [1], [0, 0, 1, 1], [], []>} : vector<64x32xf32>, vector<32x2048xf32>, vector<64x2048xf32> -> vector<64x2048xf32>
    %c0_43 = arith.constant 0 : index
    %c0_44 = arith.constant 0 : index
    %110 = vector.load %arg10[%c0_43, %c0_44] : memref<1x2048xf32, #tpu.memory_space<vmem>>, vector<1x2048xf32>
    %111 = vector.broadcast %110 : vector<1x2048xf32> to vector<64x2048xf32>
    %112 = arith.addf %109, %111 : vector<64x2048xf32>
    %cst_45 = arith.constant 0.000000e+00 : f32
    %113 = vector.broadcast %cst_45 : f32 to vector<64x2048xf32>
    %114 = arith.maximumf %112, %113 : vector<64x2048xf32>
    %c0_46 = arith.constant 0 : index
    %c0_47 = arith.constant 0 : index
    %115 = vector.load %arg11[%c0_46, %c0_47] : memref<2048x32xf32, #tpu.memory_space<vmem>>, vector<2048x32xf32>
    %cst_48 = arith.constant dense<0.000000e+00> : vector<64x32xf32>
    %116 = tpu.matmul %114, %115, %cst_48 {dimension_numbers = #tpu.dot_dimension_numbers<[1], [0], [0], [1], [0, 0, 1, 1], [], []>} : vector<64x2048xf32>, vector<2048x32xf32>, vector<64x32xf32> -> vector<64x32xf32>
    %c0_49 = arith.constant 0 : index
    %c0_50 = arith.constant 0 : index
    %117 = vector.load %arg12[%c0_49, %c0_50] : memref<1x32xf32, #tpu.memory_space<vmem>>, vector<1x32xf32>
    %118 = vector.broadcast %117 : vector<1x32xf32> to vector<64x32xf32>
    %119 = arith.addf %116, %118 : vector<64x32xf32>
    %120 = arith.addf %107, %119 : vector<64x32xf32>
    %c0_51 = arith.constant 0 : index
    %c0_52 = arith.constant 0 : index
    %121 = vector.load %arg13[%c0_51, %c0_52] : memref<1x32xf32, #tpu.memory_space<vmem>>, vector<1x32xf32>
    %c0_53 = arith.constant 0 : index
    %c0_54 = arith.constant 0 : index
    %122 = vector.load %arg14[%c0_53, %c0_54] : memref<1x32xf32, #tpu.memory_space<vmem>>, vector<1x32xf32>
    %cst_55 = arith.constant dense<0.000000e+00> : vector<64xf32>
    %123 = vector.multi_reduction <add>, %120, %cst_55 [1] : vector<64x32xf32> to vector<64xf32>
    %124 = vector.shape_cast %123 : vector<64xf32> to vector<64x1xf32>
    %cst_56 = arith.constant 3.200000e+01 : f32
    %125 = vector.broadcast %cst_56 : f32 to vector<64x1xf32>
    %126 = arith.divf %124, %125 : vector<64x1xf32>
    %127 = vector.broadcast %126 : vector<64x1xf32> to vector<64x32xf32>
    %128 = arith.subf %120, %127 : vector<64x32xf32>
    %129 = arith.mulf %128, %128 : vector<64x32xf32>
    %cst_57 = arith.constant dense<0.000000e+00> : vector<64xf32>
    %130 = vector.multi_reduction <add>, %129, %cst_57 [1] : vector<64x32xf32> to vector<64xf32>
    %131 = vector.shape_cast %130 : vector<64xf32> to vector<64x1xf32>
    %cst_58 = arith.constant 3.200000e+01 : f32
    %132 = vector.broadcast %cst_58 : f32 to vector<64x1xf32>
    %133 = arith.divf %131, %132 : vector<64x1xf32>
    %cst_59 = arith.constant 9.99999974E-6 : f32
    %134 = vector.broadcast %cst_59 : f32 to vector<64x1xf32>
    %135 = arith.addf %133, %134 : vector<64x1xf32>
    %136 = math.rsqrt %135 : vector<64x1xf32>
    %137 = vector.broadcast %136 : vector<64x1xf32> to vector<64x32xf32>
    %138 = arith.mulf %128, %137 : vector<64x32xf32>
    %139 = vector.broadcast %121 : vector<1x32xf32> to vector<64x32xf32>
    %140 = arith.mulf %138, %139 : vector<64x32xf32>
    %141 = vector.broadcast %122 : vector<1x32xf32> to vector<64x32xf32>
    %142 = arith.addf %140, %141 : vector<64x32xf32>
    %143 = vector.shape_cast %142 : vector<64x32xf32> to vector<4x16x32xf32>
    %c0_60 = arith.constant 0 : index
    %c0_61 = arith.constant 0 : index
    %c0_62 = arith.constant 0 : index
    %144 = vector.load %arg15[%c0_60, %c0_61, %c0_62] : memref<4x16x32xf32, #tpu.memory_space<vmem>>, vector<4x16x32xf32>
    tpu.vector_store %arg15[%c0_60, %c0_61, %c0_62], %143 {strides = array<i32>} : memref<4x16x32xf32, #tpu.memory_space<vmem>>, vector<4x16x32xf32>,
    return
  }
  func.func @transform_0(%arg0: i32) -> (i32, i32, i32) {
    %c0_i32 = arith.constant 0 : i32
    %c0_i32_0 = arith.constant 0 : i32
    %c0_i32_1 = arith.constant 0 : i32
    return %arg0, %c0_i32, %c0_i32_0 : i32, i32, i32
  }
  func.func @transform_1(%arg0: i32) -> (i32, i32, i32) {
    %c0_i32 = arith.constant 0 : i32
    %c0_i32_0 = arith.constant 0 : i32
    %c0_i32_1 = arith.constant 0 : i32
    %c0_i32_2 = arith.constant 0 : i32
    return %c0_i32, %c0_i32_0, %c0_i32_1 : i32, i32, i32
  }
  func.func @transform_2(%arg0: i32) -> (i32, i32) {
    %c0_i32 = arith.constant 0 : i32
    %c0_i32_0 = arith.constant 0 : i32
    %c0_i32_1 = arith.constant 0 : i32
    return %c0_i32, %c0_i32_0 : i32, i32
  }
  func.func @transform_3(%arg0: i32) -> (i32, i32) {
    %c0_i32 = arith.constant 0 : i32
    %c0_i32_0 = arith.constant 0 : i32
    %c0_i32_1 = arith.constant 0 : i32
    return %c0_i32, %c0_i32_0 : i32, i32
  }
  func.func @transform_4(%arg0: i32) -> (i32, i32) {
    %c0_i32 = arith.constant 0 : i32
    %c0_i32_0 = arith.constant 0 : i32
    %c0_i32_1 = arith.constant 0 : i32
    return %c0_i32, %c0_i32_0 : i32, i32
  }
  func.func @transform_5(%arg0: i32) -> (i32, i32) {
    %c0_i32 = arith.constant 0 : i32
    %c0_i32_0 = arith.constant 0 : i32
    %c0_i32_1 = arith.constant 0 : i32
    return %c0_i32, %c0_i32_0 : i32, i32
  }
  func.func @transform_6(%arg0: i32) -> (i32, i32) {
    %c0_i32 = arith.constant 0 : i32
    %c0_i32_0 = arith.constant 0 : i32
    %c0_i32_1 = arith.constant 0 : i32
    return %c0_i32, %c0_i32_0 : i32, i32
  }
  func.func @transform_7(%arg0: i32) -> (i32, i32) {
    %c0_i32 = arith.constant 0 : i32
    %c0_i32_0 = arith.constant 0 : i32
    %c0_i32_1 = arith.constant 0 : i32
    return %c0_i32, %c0_i32_0 : i32, i32
  }
  func.func @transform_8(%arg0: i32) -> (i32, i32) {
    %c0_i32 = arith.constant 0 : i32
    %c0_i32_0 = arith.constant 0 : i32
    %c0_i32_1 = arith.constant 0 : i32
    return %c0_i32, %c0_i32_0 : i32, i32
  }
  func.func @transform_9(%arg0: i32) -> (i32, i32) {
    %c0_i32 = arith.constant 0 : i32
    %c0_i32_0 = arith.constant 0 : i32
    %c0_i32_1 = arith.constant 0 : i32
    return %c0_i32, %c0_i32_0 : i32, i32
  }
  func.func @transform_10(%arg0: i32) -> (i32, i32) {
    %c0_i32 = arith.constant 0 : i32
    %c0_i32_0 = arith.constant 0 : i32
    %c0_i32_1 = arith.constant 0 : i32
    return %c0_i32, %c0_i32_0 : i32, i32
  }
  func.func @transform_11(%arg0: i32) -> (i32, i32) {
    %c0_i32 = arith.constant 0 : i32
    %c0_i32_0 = arith.constant 0 : i32
    %c0_i32_1 = arith.constant 0 : i32
    return %c0_i32, %c0_i32_0 : i32, i32
  }
  func.func @transform_12(%arg0: i32) -> (i32, i32) {
    %c0_i32 = arith.constant 0 : i32
    %c0_i32_0 = arith.constant 0 : i32
    %c0_i32_1 = arith.constant 0 : i32
    return %c0_i32, %c0_i32_0 : i32, i32
  }
  func.func @transform_13(%arg0: i32) -> (i32, i32) {
    %c0_i32 = arith.constant 0 : i32
    %c0_i32_0 = arith.constant 0 : i32
    %c0_i32_1 = arith.constant 0 : i32
    return %c0_i32, %c0_i32_0 : i32, i32
  }
  func.func @transform_14(%arg0: i32) -> (i32, i32, i32) {
    %c0_i32 = arith.constant 0 : i32
    %c0_i32_0 = arith.constant 0 : i32
    %c0_i32_1 = arith.constant 0 : i32
    return %arg0, %c0_i32, %c0_i32_0 : i32, i32, i32
  }
}

</mosaic_0001>

<bundles_post_ra>
// kernel: tpu_custom_call.1
= control target key start
LH: loop header
LB: loop body
LE: loop exit
PB: predicated region body
PF: predicated region fallthrough
CT: control target
= control target key end

     0   :  { %vm77_vm0 = vcmask 261120   ;;  %s10953_s0 = inlined_call_operand.vmem [shape: f32[4,16,32], index: 0, kind: input, shape index: {}]   ;;  %s10954_s1 = inlined_call_operand.vmem [shape: f32[1,16,32], index: 1, kind: input, shape index: {}]   ;;  %s10955_s2 = inlined_call_operand.vmem [shape: f32[32,96], index: 2, kind: input, shape index: {}]   ;;  %s10956_s3 = inlined_call_operand.vmem [shape: f32[1,96], index: 3, kind: input, shape index: {}]   ;;  %s10957_s4 = inlined_call_operand.vmem [shape: f32[32,32], index: 4, kind: input, shape index: {}]   ;;  %s10958_s5 = inlined_call_operand.vmem [shape: f32[1,32], index: 5, kind: input, shape index: {}]   ;;  %s10959_s6 = inlined_call_operand.vmem [shape: f32[1,32], index: 6, kind: input, shape index: {}]   ;;  %s10960_s7 = inlined_call_operand.vmem [shape: f32[1,32], index: 7, kind: input, shape index: {}]   ;;  %s10961_s8 = inlined_call_operand.vmem [shape: f32[32,2048], index: 8, kind: input, shape index: {}]   ;;  %s10962_s9 = inlined_call_operand.vmem [shape: f32[1,2048], index: 9, kind: input, shape index: {}]   ;;  %s10963_s10 = inlined_call_operand.vmem [shape: f32[2048,32], index: 10, kind: input, shape index: {}]   ;;  %s10964_s11 = inlined_call_operand.vmem [shape: f32[1,32], index: 11, kind: input, shape index: {}]   ;;  %s10965_s12 = inlined_call_operand.vmem [shape: f32[1,32], index: 12, kind: input, shape index: {}]   ;;  %s10966_s13 = inlined_call_operand.vmem [shape: f32[1,32], index: 13, kind: input, shape index: {}]   ;;  %s10967_s14 = inlined_call_operand.hbm [shape: f32[4,16,32], index: 14, kind: output, shape index: {}]  }
   0x1   :  { %v66_v0 = vld [vmem:[%s10955_s2] sm:$0xff]  ;;  %v67_v1 = vld [vmem:[%s10955_s2 + $0x8] sm:$0xff]  ;;  %v68_v2 = vld [vmem:[%s10955_s2 + $0x10] sm:$0xff] }
   0x2   :  { %v7341_v3 = vpack.c.bf16 %v67_v1, %v66_v0  ;;  %v69_v4 = vld [vmem:[%s10955_s2 + $0x18] sm:$0xff]  ;;  %v48_v5 = vld [vmem:[%s10953_s0] sm:$0xff]  ;;  %v49_v11 = vld [vmem:[%s10953_s0 + $0x8] sm:$0xff] }
   0x3   :  { %v56_v6 = vld [vmem:[%s10954_s1] sm:$0xff]  ;;  %v7345_v7 = vpack.c.bf16 %v69_v4, %v68_v2  ;;  %v57_v12 = vld [vmem:[%s10954_s1 + $0x8] sm:$0xff] }
   0x4   :  { %v8312_v8 = vadd.f32 %v56_v6, %v48_v5  ;;  %v52_v9 = vld [vmem:[%s10953_s0 + $0x20] sm:$0xff]  ;;  %7342 = vmatprep.subr.bf16.mxu0 %v7341_v3  ;;  %7837 = vmatprep.subr.bf16.mxu1 %v7341_v3  ;;  %v53_v13 = vld [vmem:[%s10953_s0 + $0x28] sm:$0xff] }
   0x5   :  { %v8317_v10 = vadd.f32 %v56_v6, %v52_v9  ;;  %7344 = vmatpush3.bf16.msra.mxu0 %v7341_v3  ;;  %7839 = vmatpush3.bf16.msra.mxu1 %v7341_v3 }
   0x6   :  { %19 = vsyncpa [#allocation3], 0  ;;  %7346 = vmatprep.subr.bf16.mxu0 %v7345_v7  ;;  %7838 = vmatprep.subr.bf16.mxu1 %v7345_v7  ;;  %v50_v14 = vld [vmem:[%s10953_s0 + $0x10] sm:$0xff]  ;;  %v8338_v16 = vadd.f32 %v57_v12, %v49_v11  ;;  %v8340_v17 = vadd.f32 %v57_v12, %v53_v13  ;;  %v51_v20 = vld [vmem:[%s10953_s0 + $0x18] sm:$0xff]  ;;  %vm221_vm1 = vcmask 64512   ;;  %s8203_s24 = smov 64  }
   0x7   :  { %v54_v15 = vld [vmem:[%s10953_s0 + $0x30] sm:$0xff]  ;;  %7085 = vmatprep.mubr.msk.f32.mxu0 %vm77_vm0, %v8312_v8  ;;  %7091 = vmatprep.mubr.msk.f32.mxu1 %vm77_vm0, %v8317_v10  ;;  %v8342_v18 = vadd.f32 %v56_v6, %v50_v14  ;;  %v55_v21 = vld [vmem:[%s10953_s0 + $0x38] sm:$0xff]  ;;  %v8356_v22 = vadd.f32 %v57_v12, %v51_v20  ;;  %v6294_v24 = vld [vmem:[%s10956_s3] ss:$0 sm:$0xff]  ;;  %s8202_s3 = smov 96   ;;  %s8204_s25 = smov 88  }
   0x8   :  { %v8344_v19 = vadd.f32 %v56_v6, %v54_v15  ;;  %v8358_v23 = vadd.f32 %v57_v12, %v55_v21  ;;  %vm8413_vm2 = vmpackc.low %vm221_vm1, %vm221_vm1  ;;  %vm580_vm3 = vcmask 130048   ;;  %s8205_s26 = smov 120   ;;  %s8206_s2 = smov 56   ;;  %vm3529_vm4 = vcmask 195584  }
   0x9   :  { %7348 = vmatpush3.bf16.msra.mxu0 %v7345_v7  ;;  %7840 = vmatpush3.bf16.msra.mxu1 %v7345_v7  ;;  %s8207_s27 = smov 80   ;;  %s8208_s28 = smov 112  }
   0xa   :  { %s8209_s29 = smov 48   ;;  %s8210_s30 = smov 72  }
   0xb   :  { %s8211_s15 = smov 104   ;;  %s8212_s16 = smov 40  }
   0xc   :  { %7086 = vmatmul.mubr.msk.f32.vlgmr.msra.gmra.mrb[0].mxu0 %vm77_vm0, %v8338_v16  ;;  %7092 = vmatmul.mubr.msk.f32.vlgmr.msra.gmra.mrb[0].mxu1 %vm77_vm0, %v8340_v17  ;;  %s8213_s17 = smov 8   ;;  %s8214_s18 = smov 16  }
   0xd   :  { %7088 = vmatprep.mubr.msk.f32.mxu0 %vm77_vm0, %v8342_v18  ;;  %7094 = vmatprep.mubr.msk.f32.mxu1 %vm77_vm0, %v8344_v19 }
  0x10   :  { %7089 = vmatmul.mubr.msk.f32.gmra.mrb[2].mxu0 %vm77_vm0, %v8356_v22  ;;  %7095 = vmatmul.mubr.msk.f32.gmra.mrb[2].mxu1 %vm77_vm0, %v8358_v23 }
  0xdf   :  { %v7087_v25 = vpop.f32.mrb[0].mxu0  ;;  %v7093_v26 = vpop.f32.mrb[0].mxu1 }
  0xe0   :  { %v8371_v27 = vadd.f32 %v7087_v25, %v6294_v24  ;;  %v194_v28 = vadd.f32 %v7093_v26, %v6294_v24  ;;  %v168_v29 = vpop.f32.mrb[1].mxu0  ;;  %v188_v30 = vpop.f32.mrb[1].mxu1 }
  0xe1   :  { %v169_v31 = vadd.f32 %v6294_v24, %v168_v29  ;;  %v189_v32 = vadd.f32 %v6294_v24, %v188_v30 }
  0xe2   :  { %v8427_v5 = vmul.f32 0.35355338, %v194_v28  ;;  %v8430_v9 = vmul.f32 0.35355338, %v8371_v27 }
  0xe3   :  { %v7090_v33 = vpop.f32.mrb[2].mxu0  ;;  %v7096_v34 = vpop.f32.mrb[2].mxu1  ;;  %v8373_v35 = vpack.i.bf16 %v194_v28, %v189_v32  ;;  %v8375_v36 = vmul.f32 0.35355338, %v189_v32  ;;  %v8378_v37 = vpack.i.bf16 %v8371_v27, %v169_v31  ;;  %v8380_v38 = vmul.f32 0.35355338, %v169_v31 }
  0xe4   :  { %v8382_v39 = vadd.f32 %v7090_v33, %v6294_v24  ;;  %v8384_v40 = vadd.f32 %v7096_v34, %v6294_v24  ;;  %v178_v41 = vpop.f32.mrb[3].mxu0  ;;  %v198_v42 = vpop.f32.mrb[3].mxu1 }
  0xe5   :  { %v179_v43 = vadd.f32 %v6294_v24, %v178_v41  ;;  %v8386_v44 = vadd.f32 %v6294_v24, %v198_v42  ;;  %7869 = vrot.lane.b32.xlu1 %v8373_v35, %s8202_s3  ;;  %7115 = vmatprep.mubr.msk.f32.mxu0 %vm221_vm1, %v8375_v36 }
  0xe6   :  { %7859 = vrot.lane.b32.xlu0 %v8378_v37, %s8202_s3  ;;  %7101 = vmatprep.mubr.msk.f32.mxu1 %vm221_vm1, %v8380_v38  ;;  %v8448_v20 = vmul.f32 0.35355338, %v8382_v39  ;;  %v8460_v28 = vmul.f32 0.35355338, %v8384_v40 }
  0xe7   :  { %v8396_v45 = vpack.i.bf16 %v8384_v40, %v8386_v44  ;;  %v8399_v46 = vpack.i.bf16 %v8382_v39, %v179_v43  ;;  %v8434_v11 = vmul.f32 0.35355338, %v179_v43  ;;  %v8451_v24 = vmul.f32 0.35355338, %v8386_v44 }
  0xe9   :  { %7874 = vrot.lane.b32.xlu1 %v8396_v45, %s8202_s3 }
  0xea   :  { %7864 = vrot.lane.b32.xlu0 %v8399_v46, %s8202_s3 }
  0xed   :  { %7879 = vrot.lane.b32.xlu1 %v8378_v37, %s8203_s24 }
  0xee   :  { %7884 = vrot.lane.b32.xlu0 %v8373_v35, %s8203_s24 }
  0xf1   :  { %7894 = vrot.lane.b32.xlu1 %v8399_v46, %s8203_s24 }
  0xf2   :  { %7889 = vrot.lane.b32.xlu0 %v8378_v37, %s8204_s25 }
  0xf5   :  { %7899 = vrot.lane.b32.xlu1 %v8396_v45, %s8203_s24  ;;  %s8215_s24 = smov 24  }
  0xf9   :  { %7904 = vrot.lane.b32.xlu1 %v8399_v46, %s8204_s25 }
 0x157   :  { %v7870_v47 = vpop.permute.xlu1 %7869 }
 0x158   :  { %v7872_v48 = vunpack.i.h.bf16 %v7870_v47  ;;  %v7871_v49 = vunpack.i.l.bf16 %v7870_v47  ;;  %v7860_v50 = vpop.permute.xlu0 %7859 }
 0x159   :  { %v7862_v51 = vunpack.i.h.bf16 %v7860_v50  ;;  %v7861_v52 = vunpack.i.l.bf16 %v7860_v50 }
 0x15a   :  { %v7361_v54 = vpack.c.bf16 %v7872_v48, %v7871_v49 }
 0x15b   :  { %v7349_v55 = vpack.c.bf16 %v7862_v51, %v7861_v52  ;;  %v7875_v56 = vpop.permute.xlu1 %7874 }
 0x15c   :  { %v7865_v57 = vpop.permute.xlu0 %7864  ;;  %7363 = vmatprep.subr.msk.bf16.mxu0 %vm8413_vm2, %v7361_v54  ;;  %v7877_v60 = vunpack.i.h.bf16 %v7875_v56  ;;  %v7876_v61 = vunpack.i.l.bf16 %v7875_v56 }
 0x15d   :  { %v7867_v58 = vunpack.i.h.bf16 %v7865_v57  ;;  %v7866_v59 = vunpack.i.l.bf16 %v7865_v57  ;;  %7351 = vmatprep.subr.msk.bf16.mxu1 %vm8413_vm2, %v7349_v55  ;;  %7366 = vmatpush3.bf16.xpose.msk.msra.mxu0 %vm8413_vm2, %v7361_v54 }
 0x15e   :  { %7354 = vmatpush3.bf16.xpose.msk.msra.mxu1 %vm8413_vm2, %v7349_v55  ;;  %v7367_v7 = vpack.c.bf16 %v7877_v60, %v7876_v61 }
 0x15f   :  { %v7355_v62 = vpack.c.bf16 %v7867_v58, %v7866_v59  ;;  %v7880_v63 = vpop.permute.xlu1 %7879 }
 0x160   :  { %v7882_v0 = vunpack.i.h.bf16 %v7880_v63  ;;  %v7881_v1 = vunpack.i.l.bf16 %v7880_v63  ;;  %v7885_v2 = vpop.permute.xlu0 %7884 }
 0x161   :  { %v7887_v3 = vunpack.i.h.bf16 %v7885_v2  ;;  %v7886_v4 = vunpack.i.l.bf16 %v7885_v2  ;;  %7357 = vmatprep.subr.msk.bf16.mxu1 %vm8413_vm2, %v7355_v62 }
 0x162   :  { %v7373_v6 = vpack.c.bf16 %v7882_v0, %v7881_v1 }
 0x163   :  { %v8438_v12 = vpack.c.bf16 %v7887_v3, %v7886_v4  ;;  %v7895_v13 = vpop.permute.xlu1 %7894 }
 0x164   :  { %7116 = vmatmul.mubr.msk.f32.vlgmr.msra.gmra.mrb[4].mxu0 %vm221_vm1, %v8427_v5  ;;  %7374 = vmatprep.subr.bf16.mxu0 %v7373_v6  ;;  %v7897_v14 = vunpack.i.h.bf16 %v7895_v13  ;;  %v7896_v15 = vunpack.i.l.bf16 %v7895_v13  ;;  %v8482_v52 = vpop.permute.xlu0 %7889 }
 0x165   :  { %7102 = vmatmul.mubr.msk.f32.vlgmr.msra.gmra.mrb[4].mxu1 %vm221_vm1, %v8430_v9  ;;  %7376 = vmatpush3.bf16.msra.mxu0 %v7373_v6 }
 0x166   :  { %7360 = vmatpush3.bf16.xpose.msk.msra.mxu1 %vm8413_vm2, %v7355_v62  ;;  %7108 = vmatprep.mubr.msk.f32.mxu1 %vm221_vm1, %v8434_v11  ;;  %v7377_v21 = vpack.c.bf16 %v7897_v14, %v7896_v15 }
 0x167   :  { %7382 = vmatprep.subr.bf16.mxu0 %v8438_v12  ;;  %7369 = vmatprep.subr.msk.bf16.mxu1 %vm8413_vm2, %v7367_v7  ;;  %v7900_v25 = vpop.permute.xlu1 %7899 }
 0x168   :  { %v7902_v26 = vunpack.i.h.bf16 %v7900_v25  ;;  %v7901_v27 = vunpack.i.l.bf16 %v7900_v25 }
 0x16a   :  { %v8462_v29 = vpack.c.bf16 %v7902_v26, %v7901_v27 }
 0x16b   :  { %v8484_v54 = vpop.permute.xlu1 %7904 }
 0x16d   :  { %7109 = vmatmul.mubr.msk.f32.vlgmr.msra.gmra.mrb[6].mxu1 %vm221_vm1, %v8448_v20 }
 0x16e   :  { %7372 = vmatpush3.bf16.xpose.msk.msra.mxu1 %vm8413_vm2, %v7367_v7  ;;  %7122 = vmatprep.mubr.msk.f32.mxu1 %vm221_vm1, %v8451_v24 }
 0x16f   :  { %7378 = vmatprep.subr.bf16.mxu1 %v7377_v21 }
 0x175   :  { %7123 = vmatmul.mubr.msk.f32.vlgmr.msra.gmra.mrb[8].mxu1 %vm221_vm1, %v8460_v28 }
 0x176   :  { %7380 = vmatpush3.bf16.msra.mxu1 %v7377_v21 }
 0x177   :  { %7386 = vmatprep.subr.bf16.mxu1 %v8462_v29 }
 0x237   :  { %v7117_v30 = vpop.f32.mrb[4].mxu0 }
 0x238   :  { %v7103_v31 = vpop.f32.mrb[4].mxu1  ;;  %v480_v32 = vpop.f32.mrb[5].mxu0  ;;  %v596_v33 = vsel %vm580_vm3, %v7117_v30, -inf }
 0x239   :  { %v298_v34 = vpop.f32.mrb[5].mxu1  ;;  %597 = vmax.xlane.f32.xlu0 %v596_v33  ;;  %v584_v39 = vsel %vm580_vm3, %v7103_v31, -inf  ;;  %v593_v41 = vsel %vm580_vm3, %v480_v32, -inf }
 0x23a   :  { %585 = vmax.xlane.f32.xlu1 %v584_v39  ;;  %v581_v40 = vsel %vm580_vm3, %v298_v34, -inf }
 0x23d   :  { %582 = vmax.xlane.f32.xlu0 %v581_v40 }
 0x23e   :  { %594 = vmax.xlane.f32.xlu1 %v593_v41 }
 0x240   :  { %v7110_v42 = vpop.f32.mrb[6].mxu1 }
 0x241   :  { %v389_v43 = vpop.f32.mrb[7].mxu1  ;;  %v590_v44 = vsel %vm580_vm3, %v7110_v42, -inf }
 0x242   :  { %591 = vmax.xlane.f32.xlu0 %v590_v44  ;;  %v587_v47 = vsel %vm580_vm3, %v389_v43, -inf }
 0x246   :  { %588 = vmax.xlane.f32.xlu0 %v587_v47 }
 0x248   :  { %v7124_v48 = vpop.f32.mrb[8].mxu1 }
 0x249   :  { %v8473_v49 = vpop.f32.mrb[9].mxu1  ;;  %v602_v50 = vsel %vm580_vm3, %v7124_v48, -inf }
 0x24a   :  { %603 = vmax.xlane.f32.xlu0 %v602_v50  ;;  %v599_v51 = vsel %vm580_vm3, %v8473_v49, -inf }
 0x24f   :  { %7909 = vrot.lane.b32.xlu1 %v8373_v35, %s8204_s25 }
 0x260   :  { %1017 = vrot.lane.b32.xlu0 %v8380_v38, %s8205_s26 }
 0x273   :  { %600 = vmax.xlane.f32.xlu1 %v599_v51 }
 0x2c6   :  { %v598_v55 = vpop.xlane.xlu0 %597 }
 0x2c7   :  { %v610_v56 = vsub.f32 %v7117_v30, %v598_v55  ;;  %v586_v57 = vpop.xlane.xlu1 %585 }
 0x2c8   :  { %v606_v58 = vsub.f32 %v7103_v31, %v586_v57 }
 0x2c9   :  { %v623_v59 = vmul.f32 1.442695, %v610_v56 }
 0x2ca   :  { %v615_v60 = vmul.f32 1.442695, %v606_v58  ;;  %v583_v61 = vpop.xlane.xlu0 %582 }
 0x2cb   :  { %v595_v62 = vpop.xlane.xlu1 %594  ;;  %v605_v63 = vsub.f32 %v298_v34, %v583_v61 }
 0x2cc   :  { %8018 = vpow2.f32 %v615_v60  ;;  %v609_v0 = vsub.f32 %v480_v32, %v595_v62 }
 0x2cd   :  { %v613_v1 = vmul.f32 1.442695, %v605_v63  ;;  %8020 = vpow2.f32 %v623_v59 }
 0x2ce   :  { %v621_v2 = vmul.f32 1.442695, %v609_v0  ;;  %v7892_v0 = vunpack.i.h.bf16 %v8482_v52 }
 0x2cf   :  { %8022 = vpow2.f32 %v613_v1  ;;  %v592_v3 = vpop.xlane.xlu0 %591  ;;  %v7891_v1 = vunpack.i.l.bf16 %v8482_v52 }
 0x2d0   :  { %v608_v4 = vsub.f32 %v7110_v42, %v592_v3  ;;  %8024 = vpow2.f32 %v621_v2 }
 0x2d2   :  { %v619_v6 = vmul.f32 1.442695, %v608_v4 }
 0x2d3   :  { %v589_v32 = vpop.xlane.xlu0 %588 }
 0x2d4   :  { %8026 = vpow2.f32 %v619_v6  ;;  %v607_v34 = vsub.f32 %v389_v43, %v589_v32  ;;  %v7910_v43 = vpop.permute.xlu1 %7909 }
 0x2d5   :  { %v7912_v52 = vunpack.i.h.bf16 %v7910_v43 }
 0x2d6   :  { %v8486_v7 = vpop.eup %8018  ;;  %v617_v40 = vmul.f32 1.442695, %v607_v34 }
 0x2d7   :  { %v632_v13 = vsel %vm580_vm3, %v8486_v7, 0.0  ;;  %v8490_v14 = vpop.eup %8020  ;;  %v604_v33 = vpop.xlane.xlu0 %603 }
 0x2d8   :  { %633 = vadd.xlane.f32.xlu0 %v632_v13  ;;  %v644_v26 = vsel %vm580_vm3, %v8490_v14, 0.0  ;;  %v612_v39 = vsub.f32 %v7124_v48, %v604_v33  ;;  %8028 = vpow2.f32 %v617_v40  ;;  %v7389_v13 = vpack.c.bf16 %v7892_v0, %v7891_v1 }
 0x2d9   :  { %v8023_v15 = vpop.eup %8022  ;;  %v7907_v40 = vunpack.i.h.bf16 %v8484_v54 }
 0x2da   :  { %v629_v21 = vsel %vm580_vm3, %v8023_v15, 0.0  ;;  %v8493_v25 = vpop.eup %8024  ;;  %v627_v41 = vmul.f32 1.442695, %v612_v39 }
 0x2db   :  { %630 = vadd.xlane.f32.xlu1 %v629_v21  ;;  %v641_v30 = vsel %vm580_vm3, %v8493_v25, 0.0 }
 0x2dc   :  { %645 = vadd.xlane.f32.xlu0 %v644_v26  ;;  %8030 = vpow2.f32 %v627_v41  ;;  %v7906_v41 = vunpack.i.l.bf16 %v8484_v54 }
 0x2de   :  { %v8497_v27 = vpop.eup %8026 }
 0x2df   :  { %v638_v31 = vsel %vm580_vm3, %v8497_v27, 0.0  ;;  %642 = vadd.xlane.f32.xlu1 %v641_v30 }
 0x2e0   :  { %639 = vadd.xlane.f32.xlu0 %v638_v31 }
 0x2e2   :  { %v8507_v42 = vpop.eup %8028 }
 0x2e3   :  { %v635_v47 = vsel %vm580_vm3, %v8507_v42, 0.0 }
 0x2e6   :  { %v8509_v44 = vpop.eup %8030 }
 0x2e7   :  { %v650_v50 = vsel %vm580_vm3, %v8509_v44, 0.0 }
 0x2f0   :  { %1108 = vrot.lane.b32.xlu1 %v8434_v11, %s8205_s26 }
 0x2f6   :  { %1019 = vrot.lane.b32.xlu0 %v8430_v9, %s8205_s26 }
 0x300   :  { %v601_v48 = vpop.xlane.xlu1 %600 }
 0x301   :  { %v611_v51 = vsub.f32 %v8473_v49, %v601_v48  ;;  %v1018_v49 = vpop.permute.xlu0 %1017 }
 0x303   :  { %v625_v55 = vmul.f32 1.442695, %v611_v51 }
 0x305   :  { %8032 = vpow2.f32 %v625_v55 }
 0x30f   :  { %v8527_v56 = vpop.eup %8032 }
 0x310   :  { %v647_v57 = vsel %vm580_vm3, %v8527_v56, 0.0 }
 0x314   :  { %636 = vadd.xlane.f32.xlu1 %v635_v47 }
 0x315   :  { %651 = vadd.xlane.f32.xlu0 %v650_v50 }
 0x325   :  { %1110 = vrot.lane.b32.xlu1 %v8448_v20, %s8205_s26 }
 0x32b   :  { %7914 = vrot.lane.b32.xlu0 %v8396_v45, %s8204_s25 }
 0x32f   :  { %1199 = vrot.lane.b32.xlu0 %v8375_v36, %s8205_s26 }
 0x333   :  { %1290 = vrot.lane.b32.xlu0 %v8451_v24, %s8205_s26 }
 0x337   :  { %7924 = vrot.lane.b32.xlu0 %v8373_v35, %s8206_s2 }
 0x33b   :  { %7939 = vrot.lane.b32.xlu0 %v8378_v37, %s8207_s27 }
 0x349   :  { %648 = vadd.xlane.f32.xlu1 %v647_v57 }
 0x35a   :  { %1201 = vrot.lane.b32.xlu1 %v8427_v5, %s8205_s26 }
 0x35e   :  { %1292 = vrot.lane.b32.xlu1 %v8460_v28, %s8205_s26 }
 0x362   :  { %7919 = vrot.lane.b32.xlu1 %v8378_v37, %s8206_s2 }
 0x365   :  { %v634_v58 = vpop.xlane.xlu0 %633 }
 0x366   :  { %7929 = vrot.lane.b32.xlu1 %v8399_v46, %s8206_s2  ;;  %8034 = vrcp.f32 %v634_v58 }
 0x368   :  { %v631_v59 = vpop.xlane.xlu1 %630 }
 0x369   :  { %v646_v60 = vpop.xlane.xlu0 %645  ;;  %8036 = vrcp.f32 %v631_v59 }
 0x36a   :  { %7934 = vrot.lane.b32.xlu1 %v8396_v45, %s8206_s2  ;;  %8038 = vrcp.f32 %v646_v60 }
 0x36c   :  { %v643_v61 = vpop.xlane.xlu1 %642 }
 0x36d   :  { %8040 = vrcp.f32 %v643_v61  ;;  %v640_v30 = vpop.xlane.xlu0 %639 }
 0x36e   :  { %7944 = vrot.lane.b32.xlu1 %v8399_v46, %s8207_s27  ;;  %8042 = vrcp.f32 %v640_v30 }
 0x370   :  { %v8035_v62 = vpop.eup %8034 }
 0x371   :  { %v662_v3 = vmul.f32 %v8035_v62, %v8486_v7  ;;  %v7911_v7 = vunpack.i.l.bf16 %v7910_v43  ;;  %v7395_v43 = vpack.c.bf16 %v7907_v40, %v7906_v41 }
 0x373   :  { %v8037_v63 = vpop.eup %8036 }
 0x374   :  { %v661_v2 = vmul.f32 %v8037_v63, %v8023_v15  ;;  %v8039_v4 = vpop.eup %8038  ;;  %v7401_v15 = vpack.c.bf16 %v7912_v52, %v7911_v7 }
 0x375   :  { %v666_v26 = vmul.f32 %v8039_v4, %v8490_v14  ;;  %v1109_v14 = vpop.permute.xlu1 %1108 }
 0x376   :  { %7129 = vmatprep.mubr.msk.f32.mxu0 %vm580_vm3, %v661_v2 }
 0x377   :  { %v8041_v6 = vpop.eup %8040  ;;  %7130 = vmatmul.mubr.msk.f32.vlgmr.msra.gmra.mrb[6].mxu0 %vm580_vm3, %v662_v3 }
 0x378   :  { %7384 = vmatpush3.bf16.msra.mxu0 %v8438_v12  ;;  %v665_v21 = vmul.f32 %v8041_v6, %v8493_v25  ;;  %v1020_v12 = vpop.permute.xlu0 %1019  ;;  %v8043_v34 = vpop.eup %8042 }
 0x379   :  { %7391 = vmatprep.subr.msk.bf16.mxu0 %vm8413_vm2, %v7389_v13  ;;  %v664_v50 = vmul.f32 %v8043_v34, %v8497_v27 }
 0x37a   :  { %7143 = vmatprep.mubr.msk.f32.mxu0 %vm580_vm3, %v665_v21 }
 0x37b   :  { %7144 = vmatmul.mubr.msk.f32.vlgmr.msra.gmra.mrb[8].mxu0 %vm580_vm3, %v666_v26 }
 0x37c   :  { %7157 = vmatprep.mubr.msk.f32.mxu0 %vm221_vm1, %v1018_v49 }
 0x381   :  { %7394 = vmatpush3.bf16.xpose.msk.msra.mxu0 %vm8413_vm2, %v7389_v13 }
 0x382   :  { %7403 = vmatprep.subr.msk.bf16.mxu0 %vm8413_vm2, %v7401_v15 }
 0x388   :  { %7158 = vmatmul.mubr.msk.f32.vlgmr.msra.gmra.mrb[10].mxu0 %vm221_vm1, %v1020_v12 }
 0x389   :  { %7406 = vmatpush3.bf16.xpose.msk.msra.mxu0 %vm8413_vm2, %v7401_v15 }
 0x3a1   :  { %v637_v25 = vpop.xlane.xlu1 %636 }
 0x3a2   :  { %v652_v31 = vpop.xlane.xlu0 %651  ;;  %8044 = vrcp.f32 %v637_v25 }
 0x3a3   :  { %8046 = vrcp.f32 %v652_v31 }
 0x3a5   :  { %v1111_v48 = vpop.permute.xlu1 %1110 }
 0x3a6   :  { %v7915_v32 = vpop.permute.xlu0 %7914 }
 0x3a7   :  { %v7917_v58 = vunpack.i.h.bf16 %v7915_v32  ;;  %v7916_v59 = vunpack.i.l.bf16 %v7915_v32 }
 0x3a9   :  { %v7407_v2 = vpack.c.bf16 %v7917_v58, %v7916_v59 }
 0x3aa   :  { %v1200_v33 = vpop.permute.xlu0 %1199 }
 0x3ab   :  { %7171 = vmatprep.mubr.msk.f32.mxu0 %vm221_vm1, %v1200_v33 }
 0x3ac   :  { %v8045_v39 = vpop.eup %8044 }
 0x3ad   :  { %v663_v47 = vmul.f32 %v8045_v39, %v8507_v42  ;;  %v8047_v27 = vpop.eup %8046 }
 0x3ae   :  { %v1291_v55 = vpop.permute.xlu0 %1290  ;;  %v668_v61 = vmul.f32 %v8047_v27, %v8509_v44 }
 0x3af   :  { %7136 = vmatprep.mubr.msk.f32.mxu1 %vm580_vm3, %v663_v47 }
 0x3b0   :  { %7137 = vmatmul.mubr.msk.f32.vlgmr.msra.gmra.mrb[10].mxu1 %vm580_vm3, %v664_v50 }
 0x3b1   :  { %7388 = vmatpush3.bf16.msra.mxu1 %v8462_v29 }
 0x3b2   :  { %7397 = vmatprep.subr.msk.bf16.mxu1 %vm8413_vm2, %v7395_v43  ;;  %v7925_v57 = vpop.permute.xlu0 %7924 }
 0x3b3   :  { %v7927_v62 = vunpack.i.h.bf16 %v7925_v57  ;;  %v7926_v63 = vunpack.i.l.bf16 %v7925_v57 }
 0x3b5   :  { %v8580_v44 = vpack.c.bf16 %v7927_v62, %v7926_v63 }
 0x3d6   :  { %v649_v51 = vpop.xlane.xlu1 %648 }
 0x3d7   :  { %8048 = vrcp.f32 %v649_v51 }
 0x3da   :  { %v1202_v54 = vpop.permute.xlu1 %1201 }
 0x3db   :  { %7172 = vmatmul.mubr.msk.f32.vlgmr.msra.gmra.mrb[12].mxu0 %vm221_vm1, %v1202_v54 }
 0x3de   :  { %v1293_v42 = vpop.permute.xlu1 %1292 }
 0x3e1   :  { %v8049_v49 = vpop.eup %8048 }
 0x3e2   :  { %v7920_v60 = vpop.permute.xlu1 %7919  ;;  %v667_v29 = vmul.f32 %v8049_v49, %v8527_v56 }
 0x3e3   :  { %v7922_v0 = vunpack.i.h.bf16 %v7920_v60  ;;  %v7921_v1 = vunpack.i.l.bf16 %v7920_v60  ;;  %v8624_v60 = vpop.permute.xlu0 %7939 }
 0x3e4   :  { %7150 = vmatprep.mubr.msk.f32.mxu1 %vm580_vm3, %v667_v29 }
 0x3e5   :  { %7151 = vmatmul.mubr.msk.f32.vlgmr.msra.gmra.mrb[12].mxu1 %vm580_vm3, %v668_v61  ;;  %v7413_v3 = vpack.c.bf16 %v7922_v0, %v7921_v1 }
 0x3e6   :  { %7400 = vmatpush3.bf16.xpose.msk.msra.mxu1 %vm8413_vm2, %v7395_v43  ;;  %7164 = vmatprep.mubr.msk.f32.mxu1 %vm221_vm1, %v1109_v14  ;;  %v7930_v4 = vpop.permute.xlu1 %7929 }
 0x3e7   :  { %7409 = vmatprep.subr.msk.bf16.mxu1 %vm8413_vm2, %v7407_v2  ;;  %7414 = vmatprep.subr.bf16.mxu0 %v7413_v3  ;;  %v7932_v56 = vunpack.i.h.bf16 %v7930_v4  ;;  %v7931_v6 = vunpack.i.l.bf16 %v7930_v4 }
 0x3e8   :  { %7416 = vmatpush3.bf16.msra.mxu0 %v7413_v3 }
 0x3e9   :  { %7422 = vmatprep.subr.bf16.mxu0 %v8580_v44  ;;  %v7417_v13 = vpack.c.bf16 %v7932_v56, %v7931_v6 }
 0x3ea   :  { %v7935_v21 = vpop.permute.xlu1 %7934 }
 0x3eb   :  { %v7937_v26 = vunpack.i.h.bf16 %v7935_v21  ;;  %v7936_v52 = vunpack.i.l.bf16 %v7935_v21 }
 0x3ed   :  { %7165 = vmatmul.mubr.msk.f32.vlgmr.msra.gmra.mrb[14].mxu1 %vm221_vm1, %v1111_v48  ;;  %v8588_v7 = vpack.c.bf16 %v7937_v26, %v7936_v52 }
 0x3ee   :  { %7412 = vmatpush3.bf16.xpose.msk.msra.mxu1 %vm8413_vm2, %v7407_v2  ;;  %7178 = vmatprep.mubr.msk.f32.mxu1 %vm221_vm1, %v1291_v55  ;;  %v8622_v59 = vpop.permute.xlu1 %7944 }
 0x3ef   :  { %7418 = vmatprep.subr.bf16.mxu1 %v7417_v13 }
 0x3f5   :  { %7179 = vmatmul.mubr.msk.f32.vlgmr.msra.gmra.mrb[16].mxu1 %vm221_vm1, %v1293_v42 }
 0x3f6   :  { %7420 = vmatpush3.bf16.msra.mxu1 %v7417_v13 }
 0x3f7   :  { %7426 = vmatprep.subr.bf16.mxu1 %v8588_v7 }
 0x44a   :  { %v8591_v15 = vpop.f32.mrb[6].mxu0 }
 0x44b   :  { %v8593_v30 = vpop.f32.mrb[7].mxu0 }
 0x44e   :  { %v8595_v12 = vpop.f32.mrb[8].mxu0 }
 0x44f   :  { %v8597_v14 = vpop.f32.mrb[9].mxu0 }
 0x45b   :  { %v7159_v25 = vpop.f32.mrb[10].mxu0 }
 0x45c   :  { %v1099_v31 = vpop.f32.mrb[11].mxu0  ;;  %v1384_v32 = vsel %vm580_vm3, %v7159_v25, -inf }
 0x45d   :  { %1385 = vmax.xlane.f32.xlu1 %v1384_v32  ;;  %v1381_v33 = vsel %vm580_vm3, %v1099_v31, -inf }
 0x45e   :  { %1382 = vmax.xlane.f32.xlu0 %v1381_v33 }
 0x483   :  { %v8601_v34 = vpop.f32.mrb[10].mxu1 }
 0x484   :  { %v8603_v39 = vpop.f32.mrb[11].mxu1 }
 0x4ae   :  { %v7173_v40 = vpop.f32.mrb[12].mxu0 }
 0x4af   :  { %v1281_v41 = vpop.f32.mrb[13].mxu0  ;;  %v1396_v54 = vsel %vm580_vm3, %v7173_v40, -inf }
 0x4b0   :  { %v1393_v47 = vsel %vm580_vm3, %v1281_v41, -inf }
 0x4b1   :  { %1394 = vmax.xlane.f32.xlu1 %v1393_v47 }
 0x4b8   :  { %v8606_v50 = vpop.f32.mrb[12].mxu1 }
 0x4b9   :  { %v8608_v43 = vpop.f32.mrb[13].mxu1 }
 0x4c0   :  { %v7166_v48 = vpop.f32.mrb[14].mxu1 }
 0x4c1   :  { %v1190_v51 = vpop.f32.mrb[15].mxu1  ;;  %v1390_v55 = vsel %vm580_vm3, %v7166_v48, -inf }
 0x4c2   :  { %1391 = vmax.xlane.f32.xlu0 %v1390_v55  ;;  %7949 = vrot.lane.b32.xlu1 %v8373_v35, %s8207_s27  ;;  %v1387_v57 = vsel %vm580_vm3, %v1190_v51, -inf }
 0x4c6   :  { %1397 = vmax.xlane.f32.xlu0 %v1396_v54 }
 0x4c8   :  { %v7180_v42 = vpop.f32.mrb[16].mxu1 }
 0x4c9   :  { %v8614_v27 = vpop.f32.mrb[17].mxu1  ;;  %v1402_v49 = vsel %vm580_vm3, %v7180_v42, -inf }
 0x4ca   :  { %1388 = vmax.xlane.f32.xlu0 %v1387_v57  ;;  %v1399_v58 = vsel %vm580_vm3, %v8614_v27, -inf }
 0x4ce   :  { %1403 = vmax.xlane.f32.xlu0 %v1402_v49 }
 0x4e4   :  { %1817 = vrot.lane.b32.xlu0 %v8380_v38, %s8208_s28 }
 0x4e6   :  { %1400 = vmax.xlane.f32.xlu1 %v1399_v58 }
 0x4ea   :  { %v1386_v29 = vpop.xlane.xlu1 %1385 }
 0x4eb   :  { %v1383_v61 = vpop.xlane.xlu0 %1382  ;;  %v1406_v63 = vsub.f32 %v7159_v25, %v1386_v29 }
 0x4ec   :  { %v1405_v62 = vsub.f32 %v1099_v31, %v1383_v61 }
 0x4ed   :  { %v1415_v1 = vmul.f32 1.442695, %v1406_v63 }
 0x4ee   :  { %v1413_v0 = vmul.f32 1.442695, %v1405_v62 }
 0x4f0   :  { %8050 = vpow2.f32 %v1413_v0 }
 0x4f1   :  { %8052 = vpow2.f32 %v1415_v1 }
 0x4fa   :  { %v8051_v2 = vpop.eup %8050 }
 0x4fb   :  { %v1429_v3 = vsel %vm580_vm3, %v8051_v2, 0.0  ;;  %v8053_v4 = vpop.eup %8052 }
 0x4fc   :  { %1430 = vadd.xlane.f32.xlu1 %v1429_v3  ;;  %v1432_v56 = vsel %vm580_vm3, %v8053_v4, 0.0 }
 0x503   :  { %1433 = vadd.xlane.f32.xlu0 %v1432_v56 }
 0x50d   :  { %1908 = vrot.lane.b32.xlu1 %v8434_v11, %s8208_s28 }
 0x53e   :  { %v1395_v26 = vpop.xlane.xlu1 %1394 }
 0x53f   :  { %v1409_v31 = vsub.f32 %v1281_v41, %v1395_v26 }
 0x541   :  { %v1421_v55 = vmul.f32 1.442695, %v1409_v31  ;;  %v7942_v31 = vunpack.i.h.bf16 %v8624_v60 }
 0x542   :  { %v8647_v62 = vpop.permute.xlu1 %7949 }
 0x54f   :  { %v1392_v6 = vpop.xlane.xlu0 %1391 }
 0x550   :  { %v1408_v13 = vsub.f32 %v7166_v48, %v1392_v6 }
 0x552   :  { %v1419_v21 = vmul.f32 1.442695, %v1408_v13 }
 0x553   :  { %v1398_v52 = vpop.xlane.xlu0 %1397 }
 0x554   :  { %8054 = vpow2.f32 %v1419_v21  ;;  %v1410_v25 = vsub.f32 %v7173_v40, %v1398_v52 }
 0x556   :  { %v1423_v32 = vmul.f32 1.442695, %v1410_v25 }
 0x557   :  { %v1389_v33 = vpop.xlane.xlu0 %1388 }
 0x558   :  { %8056 = vpow2.f32 %v1423_v32  ;;  %v1407_v47 = vsub.f32 %v1190_v51, %v1389_v33  ;;  %v7941_v32 = vunpack.i.l.bf16 %v8624_v60 }
 0x55a   :  { %v1417_v54 = vmul.f32 1.442695, %v1407_v47 }
 0x55b   :  { %v1404_v61 = vpop.xlane.xlu0 %1403 }
 0x55c   :  { %8058 = vpow2.f32 %v1417_v54  ;;  %v1412_v63 = vsub.f32 %v7180_v42, %v1404_v61  ;;  %v7946_v61 = vunpack.i.l.bf16 %v8622_v59 }
 0x55d   :  { %8060 = vpow2.f32 %v1421_v55  ;;  %v7429_v55 = vpack.c.bf16 %v7942_v31, %v7941_v32 }
 0x55e   :  { %v8630_v57 = vpop.eup %8054  ;;  %v1427_v1 = vmul.f32 1.442695, %v1412_v63 }
 0x55f   :  { %v1438_v49 = vsel %vm580_vm3, %v8630_v57, 0.0  ;;  %v1818_v6 = vpop.permute.xlu0 %1817 }
 0x560   :  { %1439 = vadd.xlane.f32.xlu0 %v1438_v49 }
 0x562   :  { %v8634_v48 = vpop.eup %8056 }
 0x563   :  { %v1444_v40 = vsel %vm580_vm3, %v8634_v48, 0.0 }
 0x564   :  { %1445 = vadd.xlane.f32.xlu0 %v1444_v40 }
 0x566   :  { %v8059_v41 = vpop.eup %8058 }
 0x567   :  { %v1435_v58 = vsel %vm580_vm3, %v8059_v41, 0.0  ;;  %v8639_v51 = vpop.eup %8060 }
 0x568   :  { %1436 = vadd.xlane.f32.xlu1 %v1435_v58  ;;  %v1441_v29 = vsel %vm580_vm3, %v8639_v51, 0.0 }
 0x56c   :  { %1442 = vadd.xlane.f32.xlu1 %v1441_v29  ;;  %v7947_v29 = vunpack.i.h.bf16 %v8622_v59 }
 0x573   :  { %v1401_v0 = vpop.xlane.xlu1 %1400 }
 0x574   :  { %v1411_v56 = vsub.f32 %v8614_v27, %v1401_v0 }
 0x576   :  { %v1425_v13 = vmul.f32 1.442695, %v1411_v56  ;;  %v7435_v56 = vpack.c.bf16 %v7947_v29, %v7946_v61 }
 0x57a   :  { %1819 = vrot.lane.b32.xlu0 %v8430_v9, %s8208_s28 }
 0x57d   :  { %1910 = vrot.lane.b32.xlu1 %v8448_v20, %s8208_s28 }
 0x589   :  { %v1431_v3 = vpop.xlane.xlu1 %1430 }
 0x58a   :  { %8062 = vrcp.f32 %v1431_v3 }
 0x58b   :  { %8064 = vpow2.f32 %v1427_v1 }
 0x58d   :  { %v8679_v60 = vpop.permute.xlu1 %1908 }
 0x590   :  { %v1434_v21 = vpop.xlane.xlu0 %1433 }
 0x591   :  { %8066 = vrcp.f32 %v1434_v21  ;;  %v7951_v21 = vunpack.i.l.bf16 %v8647_v62 }
 0x592   :  { %8068 = vpow2.f32 %v1425_v13  ;;  %v7952_v13 = vunpack.i.h.bf16 %v8647_v62 }
 0x594   :  { %v8063_v26 = vpop.eup %8062 }
 0x595   :  { %v8650_v52 = vpop.eup %8064  ;;  %v1461_v25 = vmul.f32 %v8063_v26, %v8051_v2 }
 0x596   :  { %v1450_v42 = vsel %vm580_vm3, %v8650_v52, 0.0 }
 0x597   :  { %7185 = vmatprep.mubr.msk.f32.mxu0 %vm580_vm3, %v1461_v25 }
 0x599   :  { %1451 = vadd.xlane.f32.xlu0 %v1450_v42 }
 0x59b   :  { %v8067_v27 = vpop.eup %8066 }
 0x59c   :  { %v1462_v33 = vmul.f32 %v8067_v27, %v8053_v4  ;;  %v8657_v47 = vpop.eup %8068 }
 0x59d   :  { %v1447_v2 = vsel %vm580_vm3, %v8657_v47, 0.0 }
 0x59e   :  { %7186 = vmatmul.mubr.msk.f32.vlgmr.msra.gmra.mrb[14].mxu0 %vm580_vm3, %v1462_v33 }
 0x59f   :  { %7424 = vmatpush3.bf16.msra.mxu0 %v8580_v44 }
 0x5a0   :  { %7431 = vmatprep.subr.msk.bf16.mxu0 %vm8413_vm2, %v7429_v55 }
 0x5a1   :  { %1448 = vadd.xlane.f32.xlu1 %v1447_v2 }
 0x5af   :  { %7954 = vrot.lane.b32.xlu0 %v8396_v45, %s8207_s27 }
 0x5b2   :  { %2001 = vrot.lane.b32.xlu1 %v8427_v5, %s8208_s28 }
 0x5b3   :  { %1999 = vrot.lane.b32.xlu0 %v8375_v36, %s8208_s28 }
 0x5b6   :  { %2092 = vrot.lane.b32.xlu1 %v8460_v28, %s8208_s28 }
 0x5b7   :  { %2090 = vrot.lane.b32.xlu0 %v8451_v24, %s8208_s28 }
 0x5ba   :  { %7959 = vrot.lane.b32.xlu1 %v8378_v37, %s8209_s29 }
 0x5bb   :  { %7964 = vrot.lane.b32.xlu0 %v8373_v35, %s8209_s29 }
 0x5be   :  { %7969 = vrot.lane.b32.xlu1 %v8399_v46, %s8209_s29 }
 0x5c2   :  { %7974 = vrot.lane.b32.xlu1 %v8396_v45, %s8209_s29 }
 0x5ed   :  { %v1440_v44 = vpop.xlane.xlu0 %1439 }
 0x5ee   :  { %8070 = vrcp.f32 %v1440_v44 }
 0x5f1   :  { %v1446_v54 = vpop.xlane.xlu0 %1445 }
 0x5f5   :  { %v1437_v4 = vpop.xlane.xlu1 %1436 }
 0x5f6   :  { %8072 = vrcp.f32 %v1437_v4 }
 0x5f7   :  { %8074 = vrcp.f32 %v1446_v54 }
 0x5f8   :  { %v8071_v40 = vpop.eup %8070 }
 0x5f9   :  { %v1443_v49 = vpop.xlane.xlu1 %1442  ;;  %v1464_v0 = vmul.f32 %v8071_v40, %v8630_v57  ;;  %v7441_v57 = vpack.c.bf16 %v7952_v13, %v7951_v21 }
 0x5fa   :  { %8076 = vrcp.f32 %v1443_v49 }
 0x600   :  { %v8073_v58 = vpop.eup %8072 }
 0x601   :  { %v1463_v63 = vmul.f32 %v8073_v58, %v8059_v41  ;;  %v8075_v1 = vpop.eup %8074  ;;  %v1911_v41 = vpop.permute.xlu1 %1910 }
 0x602   :  { %v1466_v59 = vmul.f32 %v8075_v1, %v8634_v48 }
 0x603   :  { %7192 = vmatprep.mubr.msk.f32.mxu1 %vm580_vm3, %v1463_v63 }
 0x604   :  { %v8077_v3 = vpop.eup %8076  ;;  %7193 = vmatmul.mubr.msk.f32.vlgmr.msra.gmra.mrb[18].mxu1 %vm580_vm3, %v1464_v0 }
 0x605   :  { %7428 = vmatpush3.bf16.msra.mxu1 %v8588_v7  ;;  %v1465_v26 = vmul.f32 %v8077_v3, %v8639_v51  ;;  %v1820_v7 = vpop.permute.xlu0 %1819 }
 0x606   :  { %7437 = vmatprep.subr.msk.bf16.mxu1 %vm8413_vm2, %v7435_v56 }
 0x607   :  { %7199 = vmatprep.mubr.msk.f32.mxu0 %vm580_vm3, %v1465_v26 }
 0x608   :  { %7200 = vmatmul.mubr.msk.f32.vlgmr.msra.gmra.mrb[16].mxu0 %vm580_vm3, %v1466_v59 }
 0x609   :  { %7434 = vmatpush3.bf16.xpose.msk.msra.mxu0 %vm8413_vm2, %v7429_v55  ;;  %7213 = vmatprep.mubr.msk.f32.mxu0 %vm221_vm1, %v1818_v6 }
 0x60a   :  { %7443 = vmatprep.subr.msk.bf16.mxu0 %vm8413_vm2, %v7441_v57 }
 0x610   :  { %7214 = vmatmul.mubr.msk.f32.vlgmr.msra.gmra.mrb[18].mxu0 %vm221_vm1, %v1820_v7 }
 0x611   :  { %7446 = vmatpush3.bf16.xpose.msk.msra.mxu0 %vm8413_vm2, %v7441_v57 }
 0x626   :  { %v1452_v48 = vpop.xlane.xlu0 %1451 }
 0x627   :  { %8078 = vrcp.f32 %v1452_v48 }
 0x62a   :  { %v7955_v51 = vpop.permute.xlu0 %7954 }
 0x62b   :  { %v7957_v55 = vunpack.i.h.bf16 %v7955_v51  ;;  %v7956_v2 = vunpack.i.l.bf16 %v7955_v51 }
 0x62d   :  { %v7447_v61 = vpack.c.bf16 %v7957_v55, %v7956_v2 }
 0x62e   :  { %v2000_v62 = vpop.permute.xlu0 %1999  ;;  %v1449_v25 = vpop.xlane.xlu1 %1448 }
 0x62f   :  { %8080 = vrcp.f32 %v1449_v25  ;;  %7227 = vmatprep.mubr.msk.f32.mxu0 %vm221_vm1, %v2000_v62 }
 0x631   :  { %v8079_v32 = vpop.eup %8078 }
 0x632   :  { %v2091_v42 = vpop.permute.xlu0 %2090  ;;  %v2002_v6 = vpop.permute.xlu1 %2001  ;;  %v1468_v54 = vmul.f32 %v8079_v32, %v8650_v52 }
 0x633   :  { %7228 = vmatmul.mubr.msk.f32.vlgmr.msra.gmra.mrb[20].mxu0 %vm221_vm1, %v2002_v6 }
 0x636   :  { %v2093_v31 = vpop.permute.xlu1 %2092  ;;  %v7965_v27 = vpop.permute.xlu0 %7964 }
 0x637   :  { %v7967_v49 = vunpack.i.h.bf16 %v7965_v27  ;;  %v7966_v40 = vunpack.i.l.bf16 %v7965_v27 }
 0x639   :  { %v8081_v33 = vpop.eup %8080  ;;  %v8715_v52 = vpack.c.bf16 %v7967_v49, %v7966_v40 }
 0x63a   :  { %v7960_v44 = vpop.permute.xlu1 %7959  ;;  %v1467_v4 = vmul.f32 %v8081_v33, %v8657_v47 }
 0x63b   :  { %v7962_v58 = vunpack.i.h.bf16 %v7960_v44  ;;  %v7961_v29 = vunpack.i.l.bf16 %v7960_v44 }
 0x63c   :  { %7206 = vmatprep.mubr.msk.f32.mxu1 %vm580_vm3, %v1467_v4 }
 0x63d   :  { %7207 = vmatmul.mubr.msk.f32.vlgmr.msra.gmra.mrb[20].mxu1 %vm580_vm3, %v1468_v54  ;;  %v7453_v63 = vpack.c.bf16 %v7962_v58, %v7961_v29 }
 0x63e   :  { %7440 = vmatpush3.bf16.xpose.msk.msra.mxu1 %vm8413_vm2, %v7435_v56  ;;  %v7970_v0 = vpop.permute.xlu1 %7969  ;;  %7220 = vmatprep.mubr.msk.f32.mxu1 %vm221_vm1, %v8679_v60 }
 0x63f   :  { %7449 = vmatprep.subr.msk.bf16.mxu1 %vm8413_vm2, %v7447_v61  ;;  %7454 = vmatprep.subr.bf16.mxu0 %v7453_v63  ;;  %v7972_v47 = vunpack.i.h.bf16 %v7970_v0  ;;  %v7971_v1 = vunpack.i.l.bf16 %v7970_v0 }
 0x640   :  { %7456 = vmatpush3.bf16.msra.mxu0 %v7453_v63 }
 0x641   :  { %7462 = vmatprep.subr.bf16.mxu0 %v8715_v52  ;;  %v7457_v3 = vpack.c.bf16 %v7972_v47, %v7971_v1 }
 0x642   :  { %v7975_v13 = vpop.permute.xlu1 %7974 }
 0x643   :  { %v7977_v60 = vunpack.i.h.bf16 %v7975_v13  ;;  %v7976_v56 = vunpack.i.l.bf16 %v7975_v13 }
 0x645   :  { %7221 = vmatmul.mubr.msk.f32.vlgmr.msra.gmra.mrb[22].mxu1 %vm221_vm1, %v1911_v41  ;;  %v8723_v21 = vpack.c.bf16 %v7977_v60, %v7976_v56 }
 0x646   :  { %7452 = vmatpush3.bf16.xpose.msk.msra.mxu1 %vm8413_vm2, %v7447_v61  ;;  %7234 = vmatprep.mubr.msk.f32.mxu1 %vm221_vm1, %v2091_v42 }
 0x647   :  { %7458 = vmatprep.subr.bf16.mxu1 %v7457_v3 }
 0x64d   :  { %7235 = vmatmul.mubr.msk.f32.vlgmr.msra.gmra.mrb[24].mxu1 %vm221_vm1, %v2093_v31 }
 0x64e   :  { %7460 = vmatpush3.bf16.msra.mxu1 %v7457_v3 }
 0x64f   :  { %7466 = vmatprep.subr.bf16.mxu1 %v8723_v21 }
 0x671   :  { %v8726_v26 = vpop.f32.mrb[14].mxu0 }
 0x672   :  { %v8728_v59 = vpop.f32.mrb[15].mxu0 }
 0x6d7   :  { %v8730_v57 = vpop.f32.mrb[18].mxu1 }
 0x6d8   :  { %v8732_v7 = vpop.f32.mrb[19].mxu1 }
 0x6db   :  { %v8734_v48 = vpop.f32.mrb[16].mxu0 }
 0x6dc   :  { %v8736_v41 = vpop.f32.mrb[17].mxu0 }
 0x6e3   :  { %v7215_v51 = vpop.f32.mrb[18].mxu0 }
 0x6e4   :  { %v1899_v62 = vpop.f32.mrb[19].mxu0  ;;  %v2184_v25 = vsel %vm580_vm3, %v7215_v51, -inf }
 0x6e5   :  { %2185 = vmax.xlane.f32.xlu1 %v2184_v25  ;;  %v2181_v42 = vsel %vm580_vm3, %v1899_v62, -inf }
 0x6e6   :  { %2182 = vmax.xlane.f32.xlu0 %v2181_v42 }
 0x706   :  { %v7229_v6 = vpop.f32.mrb[20].mxu0 }
 0x707   :  { %v2081_v31 = vpop.f32.mrb[21].mxu0  ;;  %v2196_v4 = vsel %vm580_vm3, %v7229_v6, -inf }
 0x708   :  { %v2193_v32 = vsel %vm580_vm3, %v2081_v31, -inf }
 0x709   :  { %2194 = vmax.xlane.f32.xlu1 %v2193_v32 }
 0x710   :  { %v8741_v27 = vpop.f32.mrb[20].mxu1 }
 0x711   :  { %v8743_v33 = vpop.f32.mrb[21].mxu1 }
 0x718   :  { %v7222_v55 = vpop.f32.mrb[22].mxu1 }
 0x719   :  { %v1990_v2 = vpop.f32.mrb[23].mxu1  ;;  %v2190_v44 = vsel %vm580_vm3, %v7222_v55, -inf }
 0x71a   :  { %2191 = vmax.xlane.f32.xlu0 %v2190_v44  ;;  %v2187_v40 = vsel %vm580_vm3, %v1990_v2, -inf }
 0x71e   :  { %2197 = vmax.xlane.f32.xlu0 %v2196_v4 }
 0x720   :  { %v7236_v54 = vpop.f32.mrb[24].mxu1 }
 0x721   :  { %v2172_v49 = vpop.f32.mrb[25].mxu1  ;;  %v2202_v29 = vsel %vm580_vm3, %v7236_v54, -inf }
 0x722   :  { %2188 = vmax.xlane.f32.xlu0 %v2187_v40  ;;  %v2199_v58 = vsel %vm580_vm3, %v2172_v49, -inf }
 0x723   :  { %2200 = vmax.xlane.f32.xlu1 %v2199_v58 }
 0x726   :  { %2203 = vmax.xlane.f32.xlu0 %v2202_v29 }
 0x734   :  { %7984 = vrot.lane.b32.xlu1 %v8399_v46, %s8210_s30 }
 0x73c   :  { %7979 = vrot.lane.b32.xlu0 %v8378_v37, %s8210_s30 }
 0x772   :  { %v2186_v61 = vpop.xlane.xlu1 %2185 }
 0x773   :  { %v2206_v63 = vsub.f32 %v7215_v51, %v2186_v61  ;;  %v2183_v0 = vpop.xlane.xlu0 %2182 }
 0x774   :  { %v2205_v47 = vsub.f32 %v1899_v62, %v2183_v0 }
 0x775   :  { %v2215_v1 = vmul.f32 1.442695, %v2206_v63 }
 0x776   :  { %v2213_v3 = vmul.f32 1.442695, %v2205_v47 }
 0x777   :  { %8082 = vpow2.f32 %v2215_v1 }
 0x778   :  { %8084 = vpow2.f32 %v2213_v3 }
 0x781   :  { %v8754_v13 = vpop.eup %8082 }
 0x782   :  { %v8756_v60 = vpop.eup %8084  ;;  %v2232_v56 = vsel %vm580_vm3, %v8754_v13, 0.0 }
 0x783   :  { %2233 = vadd.xlane.f32.xlu0 %v2232_v56  ;;  %v2229_v25 = vsel %vm580_vm3, %v8756_v60, 0.0 }
 0x784   :  { %2230 = vadd.xlane.f32.xlu1 %v2229_v25 }
 0x796   :  { %v2195_v62 = vpop.xlane.xlu1 %2194 }
 0x797   :  { %v2209_v40 = vsub.f32 %v2081_v31, %v2195_v62 }
 0x799   :  { %v2221_v63 = vmul.f32 1.442695, %v2209_v40 }
 0x7a7   :  { %v2192_v42 = vpop.xlane.xlu0 %2191 }
 0x7a8   :  { %v2208_v51 = vsub.f32 %v7222_v55, %v2192_v42 }
 0x7aa   :  { %v2219_v32 = vmul.f32 1.442695, %v2208_v51 }
 0x7ab   :  { %v2198_v44 = vpop.xlane.xlu0 %2197 }
 0x7ac   :  { %8086 = vpow2.f32 %v2219_v32  ;;  %v2210_v4 = vsub.f32 %v7229_v6, %v2198_v44 }
 0x7ae   :  { %v2223_v58 = vmul.f32 1.442695, %v2210_v4 }
 0x7af   :  { %v2189_v29 = vpop.xlane.xlu0 %2188 }
 0x7b0   :  { %8088 = vpow2.f32 %v2223_v58  ;;  %v2207_v61 = vsub.f32 %v1990_v2, %v2189_v29  ;;  %v2201_v32 = vpop.xlane.xlu1 %2200 }
 0x7b1   :  { %v2211_v62 = vsub.f32 %v2172_v49, %v2201_v32 }
 0x7b2   :  { %v2217_v0 = vmul.f32 1.442695, %v2207_v61 }
 0x7b3   :  { %v2204_v25 = vpop.xlane.xlu0 %2203  ;;  %v2225_v44 = vmul.f32 1.442695, %v2211_v62 }
 0x7b4   :  { %8090 = vpow2.f32 %v2217_v0  ;;  %v2212_v42 = vsub.f32 %v7236_v54, %v2204_v25  ;;  %v7985_v54 = vpop.permute.xlu1 %7984 }
 0x7b5   :  { %8092 = vpow2.f32 %v2221_v63 }
 0x7b6   :  { %v8762_v47 = vpop.eup %8086  ;;  %v2227_v51 = vmul.f32 1.442695, %v2212_v42 }
 0x7b7   :  { %v2238_v1 = vsel %vm580_vm3, %v8762_v47, 0.0 }
 0x7b8   :  { %2239 = vadd.xlane.f32.xlu0 %v2238_v1  ;;  %8094 = vpow2.f32 %v2227_v51 }
 0x7b9   :  { %8096 = vpow2.f32 %v2225_v44 }
 0x7ba   :  { %v8766_v55 = vpop.eup %8088 }
 0x7bb   :  { %v2244_v6 = vsel %vm580_vm3, %v8766_v55, 0.0 }
 0x7bc   :  { %2245 = vadd.xlane.f32.xlu0 %v2244_v6 }
 0x7be   :  { %v8091_v31 = vpop.eup %8090 }
 0x7bf   :  { %v2235_v3 = vsel %vm580_vm3, %v8091_v31, 0.0  ;;  %v8771_v2 = vpop.eup %8092 }
 0x7c0   :  { %2236 = vadd.xlane.f32.xlu1 %v2235_v3  ;;  %v2241_v56 = vsel %vm580_vm3, %v8771_v2, 0.0  ;;  %v7987_v3 = vunpack.i.h.bf16 %v7985_v54 }
 0x7c2   :  { %v8777_v4 = vpop.eup %8094 }
 0x7c3   :  { %v2250_v40 = vsel %vm580_vm3, %v8777_v4, 0.0  ;;  %v8781_v58 = vpop.eup %8096 }
 0x7c4   :  { %2242 = vadd.xlane.f32.xlu1 %v2241_v56  ;;  %v7986_v56 = vunpack.i.l.bf16 %v7985_v54 }
 0x7c6   :  { %v7475_v32 = vpack.c.bf16 %v7987_v3, %v7986_v56 }
 0x7d2   :  { %2617 = vrot.lane.b32.xlu0 %v8380_v38, %s8211_s15  ;;  %v2247_v38 = vsel %vm580_vm3, %v8781_v58, 0.0 }
 0x7d5   :  { %2619 = vrot.lane.b32.xlu1 %v8430_v9, %s8211_s15  ;;  %v7980_v9 = vpop.permute.xlu0 %7979 }
 0x7d6   :  { %v7981_v63 = vunpack.i.l.bf16 %v7980_v9 }
 0x7f1   :  { %2251 = vadd.xlane.f32.xlu0 %v2250_v40 }
 0x7f9   :  { %2248 = vadd.xlane.f32.xlu1 %v2247_v38 }
 0x807   :  { %7989 = vrot.lane.b32.xlu0 %v8373_v35, %s8210_s30 }
 0x80a   :  { %2708 = vrot.lane.b32.xlu1 %v8434_v11, %s8211_s15 }
 0x80b   :  { %2710 = vrot.lane.b32.xlu0 %v8448_v20, %s8211_s15  ;;  %v7982_v20 = vunpack.i.h.bf16 %v7980_v9 }
 0x80e   :  { %7994 = vrot.lane.b32.xlu1 %v8396_v45, %s8210_s30 }
 0x80f   :  { %2799 = vrot.lane.b32.xlu0 %v8375_v36, %s8211_s15  ;;  %v7469_v36 = vpack.c.bf16 %v7982_v20, %v7981_v63 }
 0x810   :  { %v2234_v49 = vpop.xlane.xlu0 %2233 }
 0x811   :  { %8098 = vrcp.f32 %v2234_v49  ;;  %v2231_v29 = vpop.xlane.xlu1 %2230 }
 0x812   :  { %8100 = vrcp.f32 %v2231_v29  ;;  %2801 = vrot.lane.b32.xlu1 %v8427_v5, %s8211_s15 }
 0x813   :  { %2890 = vrot.lane.b32.xlu0 %v8451_v24, %s8211_s15 }
 0x816   :  { %2892 = vrot.lane.b32.xlu1 %v8460_v28, %s8211_s15 }
 0x81b   :  { %v8099_v11 = vpop.eup %8098 }
 0x81c   :  { %v8101_v61 = vpop.eup %8100  ;;  %v2262_v1 = vmul.f32 %v8099_v11, %v8754_v13 }
 0x81d   :  { %v2261_v0 = vmul.f32 %v8101_v61, %v8756_v60 }
 0x81f   :  { %7241 = vmatprep.mubr.msk.f32.mxu0 %vm580_vm3, %v2261_v0 }
 0x820   :  { %7242 = vmatmul.mubr.msk.f32.vlgmr.msra.gmra.mrb[22].mxu0 %vm580_vm3, %v2262_v1 }
 0x821   :  { %7464 = vmatpush3.bf16.msra.mxu0 %v8715_v52 }
 0x822   :  { %7471 = vmatprep.subr.msk.bf16.mxu0 %vm8413_vm2, %v7469_v36 }
 0x845   :  { %v2240_v5 = vpop.xlane.xlu0 %2239 }
 0x846   :  { %8102 = vrcp.f32 %v2240_v5 }
 0x849   :  { %v2246_v28 = vpop.xlane.xlu0 %2245 }
 0x84d   :  { %v2237_v24 = vpop.xlane.xlu1 %2236 }
 0x84e   :  { %8104 = vrcp.f32 %v2237_v24 }
 0x84f   :  { %8106 = vrcp.f32 %v2246_v28 }
 0x850   :  { %v8103_v60 = vpop.eup %8102 }
 0x851   :  { %v2243_v6 = vpop.xlane.xlu1 %2242  ;;  %v2264_v42 = vmul.f32 %v8103_v60, %v8762_v47 }
 0x852   :  { %8108 = vrcp.f32 %v2243_v6 }
 0x855   :  { %v2620_v47 = vpop.permute.xlu1 %2619 }
 0x858   :  { %v8105_v13 = vpop.eup %8104 }
 0x859   :  { %v2263_v25 = vmul.f32 %v8105_v13, %v8091_v31  ;;  %v8107_v51 = vpop.eup %8106  ;;  %v2618_v31 = vpop.permute.xlu0 %2617 }
 0x85a   :  { %v2266_v44 = vmul.f32 %v8107_v51, %v8766_v55 }
 0x85b   :  { %7248 = vmatprep.mubr.msk.f32.mxu1 %vm580_vm3, %v2263_v25 }
 0x85c   :  { %v8109_v52 = vpop.eup %8108  ;;  %7249 = vmatmul.mubr.msk.f32.vlgmr.msra.gmra.mrb[26].mxu1 %vm580_vm3, %v2264_v42 }
 0x85d   :  { %7468 = vmatpush3.bf16.msra.mxu1 %v8723_v21  ;;  %v2265_v62 = vmul.f32 %v8109_v52, %v8771_v2 }
 0x85e   :  { %7477 = vmatprep.subr.msk.bf16.mxu1 %vm8413_vm2, %v7475_v32 }
 0x85f   :  { %7255 = vmatprep.mubr.msk.f32.mxu0 %vm580_vm3, %v2265_v62 }
 0x860   :  { %7256 = vmatmul.mubr.msk.f32.vlgmr.msra.gmra.mrb[24].mxu0 %vm580_vm3, %v2266_v44 }
 0x861   :  { %7474 = vmatpush3.bf16.xpose.msk.msra.mxu0 %vm8413_vm2, %v7469_v36  ;;  %7269 = vmatprep.mubr.msk.f32.mxu0 %vm221_vm1, %v2618_v31 }
 0x868   :  { %7270 = vmatmul.mubr.msk.f32.vlgmr.msra.gmra.mrb[26].mxu0 %vm221_vm1, %v2620_v47 }
 0x87e   :  { %v2252_v21 = vpop.xlane.xlu0 %2251 }
 0x87f   :  { %8110 = vrcp.f32 %v2252_v21 }
 0x882   :  { %v7990_v2 = vpop.permute.xlu0 %7989 }
 0x883   :  { %v7992_v40 = vunpack.i.h.bf16 %v7990_v2  ;;  %v7991_v55 = vunpack.i.l.bf16 %v7990_v2 }
 0x885   :  { %v7481_v38 = vpack.c.bf16 %v7992_v40, %v7991_v55 }
 0x886   :  { %v2711_v9 = vpop.permute.xlu0 %2710  ;;  %v2249_v54 = vpop.xlane.xlu1 %2248 }
 0x887   :  { %8112 = vrcp.f32 %v2249_v54  ;;  %7483 = vmatprep.subr.msk.bf16.mxu0 %vm8413_vm2, %v7481_v38 }
 0x888   :  { %7486 = vmatpush3.bf16.xpose.msk.msra.mxu0 %vm8413_vm2, %v7481_v38 }
 0x889   :  { %v8111_v61 = vpop.eup %8110 }
 0x88a   :  { %v2800_v49 = vpop.permute.xlu0 %2799  ;;  %v2709_v29 = vpop.permute.xlu1 %2708  ;;  %v2268_v5 = vmul.f32 %v8111_v61, %v8777_v4 }
 0x88b   :  { %7283 = vmatprep.mubr.msk.f32.mxu0 %vm221_vm1, %v2800_v49 }
 0x88e   :  { %v7995_v11 = vpop.permute.xlu1 %7994  ;;  %v2891_v28 = vpop.permute.xlu0 %2890 }
 0x88f   :  { %v7997_v63 = vunpack.i.h.bf16 %v7995_v11  ;;  %v7996_v0 = vunpack.i.l.bf16 %v7995_v11 }
 0x891   :  { %v8113_v20 = vpop.eup %8112  ;;  %v7487_v24 = vpack.c.bf16 %v7997_v63, %v7996_v0 }
 0x892   :  { %v2802_v1 = vpop.permute.xlu1 %2801  ;;  %v2267_v36 = vmul.f32 %v8113_v20, %v8781_v58 }
 0x893   :  { %7284 = vmatmul.mubr.msk.f32.vlgmr.msra.gmra.mrb[28].mxu0 %vm221_vm1, %v2802_v1 }
 0x894   :  { %7262 = vmatprep.mubr.msk.f32.mxu1 %vm580_vm3, %v2267_v36 }
 0x895   :  { %7263 = vmatmul.mubr.msk.f32.vlgmr.msra.gmra.mrb[28].mxu1 %vm580_vm3, %v2268_v5 }
 0x896   :  { %7480 = vmatpush3.bf16.xpose.msk.msra.mxu1 %vm8413_vm2, %v7475_v32  ;;  %7276 = vmatprep.mubr.msk.f32.mxu1 %vm221_vm1, %v2709_v29  ;;  %v2893_v4 = vpop.permute.xlu1 %2892 }
 0x897   :  { %7489 = vmatprep.subr.msk.bf16.mxu1 %vm8413_vm2, %v7487_v24 }
 0x89d   :  { %7277 = vmatmul.mubr.msk.f32.vlgmr.msra.gmra.mrb[30].mxu1 %vm221_vm1, %v2711_v9 }
 0x89e   :  { %7492 = vmatpush3.bf16.xpose.msk.msra.mxu1 %vm8413_vm2, %v7487_v24  ;;  %7290 = vmatprep.mubr.msk.f32.mxu1 %vm221_vm1, %v2891_v28 }
 0x8a5   :  { %7291 = vmatmul.mubr.msk.f32.vlgmr.msra.gmra.mrb[32].mxu1 %vm221_vm1, %v2893_v4 }
 0x8f3   :  { %v8836_v58 = vpop.f32.mrb[22].mxu0 }
 0x8f4   :  { %v8838_v6 = vpop.f32.mrb[23].mxu0 }
 0x92f   :  { %v8840_v60 = vpop.f32.mrb[26].mxu1 }
 0x930   :  { %v8842_v13 = vpop.f32.mrb[27].mxu1 }
 0x933   :  { %v8844_v3 = vpop.f32.mrb[24].mxu0 }
 0x934   :  { %v8846_v56 = vpop.f32.mrb[25].mxu0 }
 0x93b   :  { %v7271_v25 = vpop.f32.mrb[26].mxu0 }
 0x93c   :  { %v2699_v53 = vpop.f32.mrb[27].mxu0  ;;  %v2984_v42 = vsel %vm580_vm3, %v7271_v25, -inf }
 0x93d   :  { %2985 = vmax.xlane.f32.xlu1 %v2984_v42  ;;  %v2981_v51 = vsel %vm580_vm3, %v2699_v53, -inf }
 0x93e   :  { %2982 = vmax.xlane.f32.xlu0 %v2981_v51 }
 0x966   :  { %v7285_v52 = vpop.f32.mrb[28].mxu0 }
 0x967   :  { %v2881_v32 = vpop.f32.mrb[29].mxu0  ;;  %v2996_v9 = vsel %vm580_vm3, %v7285_v52, -inf }
 0x968   :  { %v8850_v62 = vpop.f32.mrb[28].mxu1  ;;  %v2993_v44 = vsel %vm580_vm3, %v2881_v32, -inf }
 0x969   :  { %v8853_v31 = vpop.f32.mrb[29].mxu1  ;;  %2994 = vmax.xlane.f32.xlu1 %v2993_v44 }
 0x970   :  { %v7278_v47 = vpop.f32.mrb[30].mxu1 }
 0x971   :  { %v2790_v21 = vpop.f32.mrb[31].mxu1  ;;  %v2990_v40 = vsel %vm580_vm3, %v7278_v47, -inf }
 0x972   :  { %v2987_v2 = vsel %vm580_vm3, %v2790_v21, -inf }
 0x973   :  { %2988 = vmax.xlane.f32.xlu0 %v2987_v2 }
 0x977   :  { %2991 = vmax.xlane.f32.xlu0 %v2990_v40 }
 0x978   :  { %v7292_v55 = vpop.f32.mrb[32].mxu1 }
 0x979   :  { %v2972_v38 = vpop.f32.mrb[33].mxu1  ;;  %v3002_v49 = vsel %vm580_vm3, %v7292_v55, -inf }
 0x97a   :  { %v2999_v54 = vsel %vm580_vm3, %v2972_v38, -inf }
 0x97b   :  { %2997 = vmax.xlane.f32.xlu0 %v2996_v9  ;;  %3000 = vmax.xlane.f32.xlu1 %v2999_v54 }
 0x97f   :  { %3003 = vmax.xlane.f32.xlu0 %v3002_v49 }
 0x98c   :  { %7999 = vrot.lane.b32.xlu1 %v8378_v37, %s8212_s16 }
 0x9ca   :  { %v2986_v29 = vpop.xlane.xlu1 %2985 }
 0x9cb   :  { %v3006_v11 = vsub.f32 %v7271_v25, %v2986_v29  ;;  %v2983_v61 = vpop.xlane.xlu0 %2982 }
 0x9cc   :  { %v3005_v20 = vsub.f32 %v2699_v53, %v2983_v61 }
 0x9cd   :  { %v3015_v63 = vmul.f32 1.442695, %v3006_v11 }
 0x9ce   :  { %v3013_v0 = vmul.f32 1.442695, %v3005_v20 }
 0x9cf   :  { %8114 = vpow2.f32 %v3015_v63 }
 0x9d0   :  { %8116 = vpow2.f32 %v3013_v0 }
 0x9d9   :  { %v8862_v1 = vpop.eup %8114 }
 0x9da   :  { %v8864_v36 = vpop.eup %8116  ;;  %v3032_v5 = vsel %vm580_vm3, %v8862_v1, 0.0 }
 0x9db   :  { %3033 = vadd.xlane.f32.xlu0 %v3032_v5  ;;  %v3029_v24 = vsel %vm580_vm3, %v8864_v36, 0.0 }
 0x9dc   :  { %3030 = vadd.xlane.f32.xlu1 %v3029_v24 }
 0x9f6   :  { %v2995_v37 = vpop.xlane.xlu1 %2994 }
 0x9f7   :  { %v3009_v28 = vsub.f32 %v2881_v32, %v2995_v37 }
 0x9f9   :  { %v3021_v53 = vmul.f32 1.442695, %v3009_v28 }
 0xa00   :  { %v2989_v4 = vpop.xlane.xlu0 %2988 }
 0xa01   :  { %v3007_v25 = vsub.f32 %v2790_v21, %v2989_v4 }
 0xa03   :  { %v3017_v42 = vmul.f32 1.442695, %v3007_v25 }
 0xa04   :  { %v2992_v51 = vpop.xlane.xlu0 %2991 }
 0xa05   :  { %8118 = vpow2.f32 %v3017_v42  ;;  %v3008_v44 = vsub.f32 %v7278_v47, %v2992_v51 }
 0xa06   :  { %8120 = vpow2.f32 %v3021_v53 }
 0xa07   :  { %v3019_v2 = vmul.f32 1.442695, %v3008_v44 }
 0xa08   :  { %v2998_v40 = vpop.xlane.xlu0 %2997  ;;  %v3001_v9 = vpop.xlane.xlu1 %3000 }
 0xa09   :  { %8122 = vpow2.f32 %v3019_v2  ;;  %v3010_v54 = vsub.f32 %v7285_v52, %v2998_v40  ;;  %v3011_v29 = vsub.f32 %v2972_v38, %v3001_v9 }
 0xa0b   :  { %v3023_v49 = vmul.f32 1.442695, %v3010_v54  ;;  %v3025_v0 = vmul.f32 1.442695, %v3011_v29 }
 0xa0c   :  { %v3004_v11 = vpop.xlane.xlu0 %3003  ;;  %v8000_v61 = vpop.permute.xlu1 %7999 }
 0xa0d   :  { %8124 = vpow2.f32 %v3023_v49  ;;  %v3012_v20 = vsub.f32 %v7292_v55, %v3004_v11  ;;  %v8002_v32 = vunpack.i.h.bf16 %v8000_v61  ;;  %v8001_v63 = vunpack.i.l.bf16 %v8000_v61 }
 0xa0f   :  { %v8870_v21 = vpop.eup %8118  ;;  %v3027_v5 = vmul.f32 1.442695, %v3012_v20  ;;  %v7493_v24 = vpack.c.bf16 %v8002_v32, %v8001_v63 }
 0xa10   :  { %v3035_v47 = vsel %vm580_vm3, %v8870_v21, 0.0  ;;  %v8874_v37 = vpop.eup %8120 }
 0xa11   :  { %8126 = vpow2.f32 %v3027_v5  ;;  %3036 = vadd.xlane.f32.xlu1 %v3035_v47  ;;  %7494 = vmatprep.subr.bf16.mxu0 %v7493_v24  ;;  %v3041_v38 = vsel %vm580_vm3, %v8874_v37, 0.0 }
 0xa12   :  { %7496 = vmatpush3.bf16.msra.mxu0 %v7493_v24  ;;  %8128 = vpow2.f32 %v3025_v0 }
 0xa13   :  { %v8876_v52 = vpop.eup %8122 }
 0xa14   :  { %v3038_v55 = vsel %vm580_vm3, %v8876_v52, 0.0 }
 0xa15   :  { %3039 = vadd.xlane.f32.xlu0 %v3038_v55  ;;  %3042 = vadd.xlane.f32.xlu1 %v3041_v38 }
 0xa17   :  { %v8125_v28 = vpop.eup %8124 }
 0xa18   :  { %v3044_v4 = vsel %vm580_vm3, %v8125_v28, 0.0 }
 0xa19   :  { %3045 = vadd.xlane.f32.xlu0 %v3044_v4 }
 0xa1b   :  { %v8883_v25 = vpop.eup %8126 }
 0xa1c   :  { %v3050_v53 = vsel %vm580_vm3, %v8883_v25, 0.0  ;;  %v8887_v42 = vpop.eup %8128 }
 0xa1d   :  { %3051 = vadd.xlane.f32.xlu0 %v3050_v53  ;;  %v3047_v51 = vsel %vm580_vm3, %v8887_v42, 0.0 }
 0xa21   :  { %3048 = vadd.xlane.f32.xlu0 %v3047_v51 }
 0xa26   :  { %8009 = vrot.lane.b32.xlu1 %v8373_v35, %s8212_s16 }
 0xa2a   :  { %8014 = vrot.lane.b32.xlu1 %v8396_v45, %s8212_s16 }
 0xa2e   :  { %3425 = vrot.lane.b32.xlu1 %v8728_v59, %s8213_s17 }
 0xa32   :  { %3427 = vrot.lane.b32.xlu1 %v8726_v26, %s8213_s17 }
 0xa36   :  { %3459 = vrot.lane.b32.xlu1 %v8836_v58, %s8214_s18 }
 0xa37   :  { %8004 = vrot.lane.b32.xlu0 %v8399_v46, %s8212_s16 }
 0xa3a   :  { %3431 = vrot.lane.b32.xlu1 %v8730_v57, %s8213_s17 }
 0xa3b   :  { %3457 = vrot.lane.b32.xlu0 %v8838_v6, %s8214_s18 }
 0xa3e   :  { %3463 = vrot.lane.b32.xlu1 %v8840_v60, %s8214_s18 }
 0xa3f   :  { %3429 = vrot.lane.b32.xlu0 %v8732_v7, %s8213_s17 }
 0xa42   :  { %3435 = vrot.lane.b32.xlu1 %v8734_v48, %s8213_s17 }
 0xa43   :  { %3461 = vrot.lane.b32.xlu0 %v8842_v13, %s8214_s18 }
 0xa47   :  { %3433 = vrot.lane.b32.xlu0 %v8736_v41, %s8213_s17 }
 0xa68   :  { %v3034_v35 = vpop.xlane.xlu0 %3033 }
 0xa69   :  { %8130 = vrcp.f32 %v3034_v35  ;;  %v3031_v45 = vpop.xlane.xlu1 %3030 }
 0xa6a   :  { %8132 = vrcp.f32 %v3031_v45 }
 0xa73   :  { %v8131_v46 = vpop.eup %8130 }
 0xa74   :  { %v8133_v26 = vpop.eup %8132  ;;  %v3062_v57 = vmul.f32 %v8131_v46, %v8862_v1 }
 0xa75   :  { %v3061_v59 = vmul.f32 %v8133_v26, %v8864_v36 }
 0xa77   :  { %7297 = vmatprep.mubr.msk.f32.mxu0 %vm580_vm3, %v3061_v59 }
 0xa78   :  { %7298 = vmatmul.mubr.msk.f32.vlgmr.msra.gmra.mrb[30].mxu0 %vm580_vm3, %v3062_v57 }
 0xa9e   :  { %v3037_v7 = vpop.xlane.xlu1 %3036 }
 0xa9f   :  { %8134 = vrcp.f32 %v3037_v7 }
 0xaa2   :  { %v3040_v48 = vpop.xlane.xlu0 %3039  ;;  %v3043_v58 = vpop.xlane.xlu1 %3042 }
 0xaa3   :  { %8136 = vrcp.f32 %v3043_v58  ;;  %v3541_v58 = vld [vmem:[%s10957_s4 + $0x18] sm:$0xff] }
 0xaa6   :  { %v3046_v41 = vpop.xlane.xlu0 %3045  ;;  %v8010_v6 = vpop.permute.xlu1 %8009 }
 0xaa7   :  { %8138 = vrcp.f32 %v3046_v41  ;;  %v8012_v60 = vunpack.i.h.bf16 %v8010_v6  ;;  %v8011_v13 = vunpack.i.l.bf16 %v8010_v6 }
 0xaa8   :  { %8140 = vrcp.f32 %v3040_v48 }
 0xaa9   :  { %v8135_v44 = vpop.eup %8134  ;;  %v7501_v2 = vpack.c.bf16 %v8012_v60, %v8011_v13 }
 0xaaa   :  { %v3052_v40 = vpop.xlane.xlu0 %3051  ;;  %v8015_v36 = vpop.permute.xlu1 %8014  ;;  %v3063_v1 = vmul.f32 %v8135_v44, %v8870_v21 }
 0xaab   :  { %7502 = vmatprep.subr.bf16.mxu0 %v7501_v2  ;;  %v8017_v63 = vunpack.i.h.bf16 %v8015_v36  ;;  %v8016_v21 = vunpack.i.l.bf16 %v8015_v36 }
 0xaac   :  { %7304 = vmatprep.mubr.msk.f32.mxu1 %vm580_vm3, %v3063_v1  ;;  %7504 = vmatpush3.bf16.msra.mxu0 %v7501_v2 }
 0xaad   :  { %v8137_v9 = vpop.eup %8136 }
 0xaae   :  { %v3049_v54 = vpop.xlane.xlu0 %3048  ;;  %v8923_v49 = vpop.permute.xlu1 %3425  ;;  %v3065_v29 = vmul.f32 %v8137_v9, %v8874_v37  ;;  %v7505_v37 = vpack.c.bf16 %v8017_v63, %v8016_v21 }
 0xaaf   :  { %8142 = vrcp.f32 %v3049_v54  ;;  %v3513_v9 = vsel %vm221_vm1, %v8593_v30, %v8923_v49 }
 0xab0   :  { %8144 = vrcp.f32 %v3052_v40  ;;  %7311 = vmatprep.mubr.msk.f32.mxu0 %vm580_vm3, %v3065_v29 }
 0xab1   :  { %v8139_v11 = vpop.eup %8138 }
 0xab2   :  { %v3066_v61 = vmul.f32 %v8139_v11, %v8125_v28  ;;  %v8005_v20 = vpop.permute.xlu0 %8004  ;;  %v8927_v32 = vpop.permute.xlu1 %3427 }
 0xab3   :  { %v8007_v0 = vunpack.i.h.bf16 %v8005_v20  ;;  %v8006_v5 = vunpack.i.l.bf16 %v8005_v20  ;;  %v8141_v47 = vpop.eup %8140 }
 0xab4   :  { %7312 = vmatmul.mubr.msk.f32.vlgmr.msra.gmra.mrb[32].mxu0 %vm580_vm3, %v3066_v61  ;;  %v3064_v28 = vmul.f32 %v8141_v47, %v8876_v52 }
 0xab5   :  { %v7497_v24 = vpack.c.bf16 %v8007_v0, %v8006_v5 }
 0xab6   :  { %v8930_v55 = vpop.permute.xlu0 %3457  ;;  %v8932_v38 = vpop.permute.xlu1 %3459 }
 0xab7   :  { %7498 = vmatprep.subr.bf16.mxu1 %v7497_v24 }
 0xab8   :  { %7500 = vmatpush3.bf16.msra.mxu1 %v7497_v24 }
 0xab9   :  { %v8143_v4 = vpop.eup %8142  ;;  %7506 = vmatprep.subr.bf16.mxu1 %v7505_v37 }
 0xaba   :  { %v8145_v53 = vpop.eup %8144  ;;  %v3430_v51 = vpop.permute.xlu0 %3429  ;;  %v3067_v45 = vmul.f32 %v8143_v4, %v8887_v42 }
 0xabb   :  { %v3432_v35 = vpop.permute.xlu1 %3431  ;;  %v3515_v46 = vsel %vm221_vm1, %v8603_v39, %v3430_v51  ;;  %7305 = vmatmul.mubr.msk.f32.vlgmr.msra.gmra.mrb[34].mxu1 %vm580_vm3, %v3064_v28  ;;  %v3068_v59 = vmul.f32 %v8145_v53, %v8883_v25  ;;  %v3538_v39 = vld [vmem:[%s10957_s4] sm:$0xff]  ;;  %v3540_v25 = vld [vmem:[%s10957_s4 + $0x10] sm:$0xff] }
 0xabc   :  { %v3516_v26 = vsel %vm221_vm1, %v8601_v34, %v3432_v35  ;;  %7508 = vmatpush3.bf16.msra.mxu1 %v7505_v37  ;;  %7318 = vmatprep.mubr.msk.f32.mxu1 %vm580_vm3, %v3067_v45  ;;  %v3539_v34 = vld [vmem:[%s10957_s4 + $0x8] sm:$0xff]  ;;  %v7513_v41 = vpack.c.bf16 %v3541_v58, %v3540_v25 }
 0xabd   :  { %v7509_v42 = vpack.c.bf16 %v3539_v34, %v3538_v39 }
 0xabe   :  { %v3462_v52 = vpop.permute.xlu0 %3461 }
 0xabf   :  { %v3464_v57 = vpop.permute.xlu1 %3463  ;;  %v3523_v7 = vsel %vm580_vm3, %v3515_v46, %v3462_v52  ;;  %7319 = vmatmul.mubr.msk.f32.vlgmr.msra.gmra.mrb[36].mxu1 %vm580_vm3, %v3068_v59  ;;  %7510 = vmatprep.subr.bf16.mxu0 %v7509_v42 }
 0xac0   :  { %v3524_v48 = vsel %vm580_vm3, %v3516_v26, %v3464_v57  ;;  %7512 = vmatpush3.bf16.msra.mxu0 %v7509_v42 }
 0xac1   :  { %7514 = vmatprep.subr.bf16.mxu0 %v7513_v41 }
 0xac4   :  { %7516 = vmatpush3.bf16.msra.mxu0 %v7513_v41 }
 0xb4b   :  { %v7299_v6 = vpop.f32.mrb[30].mxu0 }
 0xb4c   :  { %3491 = vrot.lane.b32.xlu1 %v7299_v6, %s8215_s24  ;;  %v3147_v60 = vpop.f32.mrb[31].mxu0 }
 0xb4d   :  { %3489 = vrot.lane.b32.xlu0 %v3147_v60, %s8215_s24 }
 0xb50   :  { %3467 = vrot.lane.b32.xlu1 %v8844_v3, %s8214_s18  ;;  %v3436_v3 = vpop.permute.xlu1 %3435 }
 0xb51   :  { %3465 = vrot.lane.b32.xlu0 %v8846_v56, %s8214_s18  ;;  %v3434_v56 = vpop.permute.xlu0 %3433  ;;  %v3518_v24 = vsel %vm221_vm1, %v8595_v12, %v3436_v3 }
 0xb52   :  { %v3517_v0 = vsel %vm221_vm1, %v8597_v14, %v3434_v56 }
 0xb87   :  { %v7313_v13 = vpop.f32.mrb[32].mxu0 }
 0xb88   :  { %v3321_v44 = vpop.f32.mrb[33].mxu0 }
 0xb8e   :  { %v7306_v2 = vpop.f32.mrb[34].mxu1 }
 0xb8f   :  { %v3234_v40 = vpop.f32.mrb[35].mxu1  ;;  %3495 = vrot.lane.b32.xlu1 %v7306_v2, %s8215_s24 }
 0xb90   :  { %3493 = vrot.lane.b32.xlu0 %v3234_v40, %s8215_s24 }
 0xb92   :  { %v7320_v36 = vpop.f32.mrb[36].mxu1 }
 0xb93   :  { %v3408_v1 = vpop.f32.mrb[37].mxu1  ;;  %3499 = vrot.lane.b32.xlu1 %v7313_v13, %s8215_s24 }
 0xb94   :  { %3437 = vrot.lane.b32.xlu0 %v8743_v33, %s8213_s17 }
 0xb97   :  { %3439 = vrot.lane.b32.xlu1 %v8741_v27, %s8213_s17  ;;  %v3514_v27 = vsel %vm221_vm1, %v8591_v15, %v8927_v32 }
 0xb98   :  { %3497 = vrot.lane.b32.xlu0 %v3321_v44, %s8215_s24 }
 0xb9b   :  { %3471 = vrot.lane.b32.xlu1 %v8850_v62, %s8214_s18  ;;  %v3521_v62 = vsel %vm580_vm3, %v3513_v9, %v8930_v55 }
 0xb9c   :  { %3469 = vrot.lane.b32.xlu0 %v8853_v31, %s8214_s18  ;;  %v3522_v31 = vsel %vm580_vm3, %v3514_v27, %v8932_v38 }
 0xb9f   :  { %3503 = vrot.lane.b32.xlu1 %v7320_v36, %s8215_s24 }
 0xba0   :  { %3501 = vrot.lane.b32.xlu0 %v3408_v1, %s8215_s24 }
 0xbbe   :  { %v3492_v33 = vpop.permute.xlu1 %3491 }
 0xbbf   :  { %v3490_v54 = vpop.permute.xlu0 %3489  ;;  %v3531_v11 = vsel %vm3529_vm4, %v3522_v31, %v3492_v33 }
 0xbc0   :  { %v3530_v29 = vsel %vm3529_vm4, %v3521_v62, %v3490_v54 }
 0xbc1   :  { %7329 = vmatprep.mubr.msk.f32.mxu0 %vm77_vm0, %v3530_v29 }
 0xbc2   :  { %7330 = vmatmul.mubr.msk.f32.vlgmr.msra.gmra.mrb[34].mxu0 %vm77_vm0, %v3531_v11  ;;  %v3468_v30 = vpop.permute.xlu1 %3467 }
 0xbc3   :  { %v3466_v49 = vpop.permute.xlu0 %3465  ;;  %v3526_v38 = vsel %vm580_vm3, %v3518_v24, %v3468_v30  ;;  %v3821_v24 = vld [vmem:[%s10961_s8] sm:$0xff] }
 0xbc4   :  { %v3525_v47 = vsel %vm580_vm3, %v3517_v0, %v3466_v49 }
 0xc01   :  { %v3496_v61 = vpop.permute.xlu1 %3495 }
 0xc02   :  { %v3494_v20 = vpop.permute.xlu0 %3493  ;;  %v3533_v32 = vsel %vm3529_vm4, %v3524_v48, %v3496_v61 }
 0xc03   :  { %v3532_v15 = vsel %vm3529_vm4, %v3523_v7, %v3494_v20 }
 0xc04   :  { %7332 = vmatprep.mubr.msk.f32.mxu0 %vm77_vm0, %v3532_v15 }
 0xc05   :  { %7333 = vmatmul.mubr.msk.f32.gmra.mrb[36].mxu0 %vm77_vm0, %v3533_v32  ;;  %v3500_v63 = vpop.permute.xlu1 %3499  ;;  %v3822_v32 = vld [vmem:[%s10961_s8 + $0x8] sm:$0xff] }
 0xc06   :  { %v3438_v21 = vpop.permute.xlu0 %3437  ;;  %v3535_v4 = vsel %vm3529_vm4, %v3526_v38, %v3500_v63  ;;  %v3838_v63 = vld [vmem:[%s10961_s8 + $0x88] sm:$0xff] }
 0xc07   :  { %v3519_v14 = vsel %vm221_vm1, %v8608_v43, %v3438_v21  ;;  %v6399_v43 = vld [vmem:[%s10958_s5] ss:$0 sm:$0xff]  ;;  %v3824_v21 = vld [vmem:[%s10961_s8 + $0x18] sm:$0xff]  ;;  %v7517_v0 = vpack.c.bf16 %v3838_v63, %v3822_v32 }
 0xc09   :  { %v3440_v5 = vpop.permute.xlu1 %3439  ;;  %7518 = vmatprep.subr.bf16.mxu1 %v7517_v0 }
 0xc0a   :  { %v3498_v55 = vpop.permute.xlu0 %3497  ;;  %v3520_v12 = vsel %vm221_vm1, %v8606_v50, %v3440_v5  ;;  %v3840_v5 = vld [vmem:[%s10961_s8 + $0x98] sm:$0xff] }
 0xc0b   :  { %v3534_v37 = vsel %vm3529_vm4, %v3525_v47, %v3498_v55  ;;  %v3837_v47 = vld [vmem:[%s10961_s8 + $0x80] sm:$0xff]  ;;  %v7525_v55 = vpack.c.bf16 %v3840_v5, %v3824_v21 }
 0xc0c   :  { %7335 = vmatprep.mubr.msk.f32.mxu0 %vm77_vm0, %v3534_v37  ;;  %v7519_v38 = vpack.c.bf16 %v3837_v47, %v3821_v24  ;;  %v3823_v37 = vld [vmem:[%s10961_s8 + $0x10] sm:$0xff] }
 0xc0d   :  { %v3472_v28 = vpop.permute.xlu1 %3471  ;;  %7336 = vmatmul.mubr.msk.f32.gmra.mrb[38].mxu0 %vm77_vm0, %v3535_v4  ;;  %v3839_v4 = vld [vmem:[%s10961_s8 + $0x90] sm:$0xff]  ;;  %7526 = vmatprep.subr.bf16.mxu0 %v7525_v55  ;;  %v9156_v55 = vld [vmem:[%s10959_s6] ss:$0 sm:$0xff] }
 0xc0e   :  { %v3470_v53 = vpop.permute.xlu0 %3469  ;;  %v3528_v46 = vsel %vm580_vm3, %v3520_v12, %v3472_v28  ;;  %v3854_v28 = vld [vmem:[%s10961_s8 + $0x108] sm:$0xff]  ;;  %v3872_v12 = vld [vmem:[%s10961_s8 + $0x198] sm:$0xff]  ;;  %7520 = vmatpush1.bf16.msra.mxu1 %v7519_v38  ;;  %v9161_v38 = vld [vmem:[%s10960_s7] ss:$0 sm:$0xff] }
 0xc0f   :  { %v3527_v35 = vsel %vm580_vm3, %v3519_v14, %v3470_v53  ;;  %v7527_v53 = vpack.c.bf16 %v3839_v4, %v3823_v37  ;;  %v3870_v14 = vld [vmem:[%s10961_s8 + $0x188] sm:$0xff] }
 0xc11   :  { %v3504_v51 = vpop.permute.xlu1 %3503  ;;  %7528 = vmatpush1.bf16.msra.mxu0 %v7527_v53  ;;  %v3841_v53 = vld [vmem:[%s10961_s8 + $0xa0] sm:$0xff] }
 0xc12   :  { %v3502_v45 = vpop.permute.xlu0 %3501  ;;  %v3537_v59 = vsel %vm3529_vm4, %v3528_v46, %v3504_v51  ;;  %v3856_v51 = vld [vmem:[%s10961_s8 + $0x118] sm:$0xff] }
 0xc13   :  { %v3536_v26 = vsel %vm3529_vm4, %v3527_v35, %v3502_v45  ;;  %v8216_v35 = vmov 0.0   ;;  %v7521_v45 = vpack.c.bf16 %v3870_v14, %v3854_v28  ;;  %v7529_v46 = vpack.c.bf16 %v3872_v12, %v3856_v51  ;;  %v3825_v28 = vld [vmem:[%s10961_s8 + $0x20] sm:$0xff]  ;;  %v3827_v14 = vld [vmem:[%s10961_s8 + $0x30] sm:$0xff]  ;;  %v3874_v12 = vld [vmem:[%s10961_s8 + $0x1a8] sm:$0xff] }
 0xc14   :  { %7338 = vmatprep.mubr.msk.f32.mxu0 %vm77_vm0, %v3536_v26  ;;  %4057 = vmatprep.mubr.f32.mxu1 %v8216_v35  ;;  %v3853_v26 = vld [vmem:[%s10961_s8 + $0x100] sm:$0xff]  ;;  %v3843_v51 = vld [vmem:[%s10961_s8 + $0xb0] sm:$0xff] }
 0xc15   :  { %7339 = vmatmul.mubr.msk.f32.gmra.mrb[40].mxu0 %vm77_vm0, %v3537_v59  ;;  %v3869_v59 = vld [vmem:[%s10961_s8 + $0x180] sm:$0xff]  ;;  %7522 = vmatprep.subr.bf16.mxu1 %v7521_v45  ;;  %v3860_v45 = vld [vmem:[%s10961_s8 + $0x138] sm:$0xff] }
 0xc16   :  { %4170 = vmatprep.mubr.f32.mxu0 %v8216_v35  ;;  %7530 = vmatprep.subr.bf16.mxu0 %v7529_v46  ;;  %v3876_v46 = vld [vmem:[%s10961_s8 + $0x1b8] sm:$0xff] }
 0xc95   :  { %v7331_v52 = vpop.f32.mrb[34].mxu0 }
 0xc96   :  { %v3645_v57 = vadd.f32 %v7331_v52, %v6399_v43  ;;  %v3639_v50 = vpop.f32.mrb[35].mxu0  ;;  %v7523_v52 = vpack.c.bf16 %v3869_v59, %v3853_v26 }
 0xc97   :  { %v3640_v7 = vadd.f32 %v6399_v43, %v3639_v50 }
 0xc98   :  { %v3679_v48 = vadd.f32 %v3645_v57, %v8338_v16  ;;  %v3871_v57 = vld [vmem:[%s10961_s8 + $0x190] sm:$0xff]  ;;  %7524 = vmatpush1.bf16.msra.mxu1 %v7523_v52  ;;  %v7543_v52 = vpack.c.bf16 %v3843_v51, %v3827_v14 }
 0xc99   :  { %v3678_v39 = vadd.f32 %v3640_v7, %v8312_v8 }
 0xc9a   :  { %v3691_v34 = vsel %vm77_vm0, %v3679_v48, 0.0 }
 0xc9b   :  { %3692 = vadd.xlane.f32.xlu1 %v3691_v34  ;;  %v3688_v25 = vsel %vm77_vm0, %v3678_v39, 0.0 }
 0xc9c   :  { %3689 = vadd.xlane.f32.xlu0 %v3688_v25 }
 0xcd8   :  { %v7334_v42 = vpop.f32.mrb[36].mxu0 }
 0xcd9   :  { %v3649_v58 = vpop.f32.mrb[37].mxu0  ;;  %v3655_v41 = vadd.f32 %v7334_v42, %v6399_v43 }
 0xcda   :  { %v3650_v6 = vadd.f32 %v6399_v43, %v3649_v58 }
 0xcdb   :  { %v9019_v13 = vadd.f32 %v3655_v41, %v8356_v22 }
 0xcdc   :  { %v9016_v60 = vadd.f32 %v3650_v6, %v8342_v18 }
 0xcdd   :  { %v3697_v36 = vsel %vm77_vm0, %v9019_v13, 0.0 }
 0xcde   :  { %v3694_v16 = vsel %vm77_vm0, %v9016_v60, 0.0 }
 0xcdf   :  { %3695 = vadd.xlane.f32.xlu0 %v3694_v16 }
 0xce0   :  { %v7337_v8 = vpop.f32.mrb[38].mxu0 }
 0xce1   :  { %v3665_v44 = vadd.f32 %v7337_v8, %v6399_v43  ;;  %v3659_v2 = vpop.f32.mrb[39].mxu0 }
 0xce2   :  { %v3660_v40 = vadd.f32 %v6399_v43, %v3659_v2 }
 0xce3   :  { %v9026_v1 = vadd.f32 %v3665_v44, %v8340_v17  ;;  %3698 = vadd.xlane.f32.xlu0 %v3697_v36 }
 0xce4   :  { %v9029_v18 = vadd.f32 %v3660_v40, %v8317_v10 }
 0xce5   :  { %v3703_v22 = vsel %vm77_vm0, %v9026_v1, 0.0 }
 0xce6   :  { %v3700_v3 = vsel %vm77_vm0, %v9029_v18, 0.0 }
 0xce7   :  { %3701 = vadd.xlane.f32.xlu1 %v3700_v3  ;;  %3704 = vadd.xlane.f32.xlu0 %v3703_v22 }
 0xce8   :  { %v7340_v56 = vpop.f32.mrb[40].mxu0 }
 0xce9   :  { %v3675_v9 = vadd.f32 %v7340_v56, %v6399_v43  ;;  %v3669_v33 = vpop.f32.mrb[41].mxu0 }
 0xcea   :  { %v3670_v27 = vadd.f32 %v6399_v43, %v3669_v33  ;;  %v3855_v43 = vld [vmem:[%s10961_s8 + $0x110] sm:$0xff] }
 0xceb   :  { %v9036_v62 = vadd.f32 %v3675_v9, %v8358_v23  ;;  %v7531_v50 = vpack.c.bf16 %v3871_v57, %v3855_v43  ;;  %v7535_v43 = vpack.c.bf16 %v3841_v53, %v3825_v28  ;;  %v3857_v57 = vld [vmem:[%s10961_s8 + $0x120] sm:$0xff] }
 0xcec   :  { %v9039_v17 = vadd.f32 %v3670_v27, %v8344_v19 }
 0xced   :  { %v3709_v10 = vsel %vm77_vm0, %v9036_v62, 0.0  ;;  %7532 = vmatpush1.bf16.msra.mxu0 %v7531_v50  ;;  %v3873_v50 = vld [vmem:[%s10961_s8 + $0x1a0] sm:$0xff] }
 0xcee   :  { %3710 = vadd.xlane.f32.xlu0 %v3709_v10  ;;  %v3706_v54 = vsel %vm77_vm0, %v9039_v17, 0.0 }
 0xcef   :  { %3707 = vadd.xlane.f32.xlu1 %v3706_v54 }
 0xd28   :  { %v3693_v31 = vpop.xlane.xlu1 %3692 }
 0xd29   :  { %v3714_v29 = vmul.f32 0.03125, %v3693_v31  ;;  %v3690_v11 = vpop.xlane.xlu0 %3689 }
 0xd2a   :  { %v3713_v30 = vmul.f32 0.03125, %v3690_v11 }
 0xd2b   :  { %v9045_v49 = vsub.f32 %v3679_v48, %v3714_v29 }
 0xd2c   :  { %v9047_v61 = vsub.f32 %v3678_v39, %v3713_v30 }
 0xd2d   :  { %v3730_v19 = vmul.f32 %v9045_v49, %v9045_v49 }
 0xd2e   :  { %v3729_v23 = vmul.f32 %v9047_v61, %v9047_v61 }
 0xd2f   :  { %v3740_v20 = vsel %vm77_vm0, %v3730_v19, 0.0  ;;  %v3828_v19 = vld [vmem:[%s10961_s8 + $0x38] sm:$0xff] }
 0xd30   :  { %3741 = vadd.xlane.f32.xlu0 %v3740_v20  ;;  %v3737_v15 = vsel %vm77_vm0, %v3729_v23, 0.0  ;;  %v3844_v23 = vld [vmem:[%s10961_s8 + $0xb8] sm:$0xff] }
 0xd31   :  { %3738 = vadd.xlane.f32.xlu1 %v3737_v15  ;;  %v7541_v20 = vpack.c.bf16 %v3844_v23, %v3828_v19 }
 0xd33   :  { %7542 = vmatprep.subr.bf16.mxu0 %v7541_v20 }
 0xd6c   :  { %v3696_v7 = vpop.xlane.xlu0 %3695 }
 0xd6d   :  { %v3715_v48 = vmul.f32 0.03125, %v3696_v7 }
 0xd6f   :  { %v9106_v39 = vsub.f32 %v9016_v60, %v3715_v48  ;;  %v7545_v48 = vpack.c.bf16 %v3876_v46, %v3860_v45 }
 0xd70   :  { %v3699_v34 = vpop.xlane.xlu0 %3698 }
 0xd71   :  { %v3716_v25 = vmul.f32 0.03125, %v3699_v34  ;;  %v3731_v42 = vmul.f32 %v9106_v39, %v9106_v39  ;;  %v3859_v34 = vld [vmem:[%s10961_s8 + $0x130] sm:$0xff] }
 0xd73   :  { %v9111_v58 = vsub.f32 %v9019_v13, %v3716_v25  ;;  %v3743_v41 = vsel %vm77_vm0, %v3731_v42, 0.0  ;;  %v3875_v25 = vld [vmem:[%s10961_s8 + $0x1b0] sm:$0xff]  ;;  %v3830_v42 = vld [vmem:[%s10961_s8 + $0x48] sm:$0xff] }
 0xd74   :  { %v3702_v6 = vpop.xlane.xlu1 %3701  ;;  %3744 = vadd.xlane.f32.xlu1 %v3743_v41  ;;  %v3705_v16 = vpop.xlane.xlu0 %3704  ;;  %v3846_v41 = vld [vmem:[%s10961_s8 + $0xc8] sm:$0xff] }
 0xd75   :  { %v3717_v8 = vmul.f32 0.03125, %v3702_v6  ;;  %v3718_v44 = vmul.f32 0.03125, %v3705_v16  ;;  %v3732_v2 = vmul.f32 %v9111_v58, %v9111_v58  ;;  %v3832_v6 = vld [vmem:[%s10961_s8 + $0x58] sm:$0xff] }
 0xd76   :  { %v3848_v16 = vld [vmem:[%s10961_s8 + $0xd8] sm:$0xff] }
 0xd77   :  { %v9117_v60 = vsub.f32 %v9029_v18, %v3717_v8  ;;  %v9120_v40 = vsub.f32 %v9026_v1, %v3718_v44  ;;  %v3746_v36 = vsel %vm77_vm0, %v3732_v2, 0.0  ;;  %v7539_v44 = vpack.c.bf16 %v3873_v50, %v3857_v57  ;;  %v3878_v57 = vld [vmem:[%s10961_s8 + $0x1c8] sm:$0xff]  ;;  %v3864_v50 = vld [vmem:[%s10961_s8 + $0x158] sm:$0xff] }
 0xd78   :  { %3747 = vadd.xlane.f32.xlu0 %v3746_v36  ;;  %v7547_v2 = vpack.c.bf16 %v3875_v25, %v3859_v34  ;;  %v7549_v36 = vpack.c.bf16 %v3846_v41, %v3830_v42  ;;  %v3861_v25 = vld [vmem:[%s10961_s8 + $0x140] sm:$0xff] }
 0xd79   :  { %v3733_v13 = vmul.f32 %v9117_v60, %v9117_v60  ;;  %v3734_v22 = vmul.f32 %v9120_v40, %v9120_v40  ;;  %v3877_v42 = vld [vmem:[%s10961_s8 + $0x1c0] sm:$0xff] }
 0xd7b   :  { %v3711_v3 = vpop.xlane.xlu0 %3710  ;;  %v3749_v56 = vsel %vm77_vm0, %v3733_v13, 0.0  ;;  %v3752_v9 = vsel %vm77_vm0, %v3734_v22, 0.0  ;;  %v7557_v13 = vpack.c.bf16 %v3848_v16, %v3832_v6  ;;  %v3863_v16 = vld [vmem:[%s10961_s8 + $0x150] sm:$0xff] }
 0xd7c   :  { %v3720_v33 = vmul.f32 0.03125, %v3711_v3  ;;  %v3708_v18 = vpop.xlane.xlu1 %3707  ;;  %3750 = vadd.xlane.f32.xlu1 %v3749_v56  ;;  %3753 = vadd.xlane.f32.xlu0 %v3752_v9 }
 0xd7d   :  { %v3719_v1 = vmul.f32 0.03125, %v3708_v18 }
 0xd7e   :  { %v9130_v27 = vsub.f32 %v9036_v62, %v3720_v33  ;;  %v3826_v62 = vld [vmem:[%s10961_s8 + $0x28] sm:$0xff] }
 0xd7f   :  { %v9133_v10 = vsub.f32 %v9039_v17, %v3719_v1  ;;  %v3842_v17 = vld [vmem:[%s10961_s8 + $0xa8] sm:$0xff] }
 0xd80   :  { %v3736_v54 = vmul.f32 %v9130_v27, %v9130_v27  ;;  %v7533_v30 = vpack.c.bf16 %v3842_v17, %v3826_v62 }
 0xd81   :  { %v3735_v31 = vmul.f32 %v9133_v10, %v9133_v10 }
 0xd82   :  { %v3758_v29 = vsel %vm77_vm0, %v3736_v54, 0.0  ;;  %7534 = vmatprep.subr.bf16.mxu1 %v7533_v30 }
 0xd83   :  { %3759 = vadd.xlane.f32.xlu0 %v3758_v29  ;;  %v3755_v11 = vsel %vm77_vm0, %v3735_v31, 0.0 }
 0xd84   :  { %3756 = vadd.xlane.f32.xlu1 %v3755_v11 }
 0xdbd   :  { %v3742_v15 = vpop.xlane.xlu0 %3741 }
 0xdbe   :  { %v3762_v32 = vmul.f32 0.03125, %v3742_v15  ;;  %v3739_v63 = vpop.xlane.xlu1 %3738 }
 0xdbf   :  { %v3761_v21 = vmul.f32 0.03125, %v3739_v63 }
 0xdc0   :  { %v3770_v0 = vadd.f32 1e-05, %v3762_v32 }
 0xdc1   :  { %v3769_v5 = vadd.f32 1e-05, %v3761_v21 }
 0xdc2   :  { %8146 = vrsqrt.f32 %v3770_v0 }
 0xdc3   :  { %8148 = vrsqrt.f32 %v3769_v5 }
 0xdcc   :  { %v8147_v24 = vpop.eup %8146 }
 0xdcd   :  { %v8149_v47 = vpop.eup %8148  ;;  %v3786_v37 = vmul.f32 %v8147_v24, %v9045_v49  ;;  %v3858_v49 = vld [vmem:[%s10961_s8 + $0x128] sm:$0xff] }
 0xdce   :  { %v3785_v4 = vmul.f32 %v8149_v47, %v9047_v61  ;;  %v7537_v7 = vpack.c.bf16 %v3874_v12, %v3858_v49 }
 0xdcf   :  { %v3800_v26 = vmul.f32 %v9156_v55, %v3786_v37 }
 0xdd0   :  { %v3799_v61 = vmul.f32 %v9156_v55, %v3785_v4 }
 0xdd1   :  { %v9225_v8 = vadd.f32 %v9161_v38, %v3800_v26 }
 0xdd2   :  { %v9192_v59 = vadd.f32 %v9161_v38, %v3799_v61 }
 0xdd4   :  { %6410 = vmatmul.mubr.msk.f32.vlgmr.msra.gmra.mrb[38].mxu1 %vm77_vm0, %v9192_v59  ;;  %6418 = vmatmul.mubr.msk.f32.vlgmr.msra.gmra.mrb[42].mxu0 %vm77_vm0, %v9192_v59 }
 0xdd5   :  { %4063 = vmatprep.mubr.f32.mxu1 %v8216_v35  ;;  %4176 = vmatprep.mubr.f32.mxu0 %v8216_v35 }
 0xdd6   :  { %7536 = vmatpush1.bf16.msra.mxu1 %v7535_v43  ;;  %7544 = vmatpush1.bf16.msra.mxu0 %v7543_v52  ;;  %v3831_v43 = vld [vmem:[%s10961_s8 + $0x50] sm:$0xff] }
 0xdd7   :  { %7538 = vmatprep.subr.bf16.mxu1 %v7537_v7  ;;  %7546 = vmatprep.subr.bf16.mxu0 %v7545_v48  ;;  %v3847_v52 = vld [vmem:[%s10961_s8 + $0xd0] sm:$0xff]  ;;  %v3880_v7 = vld [vmem:[%s10961_s8 + $0x1d8] sm:$0xff] }
 0xdd8   :  { %6411 = vmatmul.mubr.msk.f32.gmra.mrb[40].mxu1 %vm77_vm0, %v9225_v8  ;;  %6419 = vmatmul.mubr.msk.f32.gmra.mrb[44].mxu0 %vm77_vm0, %v9225_v8  ;;  %v7559_v34 = vpack.c.bf16 %v3847_v52, %v3831_v43  ;;  %v7561_v6 = vpack.c.bf16 %v3880_v7, %v3864_v50  ;;  %v5027_v52 = vld [vmem:[%s10963_s10 + $0x10] sm:$0xff] }
 0xdd9   :  { %4069 = vmatprep.mubr.f32.mxu1 %v8216_v35  ;;  %4182 = vmatprep.mubr.f32.mxu0 %v8216_v35  ;;  %v5059_v7 = vld [vmem:[%s10963_s10 + $0x110] sm:$0xff] }
 0xdda   :  { %7540 = vmatpush1.bf16.msra.mxu1 %v7539_v44  ;;  %7548 = vmatpush1.bf16.msra.mxu0 %v7547_v2  ;;  %v3879_v44 = vld [vmem:[%s10961_s8 + $0x1d0] sm:$0xff]  ;;  %v3834_v2 = vld [vmem:[%s10961_s8 + $0x68] sm:$0xff] }
 0xddb   :  { %7550 = vmatprep.subr.bf16.mxu1 %v7549_v36  ;;  %7558 = vmatprep.subr.bf16.mxu0 %v7557_v13  ;;  %v3850_v36 = vld [vmem:[%s10961_s8 + $0xe8] sm:$0xff]  ;;  %v3836_v13 = vld [vmem:[%s10961_s8 + $0x78] sm:$0xff] }
 0xe01   :  { %v3745_v22 = vpop.xlane.xlu1 %3744 }
 0xe02   :  { %v3763_v3 = vmul.f32 0.03125, %v3745_v22  ;;  %v3852_v22 = vld [vmem:[%s10961_s8 + $0xf8] sm:$0xff] }
 0xe04   :  { %v3771_v56 = vadd.f32 1e-05, %v3763_v3  ;;  %v7555_v3 = vpack.c.bf16 %v3877_v42, %v3861_v25  ;;  %v5046_v25 = vld [vmem:[%s10963_s10 + $0xa8] sm:$0xff]  ;;  %v5077_v42 = vld [vmem:[%s10963_s10 + $0x1a0] sm:$0xff] }
 0xe05   :  { %v3748_v9 = vpop.xlane.xlu0 %3747 }
 0xe06   :  { %8150 = vrsqrt.f32 %v3771_v56  ;;  %v3764_v33 = vmul.f32 0.03125, %v3748_v9  ;;  %v7563_v56 = vpack.c.bf16 %v3879_v44, %v3863_v16  ;;  %v7565_v9 = vpack.c.bf16 %v3850_v36, %v3834_v2  ;;  %v5029_v44 = vld [vmem:[%s10963_s10 + $0x20] sm:$0xff]  ;;  %v5030_v2 = vld [vmem:[%s10963_s10 + $0x28] sm:$0xff] }
 0xe08   :  { %v3772_v18 = vadd.f32 1e-05, %v3764_v33  ;;  %v7573_v33 = vpack.c.bf16 %v3852_v22, %v3836_v13  ;;  %v5061_v22 = vld [vmem:[%s10963_s10 + $0x120] sm:$0xff] }
 0xe09   :  { %v3751_v1 = vpop.xlane.xlu1 %3750  ;;  %v3754_v54 = vpop.xlane.xlu0 %3753 }
 0xe0a   :  { %8152 = vrsqrt.f32 %v3772_v18  ;;  %v3765_v31 = vmul.f32 0.03125, %v3751_v1  ;;  %v3766_v29 = vmul.f32 0.03125, %v3754_v54  ;;  %v3833_v18 = vld [vmem:[%s10961_s8 + $0x60] sm:$0xff]  ;;  %v3835_v54 = vld [vmem:[%s10961_s8 + $0x70] sm:$0xff] }
 0xe0b   :  { %v3849_v1 = vld [vmem:[%s10961_s8 + $0xe0] sm:$0xff] }
 0xe0c   :  { %v3773_v11 = vadd.f32 1e-05, %v3765_v31  ;;  %v3774_v62 = vadd.f32 1e-05, %v3766_v29  ;;  %v3851_v31 = vld [vmem:[%s10961_s8 + $0xf0] sm:$0xff]  ;;  %v3866_v29 = vld [vmem:[%s10961_s8 + $0x168] sm:$0xff] }
 0xe0e   :  { %8154 = vrsqrt.f32 %v3773_v11  ;;  %v3882_v11 = vld [vmem:[%s10961_s8 + $0x1e8] sm:$0xff] }
 0xe0f   :  { %8156 = vrsqrt.f32 %v3774_v62  ;;  %v3868_v62 = vld [vmem:[%s10961_s8 + $0x178] sm:$0xff] }
 0xe10   :  { %v8151_v17 = vpop.eup %8150  ;;  %v3760_v30 = vpop.xlane.xlu0 %3759 }
 0xe11   :  { %v3787_v19 = vmul.f32 %v8151_v17, %v9106_v39  ;;  %v3768_v23 = vmul.f32 0.03125, %v3760_v30  ;;  %v3757_v20 = vpop.xlane.xlu1 %3756  ;;  %v3884_v17 = vld [vmem:[%s10961_s8 + $0x1f8] sm:$0xff]  ;;  %v7567_v30 = vpack.c.bf16 %v3849_v1, %v3833_v18  ;;  %v7591_v1 = vpack.c.bf16 %v5030_v2, %v5029_v44  ;;  %v5087_v2 = vld [vmem:[%s10963_s10 + $0x1f0] sm:$0xff] }
 0xe12   :  { %v3767_v15 = vmul.f32 0.03125, %v3757_v20  ;;  %v3881_v20 = vld [vmem:[%s10961_s8 + $0x1e0] sm:$0xff]  ;;  %v5080_v18 = vld [vmem:[%s10963_s10 + $0x1b8] sm:$0xff] }
 0xe13   :  { %v3801_v32 = vmul.f32 %v9156_v55, %v3787_v19  ;;  %v3776_v63 = vadd.f32 1e-05, %v3768_v23  ;;  %v7575_v19 = vpack.c.bf16 %v3851_v31, %v3835_v54  ;;  %v3865_v23 = vld [vmem:[%s10961_s8 + $0x160] sm:$0xff]  ;;  %v5031_v31 = vld [vmem:[%s10963_s10 + $0x30] sm:$0xff]  ;;  %v5056_v44 = vld [vmem:[%s10963_s10 + $0xf8] sm:$0xff] }
 0xe14   :  { %v8153_v21 = vpop.eup %8152  ;;  %v3775_v0 = vadd.f32 1e-05, %v3767_v15  ;;  %v7569_v15 = vpack.c.bf16 %v3882_v11, %v3866_v29  ;;  %v5032_v29 = vld [vmem:[%s10963_s10 + $0x38] sm:$0xff] }
 0xe15   :  { %v9236_v5 = vadd.f32 %v9161_v38, %v3801_v32  ;;  %v3788_v24 = vmul.f32 %v8153_v21, %v9111_v58  ;;  %8158 = vrsqrt.f32 %v3776_v63  ;;  %v7577_v32 = vpack.c.bf16 %v3884_v17, %v3868_v62  ;;  %v3867_v63 = vld [vmem:[%s10961_s8 + $0x170] sm:$0xff] }
 0xe16   :  { %8160 = vrsqrt.f32 %v3775_v0  ;;  %v3883_v21 = vld [vmem:[%s10961_s8 + $0x1f0] sm:$0xff]  ;;  %v5041_v0 = vld [vmem:[%s10963_s10 + $0x80] sm:$0xff] }
 0xe17   :  { %v3802_v47 = vmul.f32 %v9156_v55, %v3788_v24  ;;  %6412 = vmatmul.mubr.msk.f32.gmra.mrb[42].mxu1 %vm77_vm0, %v9236_v5  ;;  %6420 = vmatmul.mubr.msk.f32.gmra.mrb[46].mxu0 %vm77_vm0, %v9236_v5  ;;  %v5042_v24 = vld [vmem:[%s10963_s10 + $0x88] sm:$0xff]  ;;  %v5063_v17 = vld [vmem:[%s10963_s10 + $0x130] sm:$0xff] }
 0xe18   :  { %v8155_v39 = vpop.eup %8154  ;;  %4075 = vmatprep.mubr.f32.mxu1 %v8216_v35  ;;  %4188 = vmatprep.mubr.f32.mxu0 %v8216_v35 }
 0xe19   :  { %v8157_v37 = vpop.eup %8156  ;;  %v9247_v4 = vadd.f32 %v9161_v38, %v3802_v47  ;;  %v3789_v58 = vmul.f32 %v8155_v39, %v9117_v60  ;;  %v5073_v47 = vld [vmem:[%s10963_s10 + $0x180] sm:$0xff]  ;;  %v5074_v39 = vld [vmem:[%s10963_s10 + $0x188] sm:$0xff] }
 0xe1a   :  { %v3790_v28 = vmul.f32 %v8157_v37, %v9120_v40  ;;  %v7571_v37 = vpack.c.bf16 %v3881_v20, %v3865_v23  ;;  %v5050_v23 = vld [vmem:[%s10963_s10 + $0xc8] sm:$0xff]  ;;  %v5081_v20 = vld [vmem:[%s10963_s10 + $0x1c0] sm:$0xff] }
 0xe1b   :  { %v3803_v53 = vmul.f32 %v9156_v55, %v3789_v58  ;;  %6413 = vmatmul.mubr.msk.f32.gmra.mrb[44].mxu1 %vm77_vm0, %v9247_v4  ;;  %6421 = vmatmul.mubr.msk.f32.gmra.mrb[48].mxu0 %vm77_vm0, %v9247_v4  ;;  %v7579_v58 = vpack.c.bf16 %v3883_v21, %v3867_v63  ;;  %v5033_v21 = vld [vmem:[%s10963_s10 + $0x40] sm:$0xff] }
 0xe1c   :  { %4081 = vmatprep.mubr.f32.mxu1 %v8216_v35  ;;  %4194 = vmatprep.mubr.f32.mxu0 %v8216_v35  ;;  %v3804_v51 = vmul.f32 %v9156_v55, %v3790_v28  ;;  %v7581_v28 = vpack.c.bf16 %v5042_v24, %v5041_v0  ;;  %v5034_v0 = vld [vmem:[%s10963_s10 + $0x48] sm:$0xff] }
 0xe1d   :  { %v9259_v14 = vadd.f32 %v9161_v38, %v3803_v53  ;;  %v7613_v53 = vpack.c.bf16 %v5074_v39, %v5073_v47  ;;  %v5065_v39 = vld [vmem:[%s10963_s10 + $0x140] sm:$0xff] }
 0xe1e   :  { %v9269_v49 = vadd.f32 %v9161_v38, %v3804_v51  ;;  %v5025_v51 = vld [vmem:[%s10963_s10] sm:$0xff] }
 0xe1f   :  { %v8159_v60 = vpop.eup %8158  ;;  %6414 = vmatmul.mubr.msk.f32.gmra.mrb[46].mxu1 %vm77_vm0, %v9259_v14  ;;  %6422 = vmatmul.mubr.msk.f32.gmra.mrb[50].mxu0 %vm77_vm0, %v9259_v14 }
 0xe20   :  { %v8161_v40 = vpop.eup %8160  ;;  %4087 = vmatprep.mubr.f32.mxu1 %v8216_v35  ;;  %4200 = vmatprep.mubr.f32.mxu0 %v8216_v35  ;;  %v3792_v61 = vmul.f32 %v8159_v60, %v9130_v27  ;;  %v5026_v60 = vld [vmem:[%s10963_s10 + $0x8] sm:$0xff] }
 0xe21   :  { %v3791_v12 = vmul.f32 %v8161_v40, %v9133_v10  ;;  %v3829_v10 = vld [vmem:[%s10961_s8 + $0x40] sm:$0xff] }
 0xe22   :  { %v3806_v46 = vmul.f32 %v9156_v55, %v3792_v61  ;;  %v5057_v40 = vld [vmem:[%s10963_s10 + $0x100] sm:$0xff]  ;;  %v5058_v61 = vld [vmem:[%s10963_s10 + $0x108] sm:$0xff] }
 0xe23   :  { %v3805_v45 = vmul.f32 %v9156_v55, %v3791_v12  ;;  %6415 = vmatmul.mubr.msk.f32.gmra.mrb[48].mxu1 %vm77_vm0, %v9269_v49  ;;  %6423 = vmatmul.mubr.msk.f32.gmra.mrb[52].mxu0 %vm77_vm0, %v9269_v49  ;;  %v3845_v55 = vld [vmem:[%s10961_s8 + $0xc0] sm:$0xff]  ;;  %v5043_v12 = vld [vmem:[%s10963_s10 + $0x90] sm:$0xff]  ;;  %v7615_v43 = vpack.c.bf16 %v5058_v61, %v5057_v40 }
 0xe24   :  { %4093 = vmatprep.mubr.f32.mxu1 %v8216_v35  ;;  %4206 = vmatprep.mubr.f32.mxu0 %v8216_v35  ;;  %v9291_v27 = vadd.f32 %v9161_v38, %v3806_v46  ;;  %v7551_v48 = vpack.c.bf16 %v3845_v55, %v3829_v10  ;;  %v5075_v46 = vld [vmem:[%s10963_s10 + $0x190] sm:$0xff]  ;;  %v5076_v10 = vld [vmem:[%s10963_s10 + $0x198] sm:$0xff]  ;;  %v7583_v55 = vpack.c.bf16 %v5026_v60, %v5025_v51 }
 0xe25   :  { %v9282_v26 = vadd.f32 %v9161_v38, %v3805_v45  ;;  %v3862_v38 = vld [vmem:[%s10961_s8 + $0x148] sm:$0xff]  ;;  %v5044_v45 = vld [vmem:[%s10963_s10 + $0x98] sm:$0xff]  ;;  %v7617_v50 = vpack.c.bf16 %v5076_v10, %v5075_v46  ;;  %v7599_v60 = vpack.c.bf16 %v5034_v0, %v5033_v21  ;;  %v5035_v61 = vld [vmem:[%s10963_s10 + $0x50] sm:$0xff] }
 0xe26   :  { %v7553_v41 = vpack.c.bf16 %v3878_v57, %v3862_v38  ;;  %v5028_v38 = vld [vmem:[%s10963_s10 + $0x18] sm:$0xff]  ;;  %v7585_v57 = vpack.c.bf16 %v5044_v45, %v5043_v12  ;;  %v5067_v10 = vld [vmem:[%s10963_s10 + $0x150] sm:$0xff] }
 0xe27   :  { %6416 = vmatmul.mubr.msk.f32.gmra.mrb[50].mxu1 %vm77_vm0, %v9282_v26  ;;  %6424 = vmatmul.mubr.msk.f32.gmra.mrb[54].mxu0 %vm77_vm0, %v9282_v26  ;;  %v5084_v51 = vld [vmem:[%s10963_s10 + $0x1d8] sm:$0xff] }
 0xe28   :  { %4099 = vmatprep.mubr.f32.mxu1 %v8216_v35  ;;  %4212 = vmatprep.mubr.f32.mxu0 %v8216_v35  ;;  %v5036_v12 = vld [vmem:[%s10963_s10 + $0x58] sm:$0xff] }
 0xe2b   :  { %6417 = vmatmul.mubr.msk.f32.gmra.mrb[52].mxu1 %vm77_vm0, %v9291_v27  ;;  %6425 = vmatmul.mubr.msk.f32.gmra.mrb[56].mxu0 %vm77_vm0, %v9291_v27 }
 0xe2c   :  { %4283 = vmatprep.mubr.f32.mxu1 %v8216_v35  ;;  %4396 = vmatprep.mubr.f32.mxu0 %v8216_v35 }
 0xe2f   :  { %6426 = vmatmul.mubr.msk.f32.vlgmr.msra.gmra.mrb[54].mxu1 %vm77_vm0, %v9192_v59  ;;  %6434 = vmatmul.mubr.msk.f32.vlgmr.msra.gmra.mrb[58].mxu0 %vm77_vm0, %v9192_v59 }
 0xe30   :  { %7552 = vmatpush1.bf16.msra.mxu1 %v7551_v48  ;;  %4289 = vmatprep.mubr.f32.mxu1 %v8216_v35  ;;  %v5060_v48 = vld [vmem:[%s10963_s10 + $0x118] sm:$0xff] }
 0xe31   :  { %4402 = vmatprep.mubr.f32.mxu0 %v8216_v35  ;;  %7560 = vmatpush1.bf16.msra.mxu0 %v7559_v34  ;;  %v5045_v34 = vld [vmem:[%s10963_s10 + $0xa0] sm:$0xff]  ;;  %v7619_v16 = vpack.c.bf16 %v5060_v48, %v5059_v7 }
 0xe32   :  { %7554 = vmatprep.subr.bf16.mxu1 %v7553_v41  ;;  %7562 = vmatprep.subr.bf16.mxu0 %v7561_v6  ;;  %v5078_v41 = vld [vmem:[%s10963_s10 + $0x1a8] sm:$0xff]  ;;  %v7587_v6 = vpack.c.bf16 %v5028_v38, %v5027_v52  ;;  %v7589_v36 = vpack.c.bf16 %v5046_v25, %v5045_v34  ;;  %v5085_v38 = vld [vmem:[%s10963_s10 + $0x1e0] sm:$0xff] }
 0xe33   :  { %6427 = vmatmul.mubr.msk.f32.gmra.mrb[56].mxu1 %vm77_vm0, %v9225_v8  ;;  %6435 = vmatmul.mubr.msk.f32.gmra.mrb[60].mxu0 %vm77_vm0, %v9225_v8  ;;  %v7621_v13 = vpack.c.bf16 %v5078_v41, %v5077_v42  ;;  %v5054_v52 = vld [vmem:[%s10963_s10 + $0xe8] sm:$0xff]  ;;  %v5037_v48 = vld [vmem:[%s10963_s10 + $0x60] sm:$0xff] }
 0xe34   :  { %4295 = vmatprep.mubr.f32.mxu1 %v8216_v35  ;;  %4408 = vmatprep.mubr.f32.mxu0 %v8216_v35  ;;  %v5038_v34 = vld [vmem:[%s10963_s10 + $0x68] sm:$0xff]  ;;  %v5069_v41 = vld [vmem:[%s10963_s10 + $0x160] sm:$0xff] }
 0xe35   :  { %7556 = vmatpush1.bf16.msra.mxu1 %v7555_v3  ;;  %7564 = vmatpush1.bf16.msra.mxu0 %v7563_v56  ;;  %v5062_v3 = vld [vmem:[%s10963_s10 + $0x128] sm:$0xff]  ;;  %v5047_v56 = vld [vmem:[%s10963_s10 + $0xb0] sm:$0xff] }
 0xe36   :  { %7566 = vmatprep.subr.bf16.mxu1 %v7565_v9  ;;  %7574 = vmatprep.subr.bf16.mxu0 %v7573_v33  ;;  %v5048_v9 = vld [vmem:[%s10963_s10 + $0xb8] sm:$0xff]  ;;  %v5079_v33 = vld [vmem:[%s10963_s10 + $0x1b0] sm:$0xff]  ;;  %v7623_v54 = vpack.c.bf16 %v5062_v3, %v5061_v22 }
 0xe37   :  { %6428 = vmatmul.mubr.msk.f32.gmra.mrb[58].mxu1 %vm77_vm0, %v9236_v5  ;;  %6436 = vmatmul.mubr.msk.f32.gmra.mrb[62].mxu0 %vm77_vm0, %v9236_v5  ;;  %v7593_v11 = vpack.c.bf16 %v5048_v9, %v5047_v56  ;;  %v7625_v62 = vpack.c.bf16 %v5080_v18, %v5079_v33  ;;  %v5039_v3 = vld [vmem:[%s10963_s10 + $0x70] sm:$0xff]  ;;  %v5040_v56 = vld [vmem:[%s10963_s10 + $0x78] sm:$0xff] }
 0xe38   :  { %4301 = vmatprep.mubr.f32.mxu1 %v8216_v35  ;;  %4414 = vmatprep.mubr.f32.mxu0 %v8216_v35  ;;  %v5071_v18 = vld [vmem:[%s10963_s10 + $0x170] sm:$0xff] }
 0xe3b   :  { %6429 = vmatmul.mubr.msk.f32.gmra.mrb[60].mxu1 %vm77_vm0, %v9247_v4  ;;  %6437 = vmatmul.mubr.msk.f32.gmra.mrb[64].mxu0 %vm77_vm0, %v9247_v4 }
 0xe3c   :  { %4307 = vmatprep.mubr.f32.mxu1 %v8216_v35  ;;  %4420 = vmatprep.mubr.f32.mxu0 %v8216_v35 }
 0xe3f   :  { %6430 = vmatmul.mubr.msk.f32.gmra.mrb[62].mxu1 %vm77_vm0, %v9259_v14  ;;  %6438 = vmatmul.mubr.msk.f32.gmra.mrb[66].mxu0 %vm77_vm0, %v9259_v14 }
 0xe40   :  { %4313 = vmatprep.mubr.f32.mxu1 %v8216_v35  ;;  %4426 = vmatprep.mubr.f32.mxu0 %v8216_v35 }
 0xe43   :  { %6431 = vmatmul.mubr.msk.f32.gmra.mrb[64].mxu1 %vm77_vm0, %v9269_v49  ;;  %6439 = vmatmul.mubr.msk.f32.gmra.mrb[68].mxu0 %vm77_vm0, %v9269_v49 }
 0xe44   :  { %4319 = vmatprep.mubr.f32.mxu1 %v8216_v35  ;;  %4432 = vmatprep.mubr.f32.mxu0 %v8216_v35 }
 0xe47   :  { %6432 = vmatmul.mubr.msk.f32.gmra.mrb[66].mxu1 %vm77_vm0, %v9282_v26  ;;  %6440 = vmatmul.mubr.msk.f32.gmra.mrb[70].mxu0 %vm77_vm0, %v9282_v26 }
 0xe48   :  { %4325 = vmatprep.mubr.f32.mxu1 %v8216_v35  ;;  %4438 = vmatprep.mubr.f32.mxu0 %v8216_v35 }
 0xe4b   :  { %6433 = vmatmul.mubr.msk.f32.gmra.mrb[68].mxu1 %vm77_vm0, %v9291_v27  ;;  %6441 = vmatmul.mubr.msk.f32.gmra.mrb[72].mxu0 %vm77_vm0, %v9291_v27 }
 0xe4c   :  { %4509 = vmatprep.mubr.f32.mxu1 %v8216_v35  ;;  %4622 = vmatprep.mubr.f32.mxu0 %v8216_v35 }
 0xe4f   :  { %6442 = vmatmul.mubr.msk.f32.vlgmr.msra.gmra.mrb[70].mxu1 %vm77_vm0, %v9192_v59  ;;  %6450 = vmatmul.mubr.msk.f32.vlgmr.msra.gmra.mrb[74].mxu0 %vm77_vm0, %v9192_v59 }
 0xe50   :  { %7568 = vmatpush1.bf16.msra.mxu1 %v7567_v30  ;;  %4515 = vmatprep.mubr.f32.mxu1 %v8216_v35  ;;  %v5064_v30 = vld [vmem:[%s10963_s10 + $0x138] sm:$0xff] }
 0xe51   :  { %4628 = vmatprep.mubr.f32.mxu0 %v8216_v35  ;;  %7576 = vmatpush1.bf16.msra.mxu0 %v7575_v19  ;;  %v5049_v19 = vld [vmem:[%s10963_s10 + $0xc0] sm:$0xff]  ;;  %v7627_v63 = vpack.c.bf16 %v5064_v30, %v5063_v17 }
 0xe52   :  { %7570 = vmatprep.subr.bf16.mxu1 %v7569_v15  ;;  %7578 = vmatprep.subr.bf16.mxu0 %v7577_v32  ;;  %v5082_v15 = vld [vmem:[%s10963_s10 + $0x1c8] sm:$0xff]  ;;  %v7595_v32 = vpack.c.bf16 %v5032_v29, %v5031_v31  ;;  %v7597_v24 = vpack.c.bf16 %v5050_v23, %v5049_v19  ;;  %v5137_v29 = vld [vmem:[%s10963_s10 + $0x380] sm:$0xff]  ;;  %v3889_v23 = vlaneseq }
 0xe53   :  { %6443 = vmatmul.mubr.msk.f32.gmra.mrb[72].mxu1 %vm77_vm0, %v9225_v8  ;;  %6451 = vmatmul.mubr.msk.f32.gmra.mrb[76].mxu0 %vm77_vm0, %v9225_v8  ;;  %v7629_v47 = vpack.c.bf16 %v5082_v15, %v5081_v20  ;;  %v5106_v31 = vld [vmem:[%s10963_s10 + $0x288] sm:$0xff] }
 0xe54   :  { %4521 = vmatprep.mubr.f32.mxu1 %v8216_v35  ;;  %4634 = vmatprep.mubr.f32.mxu0 %v8216_v35 }
 0xe55   :  { %7572 = vmatpush1.bf16.msra.mxu1 %v7571_v37  ;;  %7580 = vmatpush1.bf16.msra.mxu0 %v7579_v58  ;;  %v5066_v37 = vld [vmem:[%s10963_s10 + $0x148] sm:$0xff]  ;;  %v5051_v58 = vld [vmem:[%s10963_s10 + $0xd0] sm:$0xff] }
 0xe56   :  { %7582 = vmatprep.subr.bf16.mxu1 %v7581_v28  ;;  %7614 = vmatprep.subr.bf16.mxu0 %v7613_v53  ;;  %v5052_v28 = vld [vmem:[%s10963_s10 + $0xd8] sm:$0xff]  ;;  %v5083_v53 = vld [vmem:[%s10963_s10 + $0x1d0] sm:$0xff]  ;;  %v7631_v40 = vpack.c.bf16 %v5066_v37, %v5065_v39  ;;  %v5089_v37 = vld [vmem:[%s10963_s10 + $0x200] sm:$0xff] }
 0xe57   :  { %6444 = vmatmul.mubr.msk.f32.gmra.mrb[74].mxu1 %vm77_vm0, %v9236_v5  ;;  %6452 = vmatmul.mubr.msk.f32.gmra.mrb[78].mxu0 %vm77_vm0, %v9236_v5  ;;  %v7601_v45 = vpack.c.bf16 %v5052_v28, %v5051_v58  ;;  %v7633_v46 = vpack.c.bf16 %v5084_v51, %v5083_v53  ;;  %v5090_v58 = vld [vmem:[%s10963_s10 + $0x208] sm:$0xff]  ;;  %v5121_v51 = vld [vmem:[%s10963_s10 + $0x300] sm:$0xff] }
 0xe58   :  { %4527 = vmatprep.mubr.f32.mxu1 %v8216_v35  ;;  %4640 = vmatprep.mubr.f32.mxu0 %v8216_v35 }
 0xe5b   :  { %6445 = vmatmul.mubr.msk.f32.gmra.mrb[76].mxu1 %vm77_vm0, %v9247_v4  ;;  %6453 = vmatmul.mubr.msk.f32.gmra.mrb[80].mxu0 %vm77_vm0, %v9247_v4 }
 0xe5c   :  { %4533 = vmatprep.mubr.f32.mxu1 %v8216_v35  ;;  %4646 = vmatprep.mubr.f32.mxu0 %v8216_v35 }
 0xe5f   :  { %6446 = vmatmul.mubr.msk.f32.gmra.mrb[78].mxu1 %vm77_vm0, %v9259_v14  ;;  %6454 = vmatmul.mubr.msk.f32.gmra.mrb[82].mxu0 %vm77_vm0, %v9259_v14 }
 0xe60   :  { %4539 = vmatprep.mubr.f32.mxu1 %v8216_v35  ;;  %4652 = vmatprep.mubr.f32.mxu0 %v8216_v35 }
 0xe63   :  { %6447 = vmatmul.mubr.msk.f32.gmra.mrb[80].mxu1 %vm77_vm0, %v9269_v49  ;;  %6455 = vmatmul.mubr.msk.f32.gmra.mrb[84].mxu0 %vm77_vm0, %v9269_v49 }
 0xe64   :  { %4545 = vmatprep.mubr.f32.mxu1 %v8216_v35  ;;  %4658 = vmatprep.mubr.f32.mxu0 %v8216_v35 }
 0xe67   :  { %6448 = vmatmul.mubr.msk.f32.gmra.mrb[82].mxu1 %vm77_vm0, %v9282_v26  ;;  %6456 = vmatmul.mubr.msk.f32.gmra.mrb[86].mxu0 %vm77_vm0, %v9282_v26 }
 0xe68   :  { %4551 = vmatprep.mubr.f32.mxu1 %v8216_v35  ;;  %4664 = vmatprep.mubr.f32.mxu0 %v8216_v35 }
 0xe6b   :  { %6449 = vmatmul.mubr.msk.f32.gmra.mrb[84].mxu1 %vm77_vm0, %v9291_v27  ;;  %6457 = vmatmul.mubr.msk.f32.gmra.mrb[88].mxu0 %vm77_vm0, %v9291_v27 }
 0xe6c   :  { %4735 = vmatprep.mubr.f32.mxu1 %v8216_v35  ;;  %4848 = vmatprep.mubr.f32.mxu0 %v8216_v35 }
 0xe6f   :  { %6458 = vmatmul.mubr.msk.f32.vlgmr.msra.gmra.mrb[86].mxu1 %vm77_vm0, %v9192_v59  ;;  %6466 = vmatmul.mubr.msk.f32.vlgmr.msra.gmra.mrb[90].mxu0 %vm77_vm0, %v9192_v59 }
 0xe70   :  { %4741 = vmatprep.mubr.f32.mxu1 %v8216_v35  ;;  %4854 = vmatprep.mubr.f32.mxu0 %v8216_v35 }
 0xe71   :  { %7584 = vmatpush3.bf16.msra.mxu1 %v7583_v55  ;;  %7616 = vmatpush3.bf16.msra.mxu0 %v7615_v43  ;;  %v5068_v55 = vld [vmem:[%s10963_s10 + $0x158] sm:$0xff]  ;;  %v5053_v43 = vld [vmem:[%s10963_s10 + $0xe0] sm:$0xff] }
 0xe72   :  { %7586 = vmatprep.subr.bf16.mxu1 %v7585_v57  ;;  %7618 = vmatprep.subr.bf16.mxu0 %v7617_v50  ;;  %v5086_v57 = vld [vmem:[%s10963_s10 + $0x1e8] sm:$0xff]  ;;  %v7603_v50 = vpack.c.bf16 %v5036_v12, %v5035_v61  ;;  %v7635_v7 = vpack.c.bf16 %v5068_v55, %v5067_v10  ;;  %v7605_v25 = vpack.c.bf16 %v5054_v52, %v5053_v43  ;;  %v5108_v10 = vld [vmem:[%s10963_s10 + $0x298] sm:$0xff]  ;;  %v5139_v55 = vld [vmem:[%s10963_s10 + $0x390] sm:$0xff] }
 0xe73   :  { %6459 = vmatmul.mubr.msk.f32.gmra.mrb[88].mxu1 %vm77_vm0, %v9225_v8  ;;  %6467 = vmatmul.mubr.msk.f32.gmra.mrb[92].mxu0 %vm77_vm0, %v9225_v8  ;;  %v7637_v42 = vpack.c.bf16 %v5086_v57, %v5085_v38  ;;  %v5140_v43 = vld [vmem:[%s10963_s10 + $0x398] sm:$0xff]  ;;  %v7647_v57 = vpack.c.bf16 %v5090_v58, %v5089_v37 }
 0xe74   :  { %4747 = vmatprep.mubr.f32.mxu1 %v8216_v35  ;;  %4860 = vmatprep.mubr.f32.mxu0 %v8216_v35 }
 0xe75   :  { %7588 = vmatpush3.bf16.msra.mxu1 %v7587_v6  ;;  %7620 = vmatpush3.bf16.msra.mxu0 %v7619_v16  ;;  %v5070_v6 = vld [vmem:[%s10963_s10 + $0x168] sm:$0xff]  ;;  %v5055_v16 = vld [vmem:[%s10963_s10 + $0xf0] sm:$0xff] }
 0xe76   :  { %7590 = vmatprep.subr.bf16.mxu1 %v7589_v36  ;;  %7622 = vmatprep.subr.bf16.mxu0 %v7621_v13  ;;  %v5088_v36 = vld [vmem:[%s10963_s10 + $0x1f8] sm:$0xff]  ;;  %v7607_v13 = vpack.c.bf16 %v5038_v34, %v5037_v48  ;;  %v7639_v22 = vpack.c.bf16 %v5070_v6, %v5069_v41  ;;  %v7609_v9 = vpack.c.bf16 %v5056_v44, %v5055_v16  ;;  %v5123_v44 = vld [vmem:[%s10963_s10 + $0x310] sm:$0xff] }
 0xe77   :  { %6460 = vmatmul.mubr.msk.f32.gmra.mrb[90].mxu1 %vm77_vm0, %v9236_v5  ;;  %6468 = vmatmul.mubr.msk.f32.gmra.mrb[94].mxu0 %vm77_vm0, %v9236_v5  ;;  %v7641_v33 = vpack.c.bf16 %v5088_v36, %v5087_v2  ;;  %v7681_v6 = vpack.c.bf16 %v5140_v43, %v5139_v55  ;;  %v5092_v16 = vld [vmem:[%s10963_s10 + $0x218] sm:$0xff]  ;;  %v5095_v55 = vld [vmem:[%s10963_s10 + $0x230] sm:$0xff] }
 0xe78   :  { %4753 = vmatprep.mubr.f32.mxu1 %v8216_v35  ;;  %4866 = vmatprep.mubr.f32.mxu0 %v8216_v35  ;;  %v5096_v43 = vld [vmem:[%s10963_s10 + $0x238] sm:$0xff] }
 0xe79   :  { %7592 = vmatpush3.bf16.msra.mxu1 %v7591_v1  ;;  %7624 = vmatpush3.bf16.msra.mxu0 %v7623_v54  ;;  %v5072_v1 = vld [vmem:[%s10963_s10 + $0x178] sm:$0xff]  ;;  %v5105_v54 = vld [vmem:[%s10963_s10 + $0x280] sm:$0xff] }
 0xe7a   :  { %7594 = vmatprep.subr.bf16.mxu1 %v7593_v11  ;;  %7626 = vmatprep.subr.bf16.mxu0 %v7625_v62  ;;  %v5138_v11 = vld [vmem:[%s10963_s10 + $0x388] sm:$0xff]  ;;  %v7611_v62 = vpack.c.bf16 %v5040_v56, %v5039_v3  ;;  %v7643_v17 = vpack.c.bf16 %v5072_v1, %v5071_v18  ;;  %v7645_v30 = vpack.c.bf16 %v5106_v31, %v5105_v54  ;;  %v5141_v31 = vld [vmem:[%s10963_s10 + $0x3a0] sm:$0xff] }
 0xe7b   :  { %6461 = vmatmul.mubr.msk.f32.gmra.mrb[92].mxu1 %vm77_vm0, %v9247_v4  ;;  %6469 = vmatmul.mubr.msk.f32.gmra.mrb[96].mxu0 %vm77_vm0, %v9247_v4  ;;  %v7677_v19 = vpack.c.bf16 %v5138_v11, %v5137_v29  ;;  %v5110_v54 = vld [vmem:[%s10963_s10 + $0x2a8] sm:$0xff] }
 0xe7c   :  { %4759 = vmatprep.mubr.f32.mxu1 %v8216_v35  ;;  %4872 = vmatprep.mubr.f32.mxu0 %v8216_v35  ;;  %v5142_v29 = vld [vmem:[%s10963_s10 + $0x3a8] sm:$0xff] }
 0xe7d   :  { %7596 = vmatpush3.bf16.msra.mxu1 %v7595_v32  ;;  %7628 = vmatpush3.bf16.msra.mxu0 %v7627_v63  ;;  %v9736_v32 = vld [vmem:[%s10962_s9] sm:$0xff] }
 0xe7e   :  { %7598 = vmatprep.subr.bf16.mxu1 %v7597_v24  ;;  %7630 = vmatprep.subr.bf16.mxu0 %v7629_v47 }
 0xe7f   :  { %6462 = vmatmul.mubr.msk.f32.gmra.mrb[94].mxu1 %vm77_vm0, %v9259_v14  ;;  %6470 = vmatmul.mubr.msk.f32.gmra.mrb[98].mxu0 %vm77_vm0, %v9259_v14 }
 0xe80   :  { %4765 = vmatprep.mubr.f32.mxu1 %v8216_v35  ;;  %4878 = vmatprep.mubr.f32.mxu0 %v8216_v35 }
 0xe81   :  { %7600 = vmatpush3.bf16.msra.mxu1 %v7599_v60  ;;  %7632 = vmatpush3.bf16.msra.mxu0 %v7631_v40  ;;  %v5122_v60 = vld [vmem:[%s10963_s10 + $0x308] sm:$0xff]  ;;  %v5107_v40 = vld [vmem:[%s10963_s10 + $0x290] sm:$0xff] }
 0xe82   :  { %7602 = vmatprep.subr.bf16.mxu1 %v7601_v45  ;;  %7634 = vmatprep.subr.bf16.mxu0 %v7633_v46  ;;  %v7649_v41 = vpack.c.bf16 %v5108_v10, %v5107_v40  ;;  %v5111_v40 = vld [vmem:[%s10963_s10 + $0x2b0] sm:$0xff] }
 0xe83   :  { %6463 = vmatmul.mubr.msk.f32.gmra.mrb[96].mxu1 %vm77_vm0, %v9269_v49  ;;  %6471 = vmatmul.mubr.msk.f32.gmra.mrb[100].mxu0 %vm77_vm0, %v9269_v49 }
 0xe84   :  { %4771 = vmatprep.mubr.f32.mxu1 %v8216_v35  ;;  %4884 = vmatprep.mubr.f32.mxu0 %v8216_v35 }
 0xe85   :  { %7604 = vmatpush3.bf16.msra.mxu1 %v7603_v50  ;;  %7636 = vmatpush3.bf16.msra.mxu0 %v7635_v7  ;;  %v7679_v50 = vpack.c.bf16 %v5122_v60, %v5121_v51  ;;  %v5091_v7 = vld [vmem:[%s10963_s10 + $0x210] sm:$0xff]  ;;  %v5125_v51 = vld [vmem:[%s10963_s10 + $0x320] sm:$0xff]  ;;  %v5126_v60 = vld [vmem:[%s10963_s10 + $0x328] sm:$0xff] }
 0xe86   :  { %7606 = vmatprep.subr.bf16.mxu1 %v7605_v25  ;;  %7638 = vmatprep.subr.bf16.mxu0 %v7637_v42  ;;  %v7687_v10 = vpack.c.bf16 %v5126_v60, %v5125_v51 }
 0xe87   :  { %6464 = vmatmul.mubr.msk.f32.gmra.mrb[98].mxu1 %vm77_vm0, %v9282_v26  ;;  %6472 = vmatmul.mubr.msk.f32.gmra.mrb[102].mxu0 %vm77_vm0, %v9282_v26 }
 0xe88   :  { %4777 = vmatprep.mubr.f32.mxu1 %v8216_v35  ;;  %4890 = vmatprep.mubr.f32.mxu0 %v8216_v35  ;;  %v9729_v35 = vshrl.u32 %v3889_v23, 7  ;;  %v5094_v23 = vld [vmem:[%s10963_s10 + $0x228] sm:$0xff] }
 0xe89   :  { %7608 = vmatpush3.bf16.msra.mxu1 %v7607_v13  ;;  %7640 = vmatpush3.bf16.msra.mxu0 %v7639_v22 }
 0xe8a   :  { %7610 = vmatprep.subr.bf16.mxu1 %v7609_v9  ;;  %7642 = vmatprep.subr.bf16.mxu0 %v7641_v33  ;;  %v3891_v20 = vsub.s32 0, %v9729_v35  ;;  %v3899_v15 = vsub.s32 2, %v9729_v35  ;;  %v3895_v63 = vsub.s32 1, %v9729_v35  ;;  %v3903_v21 = vsub.s32 3, %v9729_v35  ;;  %v5124_v9 = vld [vmem:[%s10963_s10 + $0x318] sm:$0xff]  ;;  %v5109_v33 = vld [vmem:[%s10963_s10 + $0x2a0] sm:$0xff] }
 0xe8b   :  { %6465 = vmatmul.mubr.msk.f32.gmra.mrb[100].mxu1 %vm77_vm0, %v9291_v27  ;;  %6473 = vmatmul.mubr.msk.f32.gmra.mrb[104].mxu0 %vm77_vm0, %v9291_v27 }
 0xe8c   :  { %v9743_v0 = vrot.slane %v9736_v32, %v3891_v20  ;;  %v9748_v24 = vrot.slane %v9736_v32, %v3899_v15  ;;  %v9753_v47 = vrot.slane %v9736_v32, %v3895_v63  ;;  %v9758_v39 = vrot.slane %v9736_v32, %v3903_v21 }
 0xe8d   :  { %7612 = vmatpush3.bf16.msra.mxu1 %v7611_v62  ;;  %7644 = vmatpush3.bf16.msra.mxu0 %v7643_v17  ;;  %v7651_v17 = vpack.c.bf16 %v5092_v16, %v5091_v7  ;;  %v5113_v7 = vld [vmem:[%s10963_s10 + $0x2c0] sm:$0xff]  ;;  %v5098_v16 = vld [vmem:[%s10963_s10 + $0x248] sm:$0xff] }
 0xe8e   :  { %7646 = vmatprep.subr.bf16.mxu1 %v7645_v30  ;;  %7678 = vmatprep.subr.bf16.mxu0 %v7677_v19  ;;  %v7683_v30 = vpack.c.bf16 %v5124_v9, %v5123_v44  ;;  %v5093_v19 = vld [vmem:[%s10963_s10 + $0x220] sm:$0xff]  ;;  %v5148_v9 = vld [vmem:[%s10963_s10 + $0x3d8] sm:$0xff] }
 0xea7   :  { %v4059_v28 = vpop.f32.mrb[38].mxu1  ;;  %v4172_v53 = vpop.f32.mrb[42].mxu0 }
 0xea8   :  { %v4060_v61 = vadd.f32 %v4059_v28, %v9743_v0  ;;  %v4173_v12 = vadd.f32 %v4172_v53, %v9748_v24  ;;  %v4061_v45 = vpop.f32.mrb[39].mxu1  ;;  %v4174_v46 = vpop.f32.mrb[43].mxu0  ;;  %v7653_v28 = vpack.c.bf16 %v5110_v54, %v5109_v33  ;;  %v7685_v53 = vpack.c.bf16 %v5142_v29, %v5141_v31  ;;  %v5100_v54 = vld [vmem:[%s10963_s10 + $0x258] sm:$0xff] }
 0xea9   :  { %v4062_v52 = vadd.f32 %v4061_v45, %v9753_v47  ;;  %v4175_v38 = vadd.f32 %v4174_v46, %v9758_v39  ;;  %v5144_v45 = vld [vmem:[%s10963_s10 + $0x3b8] sm:$0xff]  ;;  %v7655_v46 = vpack.c.bf16 %v5094_v23, %v5093_v19  ;;  %v5149_v19 = vld [vmem:[%s10963_s10 + $0x3e0] sm:$0xff]  ;;  %v5150_v23 = vld [vmem:[%s10963_s10 + $0x3e8] sm:$0xff] }
 0xeaa   :  { %v4897_v2 = vmax.f32 %v4060_v61, 0.0  ;;  %v4899_v36 = vmax.f32 %v4173_v12, 0.0  ;;  %v5112_v61 = vld [vmem:[%s10963_s10 + $0x2b8] sm:$0xff]  ;;  %v5143_v12 = vld [vmem:[%s10963_s10 + $0x3b0] sm:$0xff]  ;;  %v7701_v60 = vpack.c.bf16 %v5150_v23, %v5149_v19 }
 0xeab   :  { %v4898_v48 = vmax.f32 %v4062_v52, 0.0  ;;  %v4900_v34 = vmax.f32 %v4175_v38, 0.0  ;;  %v4065_v25 = vpop.f32.mrb[40].mxu1  ;;  %v4178_v42 = vpop.f32.mrb[44].mxu0  ;;  %v7657_v52 = vpack.c.bf16 %v5112_v61, %v5111_v40  ;;  %v7689_v38 = vpack.c.bf16 %v5144_v45, %v5143_v12  ;;  %v5133_v40 = vld [vmem:[%s10963_s10 + $0x360] sm:$0xff]  ;;  %v5134_v61 = vld [vmem:[%s10963_s10 + $0x368] sm:$0xff] }
 0xeac   :  { %v4066_v13 = vadd.f32 %v4065_v25, %v9743_v0  ;;  %v4179_v22 = vadd.f32 %v4178_v42, %v9748_v24  ;;  %v4067_v3 = vpop.f32.mrb[41].mxu1  ;;  %v4180_v56 = vpop.f32.mrb[45].mxu0  ;;  %v5146_v25 = vld [vmem:[%s10963_s10 + $0x3c8] sm:$0xff]  ;;  %v7659_v42 = vpack.c.bf16 %v5096_v43, %v5095_v55  ;;  %v5119_v12 = vld [vmem:[%s10963_s10 + $0x2f0] sm:$0xff]  ;;  %v5120_v45 = vld [vmem:[%s10963_s10 + $0x2f8] sm:$0xff]  ;;  %v7703_v43 = vpack.c.bf16 %v5134_v61, %v5133_v40 }
 0xead   :  { %v4068_v18 = vadd.f32 %v4067_v3, %v9753_v47  ;;  %v4181_v1 = vadd.f32 %v4180_v56, %v9758_v39  ;;  %5352 = vmatprep.mubr.f32.mxu1 %v4898_v48  ;;  %5457 = vmatprep.mubr.f32.mxu0 %v4900_v34  ;;  %v5114_v48 = vld [vmem:[%s10963_s10 + $0x2c8] sm:$0xff]  ;;  %v5145_v34 = vld [vmem:[%s10963_s10 + $0x3c0] sm:$0xff]  ;;  %v5116_v3 = vld [vmem:[%s10963_s10 + $0x2d8] sm:$0xff] }
 0xeae   :  { %5353 = vmatmul.mubr.f32.vlgmr.msra.gmra.mrb[102].mxu1 %v4897_v2  ;;  %5458 = vmatmul.mubr.f32.vlgmr.msra.gmra.mrb[106].mxu0 %v4899_v36  ;;  %v4913_v37 = vmax.f32 %v4066_v13, 0.0  ;;  %v4915_v58 = vmax.f32 %v4179_v22, 0.0  ;;  %v7661_v44 = vpack.c.bf16 %v5114_v48, %v5113_v7  ;;  %v7693_v2 = vpack.c.bf16 %v5146_v25, %v5145_v34  ;;  %v5129_v36 = vld [vmem:[%s10963_s10 + $0x340] sm:$0xff]  ;;  %v5130_v13 = vld [vmem:[%s10963_s10 + $0x348] sm:$0xff]  ;;  %v5115_v22 = vld [vmem:[%s10963_s10 + $0x2d0] sm:$0xff] }
 0xeaf   :  { %v4914_v11 = vmax.f32 %v4068_v18, 0.0  ;;  %v4916_v62 = vmax.f32 %v4181_v1, 0.0  ;;  %7648 = vmatpush3.bf16.msra.mxu1 %v7647_v57  ;;  %7680 = vmatpush3.bf16.msra.mxu0 %v7679_v50  ;;  %v5127_v57 = vld [vmem:[%s10963_s10 + $0x330] sm:$0xff]  ;;  %v5128_v50 = vld [vmem:[%s10963_s10 + $0x338] sm:$0xff]  ;;  %v7695_v18 = vpack.c.bf16 %v5130_v13, %v5129_v36  ;;  %v7665_v31 = vpack.c.bf16 %v5116_v3, %v5115_v22  ;;  %v5169_v34 = vld [vmem:[%s10963_s10 + $0x480] sm:$0xff] }
 0xeb0   :  { %7650 = vmatprep.subr.bf16.mxu1 %v7649_v41  ;;  %7682 = vmatprep.subr.bf16.mxu0 %v7681_v6  ;;  %v7691_v41 = vpack.c.bf16 %v5128_v50, %v5127_v57  ;;  %v5097_v6 = vld [vmem:[%s10963_s10 + $0x240] sm:$0xff]  ;;  %v5147_v56 = vld [vmem:[%s10963_s10 + $0x3d0] sm:$0xff]  ;;  %v7673_v57 = vpack.c.bf16 %v5120_v45, %v5119_v12  ;;  %v5136_v48 = vld [vmem:[%s10963_s10 + $0x378] sm:$0xff] }
 0xeb1   :  { %5357 = vmatprep.mubr.f32.mxu1 %v4914_v11  ;;  %5462 = vmatprep.mubr.f32.mxu0 %v4916_v62  ;;  %v7663_v33 = vpack.c.bf16 %v5098_v16, %v5097_v6  ;;  %v5099_v1 = vld [vmem:[%s10963_s10 + $0x250] sm:$0xff]  ;;  %v7697_v29 = vpack.c.bf16 %v5148_v9, %v5147_v56  ;;  %v5132_v62 = vld [vmem:[%s10963_s10 + $0x358] sm:$0xff]  ;;  %v5170_v25 = vld [vmem:[%s10963_s10 + $0x488] sm:$0xff] }
 0xeb2   :  { %5358 = vmatmul.mubr.f32.gmra.mrb[104].mxu1 %v4913_v37  ;;  %5463 = vmatmul.mubr.f32.gmra.mrb[108].mxu0 %v4915_v58  ;;  %v5131_v11 = vld [vmem:[%s10963_s10 + $0x350] sm:$0xff]  ;;  %v7667_v37 = vpack.c.bf16 %v5100_v54, %v5099_v1 }
 0xeb3   :  { %7652 = vmatpush3.bf16.msra.mxu1 %v7651_v17  ;;  %7684 = vmatpush3.bf16.msra.mxu0 %v7683_v30  ;;  %v5117_v17 = vld [vmem:[%s10963_s10 + $0x2e0] sm:$0xff]  ;;  %v5118_v30 = vld [vmem:[%s10963_s10 + $0x2e8] sm:$0xff]  ;;  %v7699_v58 = vpack.c.bf16 %v5132_v62, %v5131_v11  ;;  %v5135_v7 = vld [vmem:[%s10963_s10 + $0x370] sm:$0xff] }
 0xeb4   :  { %7654 = vmatprep.subr.bf16.mxu1 %v7653_v28  ;;  %7686 = vmatprep.subr.bf16.mxu0 %v7685_v53  ;;  %v5101_v28 = vld [vmem:[%s10963_s10 + $0x260] sm:$0xff]  ;;  %v5102_v53 = vld [vmem:[%s10963_s10 + $0x268] sm:$0xff]  ;;  %v7669_v51 = vpack.c.bf16 %v5118_v30, %v5117_v17  ;;  %v7707_v16 = vpack.c.bf16 %v5136_v48, %v5135_v7 }
 0xeb5   :  { %v7671_v55 = vpack.c.bf16 %v5102_v53, %v5101_v28 }
 0xeb7   :  { %7656 = vmatpush3.bf16.msra.mxu1 %v7655_v46  ;;  %7688 = vmatpush3.bf16.msra.mxu0 %v7687_v10  ;;  %v5151_v46 = vld [vmem:[%s10963_s10 + $0x3f0] sm:$0xff]  ;;  %v5152_v10 = vld [vmem:[%s10963_s10 + $0x3f8] sm:$0xff] }
 0xeb8   :  { %7658 = vmatprep.subr.bf16.mxu1 %v7657_v52  ;;  %7690 = vmatprep.subr.bf16.mxu0 %v7689_v38  ;;  %v5103_v52 = vld [vmem:[%s10963_s10 + $0x270] sm:$0xff]  ;;  %v5104_v38 = vld [vmem:[%s10963_s10 + $0x278] sm:$0xff]  ;;  %v7705_v50 = vpack.c.bf16 %v5152_v10, %v5151_v46 }
 0xeb9   :  { %v7675_v6 = vpack.c.bf16 %v5104_v38, %v5103_v52 }
 0xebb   :  { %7660 = vmatpush3.bf16.msra.mxu1 %v7659_v42  ;;  %7692 = vmatpush3.bf16.msra.mxu0 %v7691_v41  ;;  %v5201_v42 = vld [vmem:[%s10963_s10 + $0x580] sm:$0xff]  ;;  %v5202_v41 = vld [vmem:[%s10963_s10 + $0x588] sm:$0xff] }
 0xebc   :  { %7662 = vmatprep.subr.bf16.mxu1 %v7661_v44  ;;  %7694 = vmatprep.subr.bf16.mxu0 %v7693_v2  ;;  %v7709_v44 = vpack.c.bf16 %v5170_v25, %v5169_v34  ;;  %v7741_v2 = vpack.c.bf16 %v5202_v41, %v5201_v42 }
 0xebf   :  { %7664 = vmatpush3.bf16.msra.mxu1 %v7663_v33  ;;  %7696 = vmatpush3.bf16.msra.mxu0 %v7695_v18 }
 0xec0   :  { %7666 = vmatprep.subr.bf16.mxu1 %v7665_v31  ;;  %7698 = vmatprep.subr.bf16.mxu0 %v7697_v29 }
 0xec3   :  { %7668 = vmatpush3.bf16.msra.mxu1 %v7667_v37  ;;  %7700 = vmatpush3.bf16.msra.mxu0 %v7699_v58 }
 0xec4   :  { %7670 = vmatprep.subr.bf16.mxu1 %v7669_v51  ;;  %7702 = vmatprep.subr.bf16.mxu0 %v7701_v60 }
 0xec7   :  { %7672 = vmatpush3.bf16.msra.mxu1 %v7671_v55  ;;  %7704 = vmatpush3.bf16.msra.mxu0 %v7703_v43 }
 0xec8   :  { %7674 = vmatprep.subr.bf16.mxu1 %v7673_v57  ;;  %7706 = vmatprep.subr.bf16.mxu0 %v7705_v50 }
 0xecb   :  { %7676 = vmatpush3.bf16.msra.mxu1 %v7675_v6  ;;  %7708 = vmatpush3.bf16.msra.mxu0 %v7707_v16 }
 0xecc   :  { %7710 = vmatprep.subr.bf16.mxu1 %v7709_v44  ;;  %7742 = vmatprep.subr.bf16.mxu0 %v7741_v2  ;;  %v3907_v44 = vsub.s32 4, %v9729_v35 }
 0xeea   :  { %v4071_v36 = vpop.f32.mrb[42].mxu1  ;;  %v4184_v13 = vpop.f32.mrb[46].mxu0 }
 0xeeb   :  { %v4072_v22 = vadd.f32 %v4071_v36, %v9743_v0  ;;  %v4185_v3 = vadd.f32 %v4184_v13, %v9748_v24  ;;  %v4073_v56 = vpop.f32.mrb[43].mxu1  ;;  %v4186_v9 = vpop.f32.mrb[47].mxu0 }
 0xeec   :  { %v4074_v33 = vadd.f32 %v4073_v56, %v9753_v47  ;;  %v4187_v18 = vadd.f32 %v4186_v9, %v9758_v39  ;;  %v3911_v56 = vsub.s32 5, %v9729_v35 }
 0xeed   :  { %v4929_v11 = vmax.f32 %v4072_v22, 0.0  ;;  %v4931_v62 = vmax.f32 %v4185_v3, 0.0  ;;  %v3915_v3 = vsub.s32 6, %v9729_v35 }
 0xeee   :  { %v4930_v1 = vmax.f32 %v4074_v33, 0.0  ;;  %v4932_v54 = vmax.f32 %v4187_v18, 0.0  ;;  %v4077_v31 = vpop.f32.mrb[44].mxu1  ;;  %v4190_v29 = vpop.f32.mrb[48].mxu0 }
 0xeef   :  { %v4078_v17 = vadd.f32 %v4077_v31, %v9743_v0  ;;  %v4191_v30 = vadd.f32 %v4190_v29, %v9748_v24  ;;  %v4079_v19 = vpop.f32.mrb[45].mxu1  ;;  %v4192_v23 = vpop.f32.mrb[49].mxu0 }
 0xef0   :  { %v4080_v37 = vadd.f32 %v4079_v19, %v9753_v47  ;;  %v4193_v58 = vadd.f32 %v4192_v23, %v9758_v39  ;;  %5362 = vmatprep.mubr.f32.mxu1 %v4930_v1  ;;  %5467 = vmatprep.mubr.f32.mxu0 %v4932_v54 }
 0xef1   :  { %5363 = vmatmul.mubr.f32.gmra.mrb[106].mxu1 %v4929_v11  ;;  %5468 = vmatmul.mubr.f32.gmra.mrb[110].mxu0 %v4931_v62  ;;  %v4945_v40 = vmax.f32 %v4078_v17, 0.0  ;;  %v4947_v61 = vmax.f32 %v4191_v30, 0.0  ;;  %v3919_v62 = vsub.s32 7, %v9729_v35  ;;  %v9987_v17 = vrot.slane %v9736_v32, %v3907_v44 }
 0xef2   :  { %v4946_v28 = vmax.f32 %v4080_v37, 0.0  ;;  %v4948_v53 = vmax.f32 %v4193_v58, 0.0  ;;  %v4083_v51 = vpop.f32.mrb[46].mxu1  ;;  %v4196_v60 = vpop.f32.mrb[50].mxu0  ;;  %v9992_v58 = vrot.slane %v9736_v32, %v3915_v3 }
 0xef3   :  { %v4084_v12 = vadd.f32 %v4083_v51, %v9743_v0  ;;  %v4197_v45 = vadd.f32 %v4196_v60, %v9748_v24  ;;  %v4085_v46 = vpop.f32.mrb[47].mxu1  ;;  %v4198_v10 = vpop.f32.mrb[51].mxu0 }
 0xef4   :  { %v4086_v55 = vadd.f32 %v4085_v46, %v9753_v47  ;;  %v4199_v43 = vadd.f32 %v4198_v10, %v9758_v39  ;;  %5367 = vmatprep.mubr.f32.mxu1 %v4946_v28  ;;  %5472 = vmatprep.mubr.f32.mxu0 %v4948_v53  ;;  %v9997_v28 = vrot.slane %v9736_v32, %v3911_v56 }
 0xef5   :  { %5368 = vmatmul.mubr.f32.gmra.mrb[108].mxu1 %v4945_v40  ;;  %5473 = vmatmul.mubr.f32.gmra.mrb[112].mxu0 %v4947_v61  ;;  %v4961_v7 = vmax.f32 %v4084_v12, 0.0  ;;  %v4963_v48 = vmax.f32 %v4197_v45, 0.0  ;;  %v10006_v10 = vrot.slane %v9736_v32, %v3919_v62  ;;  %v5186_v32 = vld [vmem:[%s10963_s10 + $0x508] sm:$0xff] }
 0xef6   :  { %v4962_v52 = vmax.f32 %v4086_v55, 0.0  ;;  %v4964_v38 = vmax.f32 %v4199_v43, 0.0  ;;  %v4089_v57 = vpop.f32.mrb[48].mxu1  ;;  %v4202_v50 = vpop.f32.mrb[52].mxu0  ;;  %v10011_v55 = vld [vmem:[%s10963_s10 + $0x400] sm:$0xff] }
 0xef7   :  { %v4090_v34 = vadd.f32 %v4089_v57, %v9743_v0  ;;  %v4203_v25 = vadd.f32 %v4202_v50, %v9748_v24  ;;  %v4091_v42 = vpop.f32.mrb[49].mxu1  ;;  %v4204_v41 = vpop.f32.mrb[53].mxu0  ;;  %v10030_v57 = vld [vmem:[%s10963_s10 + $0x498] sm:$0xff] }
 0xef8   :  { %v4092_v6 = vadd.f32 %v4091_v42, %v9753_v47  ;;  %v4205_v16 = vadd.f32 %v4204_v41, %v9758_v39  ;;  %5372 = vmatprep.mubr.f32.mxu1 %v4962_v52  ;;  %5477 = vmatprep.mubr.f32.mxu0 %v4964_v38  ;;  %v10025_v38 = vld [vmem:[%s10963_s10 + $0x490] sm:$0xff] }
 0xef9   :  { %5373 = vmatmul.mubr.f32.gmra.mrb[110].mxu1 %v4961_v7  ;;  %5478 = vmatmul.mubr.f32.gmra.mrb[114].mxu0 %v4963_v48  ;;  %v4977_v9 = vmax.f32 %v4090_v34, 0.0  ;;  %v4979_v33 = vmax.f32 %v4203_v25, 0.0  ;;  %v5203_v41 = vld [vmem:[%s10963_s10 + $0x590] sm:$0xff] }
 0xefa   :  { %v4978_v2 = vmax.f32 %v4092_v6, 0.0  ;;  %v4980_v36 = vmax.f32 %v4205_v16, 0.0  ;;  %v4095_v13 = vpop.f32.mrb[50].mxu1  ;;  %v4208_v22 = vpop.f32.mrb[54].mxu0  ;;  %v5204_v6 = vld [vmem:[%s10963_s10 + $0x598] sm:$0xff] }
 0xefb   :  { %v4096_v18 = vadd.f32 %v4095_v13, %v9743_v0  ;;  %v4209_v1 = vadd.f32 %v4208_v22, %v9748_v24  ;;  %v4097_v54 = vpop.f32.mrb[51].mxu1  ;;  %v4210_v31 = vpop.f32.mrb[55].mxu0 }
 0xefc   :  { %v4098_v29 = vadd.f32 %v4097_v54, %v9753_v47  ;;  %v4211_v11 = vadd.f32 %v4210_v31, %v9758_v39  ;;  %5377 = vmatprep.mubr.f32.mxu1 %v4978_v2  ;;  %5482 = vmatprep.mubr.f32.mxu0 %v4980_v36  ;;  %v10045_v36 = vld [vmem:[%s10963_s10 + $0x410] sm:$0xff] }
 0xefd   :  { %5378 = vmatmul.mubr.f32.gmra.mrb[112].mxu1 %v4977_v9  ;;  %5483 = vmatmul.mubr.f32.gmra.mrb[116].mxu0 %v4979_v33  ;;  %v4993_v53 = vmax.f32 %v4096_v18, 0.0  ;;  %v4995_v51 = vmax.f32 %v4209_v1, 0.0  ;;  %v10051_v9 = vld [vmem:[%s10963_s10 + $0x418] sm:$0xff]  ;;  %v10056_v33 = vld [vmem:[%s10963_s10 + $0x510] sm:$0xff] }
 0xefe   :  { %v4994_v30 = vmax.f32 %v4098_v29, 0.0  ;;  %v4996_v19 = vmax.f32 %v4211_v11, 0.0  ;;  %v4101_v23 = vpop.f32.mrb[52].mxu1  ;;  %v4214_v37 = vpop.f32.mrb[56].mxu0  ;;  %v10061_v18 = vld [vmem:[%s10963_s10 + $0x518] sm:$0xff]  ;;  %v7713_v11 = vpack.c.bf16 %v10030_v57, %v10025_v38 }
 0xeff   :  { %v4102_v60 = vadd.f32 %v4101_v23, %v9743_v0  ;;  %v4215_v40 = vadd.f32 %v4214_v37, %v9748_v24  ;;  %v4103_v61 = vpop.f32.mrb[53].mxu1  ;;  %v4216_v12 = vpop.f32.mrb[57].mxu0  ;;  %v5154_v0 = vld [vmem:[%s10963_s10 + $0x408] sm:$0xff]  ;;  %v5185_v24 = vld [vmem:[%s10963_s10 + $0x500] sm:$0xff] }
 0xf00   :  { %v4104_v45 = vadd.f32 %v4103_v61, %v9753_v47  ;;  %v4217_v46 = vadd.f32 %v4216_v12, %v9758_v39  ;;  %5382 = vmatprep.mubr.f32.mxu1 %v4994_v30  ;;  %5487 = vmatprep.mubr.f32.mxu0 %v4996_v19  ;;  %v7711_v13 = vpack.c.bf16 %v5154_v0, %v10011_v55  ;;  %v10068_v19 = vld [vmem:[%s10963_s10 + $0x4a0] sm:$0xff]  ;;  %v10073_v23 = vld [vmem:[%s10963_s10 + $0x4a8] sm:$0xff] }
 0xf01   :  { %5383 = vmatmul.mubr.f32.gmra.mrb[114].mxu1 %v4993_v53  ;;  %5488 = vmatmul.mubr.f32.gmra.mrb[118].mxu0 %v4995_v51  ;;  %v5009_v50 = vmax.f32 %v4102_v60, 0.0  ;;  %v5011_v7 = vmax.f32 %v4215_v40, 0.0  ;;  %v7743_v22 = vpack.c.bf16 %v5186_v32, %v5185_v24  ;;  %v7745_v30 = vpack.c.bf16 %v5204_v6, %v5203_v41  ;;  %v10080_v12 = vld [vmem:[%s10963_s10 + $0x5a0] sm:$0xff] }
 0xf02   :  { %v5010_v47 = vmax.f32 %v4104_v45, 0.0  ;;  %v5012_v39 = vmax.f32 %v4217_v46, 0.0  ;;  %v4285_v43 = vpop.f32.mrb[54].mxu1  ;;  %v4398_v52 = vpop.f32.mrb[58].mxu0  ;;  %v5206_v45 = vld [vmem:[%s10963_s10 + $0x5a8] sm:$0xff]  ;;  %v10090_v0 = vld [vmem:[%s10963_s10 + $0x420] sm:$0xff]  ;;  %v7715_v24 = vpack.c.bf16 %v10051_v9, %v10045_v36  ;;  %v7747_v32 = vpack.c.bf16 %v10061_v18, %v10056_v33 }
 0xf03   :  { %v4286_v48 = vadd.f32 %v4285_v43, %v9987_v17  ;;  %v4399_v34 = vadd.f32 %v4398_v52, %v9992_v58  ;;  %v4287_v25 = vpop.f32.mrb[55].mxu1  ;;  %v4400_v42 = vpop.f32.mrb[59].mxu0  ;;  %v10109_v43 = vld [vmem:[%s10963_s10 + $0x528] sm:$0xff]  ;;  %v10139_v18 = vld [vmem:[%s10963_s10 + $0x430] sm:$0xff] }
 0xf04   :  { %v4288_v16 = vadd.f32 %v4287_v25, %v9997_v28  ;;  %v4401_v2 = vadd.f32 %v4400_v42, %v10006_v10  ;;  %5387 = vmatprep.mubr.f32.mxu1 %v5010_v47  ;;  %5492 = vmatprep.mubr.f32.mxu0 %v5012_v39  ;;  %v10099_v47 = vld [vmem:[%s10963_s10 + $0x428] sm:$0xff]  ;;  %v10104_v39 = vld [vmem:[%s10963_s10 + $0x520] sm:$0xff]  ;;  %v10122_v25 = vld [vmem:[%s10963_s10 + $0x4b8] sm:$0xff] }
 0xf05   :  { %5388 = vmatmul.mubr.f32.gmra.mrb[116].mxu1 %v5009_v50  ;;  %5493 = vmatmul.mubr.f32.gmra.mrb[120].mxu0 %v5011_v7  ;;  %v4901_v37 = vmax.f32 %v4286_v48, 0.0  ;;  %v4903_v53 = vmax.f32 %v4399_v34, 0.0  ;;  %v7717_v7 = vpack.c.bf16 %v10073_v23, %v10068_v19  ;;  %v7749_v48 = vpack.c.bf16 %v5206_v45, %v10080_v12  ;;  %v10117_v34 = vld [vmem:[%s10963_s10 + $0x4b0] sm:$0xff] }
 0xf06   :  { %v4902_v1 = vmax.f32 %v4288_v16, 0.0  ;;  %v4904_v54 = vmax.f32 %v4401_v2, 0.0  ;;  %v4291_v31 = vpop.f32.mrb[56].mxu1  ;;  %v4404_v29 = vpop.f32.mrb[60].mxu0 }
 0xf07   :  { %v4292_v51 = vadd.f32 %v4291_v31, %v9987_v17  ;;  %v4405_v60 = vadd.f32 %v4404_v29, %v9992_v58  ;;  %v4293_v40 = vpop.f32.mrb[57].mxu1  ;;  %v4406_v61 = vpop.f32.mrb[61].mxu0  ;;  %v10148_v31 = vld [vmem:[%s10963_s10 + $0x438] sm:$0xff]  ;;  %v10153_v29 = vld [vmem:[%s10963_s10 + $0x530] sm:$0xff] }
 0xf08   :  { %v4294_v46 = vadd.f32 %v4293_v40, %v9997_v28  ;;  %v4407_v55 = vadd.f32 %v4406_v61, %v10006_v10  ;;  %5562 = vmatprep.mubr.f32.mxu1 %v4902_v1  ;;  %5667 = vmatprep.mubr.f32.mxu0 %v4904_v54  ;;  %v7719_v1 = vpack.c.bf16 %v10099_v47, %v10090_v0  ;;  %v10171_v40 = vld [vmem:[%s10963_s10 + $0x4c8] sm:$0xff] }
 0xf09   :  { %5563 = vmatmul.mubr.f32.vlgmr.msra.gmra.mrb[118].mxu1 %v4901_v37  ;;  %5668 = vmatmul.mubr.f32.vlgmr.msra.gmra.mrb[122].mxu0 %v4903_v53  ;;  %v4917_v42 = vmax.f32 %v4292_v51, 0.0  ;;  %v4919_v41 = vmax.f32 %v4405_v60, 0.0  ;;  %v7751_v54 = vpack.c.bf16 %v10109_v43, %v10104_v39  ;;  %v7721_v53 = vpack.c.bf16 %v10122_v25, %v10117_v34  ;;  %v10166_v60 = vld [vmem:[%s10963_s10 + $0x4c0] sm:$0xff] }
 0xf0a   :  { %v4918_v52 = vmax.f32 %v4294_v46, 0.0  ;;  %v4920_v38 = vmax.f32 %v4407_v55, 0.0  ;;  %v4297_v57 = vpop.f32.mrb[58].mxu1  ;;  %v4410_v50 = vpop.f32.mrb[62].mxu0  ;;  %7712 = vmatpush3.bf16.msra.mxu1 %v7711_v13  ;;  %7744 = vmatpush3.bf16.msra.mxu0 %v7743_v22  ;;  %v10129_v13 = vld [vmem:[%s10963_s10 + $0x5b0] sm:$0xff]  ;;  %v5208_v22 = vld [vmem:[%s10963_s10 + $0x5b8] sm:$0xff] }
 0xf0b   :  { %v4298_v6 = vadd.f32 %v4297_v57, %v9987_v17  ;;  %v4411_v16 = vadd.f32 %v4410_v50, %v9992_v58  ;;  %v4299_v2 = vpop.f32.mrb[59].mxu1  ;;  %v4412_v36 = vpop.f32.mrb[63].mxu0  ;;  %7714 = vmatprep.subr.bf16.mxu1 %v7713_v11  ;;  %7746 = vmatprep.subr.bf16.mxu0 %v7745_v30  ;;  %v10158_v11 = vld [vmem:[%s10963_s10 + $0x538] sm:$0xff]  ;;  %v7753_v51 = vpack.c.bf16 %v5208_v22, %v10129_v13  ;;  %v10190_v43 = vld [vmem:[%s10963_s10 + $0x440] sm:$0xff]  ;;  %v10199_v57 = vld [vmem:[%s10963_s10 + $0x448] sm:$0xff] }
 0xf0c   :  { %v4300_v9 = vadd.f32 %v4299_v2, %v9997_v28  ;;  %v4413_v33 = vadd.f32 %v4412_v36, %v10006_v10  ;;  %5567 = vmatprep.mubr.f32.mxu1 %v4918_v52  ;;  %5672 = vmatprep.mubr.f32.mxu0 %v4920_v38  ;;  %v7723_v52 = vpack.c.bf16 %v10148_v31, %v10139_v18  ;;  %v10204_v50 = vld [vmem:[%s10963_s10 + $0x540] sm:$0xff]  ;;  %v10223_v2 = vld [vmem:[%s10963_s10 + $0x4d8] sm:$0xff] }
 0xf0d   :  { %5568 = vmatmul.mubr.f32.gmra.mrb[120].mxu1 %v4917_v42  ;;  %5673 = vmatmul.mubr.f32.gmra.mrb[124].mxu0 %v4919_v41  ;;  %v4933_v61 = vmax.f32 %v4298_v6, 0.0  ;;  %v4935_v12 = vmax.f32 %v4411_v16, 0.0  ;;  %v7755_v38 = vpack.c.bf16 %v10158_v11, %v10153_v29  ;;  %v7725_v41 = vpack.c.bf16 %v10171_v40, %v10166_v60  ;;  %v10218_v16 = vld [vmem:[%s10963_s10 + $0x4d0] sm:$0xff] }
 0xf0e   :  { %v4934_v30 = vmax.f32 %v4300_v9, 0.0  ;;  %v4936_v19 = vmax.f32 %v4413_v33, 0.0  ;;  %v4303_v23 = vpop.f32.mrb[60].mxu1  ;;  %v4416_v37 = vpop.f32.mrb[64].mxu0  ;;  %7716 = vmatpush3.bf16.msra.mxu1 %v7715_v24  ;;  %7748 = vmatpush3.bf16.msra.mxu0 %v7747_v32  ;;  %v10178_v24 = vld [vmem:[%s10963_s10 + $0x5c0] sm:$0xff]  ;;  %v10183_v32 = vld [vmem:[%s10963_s10 + $0x5c8] sm:$0xff] }
 0xf0f   :  { %v4304_v45 = vadd.f32 %v4303_v23, %v9987_v17  ;;  %v4417_v46 = vadd.f32 %v4416_v37, %v9992_v58  ;;  %v4305_v55 = vpop.f32.mrb[61].mxu1  ;;  %v4418_v0 = vpop.f32.mrb[65].mxu0  ;;  %7718 = vmatprep.subr.bf16.mxu1 %v7717_v7  ;;  %7750 = vmatprep.subr.bf16.mxu0 %v7749_v48  ;;  %v10209_v7 = vld [vmem:[%s10963_s10 + $0x548] sm:$0xff]  ;;  %v7757_v6 = vpack.c.bf16 %v10183_v32, %v10178_v24  ;;  %v10242_v11 = vld [vmem:[%s10963_s10 + $0x450] sm:$0xff] }
 0xf10   :  { %v4306_v47 = vadd.f32 %v4305_v55, %v9997_v28  ;;  %v4419_v39 = vadd.f32 %v4418_v0, %v10006_v10  ;;  %5572 = vmatprep.mubr.f32.mxu1 %v4934_v30  ;;  %5677 = vmatprep.mubr.f32.mxu0 %v4936_v19  ;;  %v10247_v30 = vld [vmem:[%s10963_s10 + $0x458] sm:$0xff]  ;;  %v7727_v19 = vpack.c.bf16 %v10199_v57, %v10190_v43  ;;  %v10256_v37 = vld [vmem:[%s10963_s10 + $0x550] sm:$0xff]  ;;  %v10275_v55 = vld [vmem:[%s10963_s10 + $0x4e8] sm:$0xff] }
 0xf11   :  { %5573 = vmatmul.mubr.f32.gmra.mrb[122].mxu1 %v4933_v61  ;;  %5678 = vmatmul.mubr.f32.gmra.mrb[126].mxu0 %v4935_v12  ;;  %v4949_v36 = vmax.f32 %v4304_v45, 0.0  ;;  %v4951_v13 = vmax.f32 %v4417_v46, 0.0  ;;  %v7759_v23 = vpack.c.bf16 %v10209_v7, %v10204_v50  ;;  %v7729_v45 = vpack.c.bf16 %v10223_v2, %v10218_v16  ;;  %v10280_v0 = vld [vmem:[%s10963_s10 + $0x5e0] sm:$0xff]  ;;  %v10292_v57 = vld [vmem:[%s10962_s9 + $0x8] sm:$0xff] }
 0xf12   :  { %v4950_v48 = vmax.f32 %v4306_v47, 0.0  ;;  %v4952_v34 = vmax.f32 %v4419_v39, 0.0  ;;  %v4309_v25 = vpop.f32.mrb[62].mxu1  ;;  %v4422_v42 = vpop.f32.mrb[66].mxu0  ;;  %7720 = vmatpush3.bf16.msra.mxu1 %v7719_v1  ;;  %7752 = vmatpush3.bf16.msra.mxu0 %v7751_v54  ;;  %v10230_v1 = vld [vmem:[%s10963_s10 + $0x5d0] sm:$0xff]  ;;  %v10235_v54 = vld [vmem:[%s10963_s10 + $0x5d8] sm:$0xff] }
 0xf13   :  { %v4310_v22 = vadd.f32 %v4309_v25, %v9987_v17  ;;  %v4423_v9 = vadd.f32 %v4422_v42, %v9992_v58  ;;  %v4311_v33 = vpop.f32.mrb[63].mxu1  ;;  %v4424_v18 = vpop.f32.mrb[67].mxu0  ;;  %7722 = vmatprep.subr.bf16.mxu1 %v7721_v53  ;;  %7754 = vmatprep.subr.bf16.mxu0 %v7753_v51  ;;  %v10261_v53 = vld [vmem:[%s10963_s10 + $0x558] sm:$0xff]  ;;  %v10266_v51 = vld [vmem:[%s10963_s10 + $0x4e0] sm:$0xff]  ;;  %v7761_v46 = vpack.c.bf16 %v10235_v54, %v10230_v1  ;;  %v10320_v16 = vld [vmem:[%s10963_s10 + $0x568] sm:$0xff] }
 0xf14   :  { %v4312_v31 = vadd.f32 %v4311_v33, %v9997_v28  ;;  %v4425_v29 = vadd.f32 %v4424_v18, %v10006_v10  ;;  %5577 = vmatprep.mubr.f32.mxu1 %v4950_v48  ;;  %5682 = vmatprep.mubr.f32.mxu0 %v4952_v34  ;;  %v10299_v48 = vld [vmem:[%s10963_s10 + $0x460] sm:$0xff]  ;;  %v7731_v34 = vpack.c.bf16 %v10247_v30, %v10242_v11  ;;  %v10332_v18 = vld [vmem:[%s10963_s10 + $0x4f0] sm:$0xff]  ;;  %v10337_v1 = vld [vmem:[%s10963_s10 + $0x4f8] sm:$0xff] }
 0xf15   :  { %5578 = vmatmul.mubr.f32.gmra.mrb[124].mxu1 %v4949_v36  ;;  %5683 = vmatmul.mubr.f32.gmra.mrb[128].mxu0 %v4951_v13  ;;  %v4965_v24 = vmax.f32 %v4310_v22, 0.0  ;;  %v4967_v32 = vmax.f32 %v4423_v9, 0.0  ;;  %v7763_v25 = vpack.c.bf16 %v10261_v53, %v10256_v37  ;;  %v7733_v42 = vpack.c.bf16 %v10275_v55, %v10266_v51 }
 0xf16   :  { %v4966_v60 = vmax.f32 %v4312_v31, 0.0  ;;  %v4968_v40 = vmax.f32 %v4425_v29, 0.0  ;;  %v4315_v61 = vpop.f32.mrb[64].mxu1  ;;  %v4428_v12 = vpop.f32.mrb[68].mxu0  ;;  %7724 = vmatpush3.bf16.msra.mxu1 %v7723_v52  ;;  %7756 = vmatpush3.bf16.msra.mxu0 %v7755_v38  ;;  %v10287_v38 = vld [vmem:[%s10963_s10 + $0x5e8] sm:$0xff]  ;;  %v10327_v33 = vrot.slane %v10292_v57, %v3891_v20  ;;  %v10344_v20 = vld [vmem:[%s10963_s10 + $0x5f0] sm:$0xff]  ;;  %v10356_v51 = vrot.slane %v10292_v57, %v3899_v15 }
 0xf17   :  { %v4316_v47 = vadd.f32 %v4315_v61, %v9987_v17  ;;  %v4429_v39 = vadd.f32 %v4428_v12, %v9992_v58  ;;  %v4317_v43 = vpop.f32.mrb[65].mxu1  ;;  %v4430_v52 = vpop.f32.mrb[69].mxu0  ;;  %7726 = vmatprep.subr.bf16.mxu1 %v7725_v41  ;;  %7758 = vmatprep.subr.bf16.mxu0 %v7757_v6  ;;  %v10310_v41 = vld [vmem:[%s10963_s10 + $0x468] sm:$0xff]  ;;  %v10315_v6 = vld [vmem:[%s10963_s10 + $0x560] sm:$0xff]  ;;  %v7765_v9 = vpack.c.bf16 %v10287_v38, %v10280_v0  ;;  %v10375_v15 = vld [vmem:[%s10963_s10 + $0x478] sm:$0xff] }
 0xf18   :  { %v4318_v50 = vadd.f32 %v4317_v43, %v9997_v28  ;;  %v4431_v7 = vadd.f32 %v4430_v52, %v10006_v10  ;;  %5582 = vmatprep.mubr.f32.mxu1 %v4966_v60  ;;  %5687 = vmatprep.mubr.f32.mxu0 %v4968_v40  ;;  %v10361_v60 = vld [vmem:[%s10963_s10 + $0x470] sm:$0xff]  ;;  %v7735_v40 = vpack.c.bf16 %v10310_v41, %v10299_v48  ;;  %v10399_v43 = vld [vmem:[%s10963_s10 + $0x688] sm:$0xff] }
 0xf19   :  { %5583 = vmatmul.mubr.f32.gmra.mrb[126].mxu1 %v4965_v24  ;;  %5688 = vmatmul.mubr.f32.gmra.mrb[130].mxu0 %v4967_v32  ;;  %v4981_v54 = vmax.f32 %v4316_v47, 0.0  ;;  %v4983_v31 = vmax.f32 %v4429_v39, 0.0  ;;  %v7767_v61 = vpack.c.bf16 %v10320_v16, %v10315_v6  ;;  %v10370_v12 = vrot.slane %v10292_v57, %v3895_v63  ;;  %v10394_v39 = vld [vmem:[%s10963_s10 + $0x680] sm:$0xff]  ;;  %v10411_v41 = vld [vmem:[%s10963_s10 + $0x788] sm:$0xff] }
 0xf1a   :  { %v4982_v2 = vmax.f32 %v4318_v50, 0.0  ;;  %v4984_v36 = vmax.f32 %v4431_v7, 0.0  ;;  %v4321_v13 = vpop.f32.mrb[66].mxu1  ;;  %v4434_v22 = vpop.f32.mrb[70].mxu0  ;;  %7728 = vmatpush3.bf16.msra.mxu1 %v7727_v19  ;;  %7760 = vmatpush3.bf16.msra.mxu0 %v7759_v23  ;;  %v10349_v23 = vld [vmem:[%s10963_s10 + $0x5f8] sm:$0xff]  ;;  %v7737_v32 = vpack.c.bf16 %v10337_v1, %v10332_v18  ;;  %v7739_v16 = vpack.c.bf16 %v10375_v15, %v10361_v60 }
 0xf1b   :  { %v4322_v29 = vadd.f32 %v4321_v13, %v9987_v17  ;;  %v4435_v11 = vadd.f32 %v4434_v22, %v9992_v58  ;;  %v4323_v30 = vpop.f32.mrb[67].mxu1  ;;  %v4436_v19 = vpop.f32.mrb[71].mxu0  ;;  %7730 = vmatprep.subr.bf16.mxu1 %v7729_v45  ;;  %7762 = vmatprep.subr.bf16.mxu0 %v7761_v46  ;;  %v10380_v45 = vld [vmem:[%s10963_s10 + $0x570] sm:$0xff]  ;;  %v10385_v46 = vld [vmem:[%s10963_s10 + $0x578] sm:$0xff]  ;;  %v7769_v47 = vpack.c.bf16 %v10349_v23, %v10344_v20 }
 0xf1c   :  { %v4324_v37 = vadd.f32 %v4323_v30, %v9997_v28  ;;  %v4437_v53 = vadd.f32 %v4436_v19, %v10006_v10  ;;  %5587 = vmatprep.mubr.f32.mxu1 %v4982_v2  ;;  %5692 = vmatprep.mubr.f32.mxu0 %v4984_v36  ;;  %v10442_v2 = vld [vmem:[%s10963_s10 + $0x708] sm:$0xff]  ;;  %v7773_v18 = vpack.c.bf16 %v10399_v43, %v10394_v39 }
 0xf1d   :  { %5588 = vmatmul.mubr.f32.gmra.mrb[128].mxu1 %v4981_v54  ;;  %5693 = vmatmul.mubr.f32.gmra.mrb[132].mxu0 %v4983_v31  ;;  %v4997_v52 = vmax.f32 %v4322_v29, 0.0  ;;  %v4999_v38 = vmax.f32 %v4435_v11, 0.0  ;;  %v10451_v54 = vld [vmem:[%s10963_s10 + $0x690] sm:$0xff]  ;;  %v10456_v31 = vld [vmem:[%s10963_s10 + $0x698] sm:$0xff] }
 0xf1e   :  { %v4998_v55 = vmax.f32 %v4324_v37, 0.0  ;;  %v5000_v0 = vmax.f32 %v4437_v53, 0.0  ;;  %v4327_v24 = vpop.f32.mrb[68].mxu1  ;;  %v4440_v63 = vpop.f32.mrb[72].mxu0  ;;  %7732 = vmatpush3.bf16.msra.mxu1 %v7731_v34  ;;  %7764 = vmatpush3.bf16.msra.mxu0 %v7763_v25  ;;  %v10406_v25 = vld [vmem:[%s10963_s10 + $0x780] sm:$0xff]  ;;  %v10463_v37 = vld [vmem:[%s10963_s10 + $0x790] sm:$0xff]  ;;  %v7777_v39 = vpack.c.bf16 %v10456_v31, %v10451_v54 }
 0xf1f   :  { %v4328_v50 = vadd.f32 %v4327_v24, %v9987_v17  ;;  %v4441_v7 = vadd.f32 %v4440_v63, %v9992_v58  ;;  %v4329_v48 = vpop.f32.mrb[69].mxu1  ;;  %v4442_v34 = vpop.f32.mrb[73].mxu0  ;;  %7734 = vmatprep.subr.bf16.mxu1 %v7733_v42  ;;  %7766 = vmatprep.subr.bf16.mxu0 %v7765_v9  ;;  %v10418_v58 = vrot.slane %v10292_v57, %v3903_v21  ;;  %v10423_v42 = vld [vmem:[%s10963_s10 + $0x600] sm:$0xff]  ;;  %v5268_v53 = vld [vmem:[%s10963_s10 + $0x798] sm:$0xff] }
 0xf20   :  { %v4330_v6 = vadd.f32 %v4329_v48, %v9997_v28  ;;  %v4443_v17 = vadd.f32 %v4442_v34, %v10006_v10  ;;  %5592 = vmatprep.mubr.f32.mxu1 %v4998_v55  ;;  %5697 = vmatprep.mubr.f32.mxu0 %v5000_v0  ;;  %v7771_v28 = vpack.c.bf16 %v10385_v46, %v10380_v45  ;;  %v10432_v10 = vld [vmem:[%s10963_s10 + $0x608] sm:$0xff]  ;;  %v10437_v21 = vld [vmem:[%s10963_s10 + $0x700] sm:$0xff]  ;;  %v10482_v46 = vld [vmem:[%s10963_s10 + $0x618] sm:$0xff] }
 0xf21   :  { %5593 = vmatmul.mubr.f32.gmra.mrb[130].mxu1 %v4997_v52  ;;  %5698 = vmatmul.mubr.f32.gmra.mrb[134].mxu0 %v4999_v38  ;;  %v7805_v1 = vpack.c.bf16 %v10411_v41, %v10406_v25  ;;  %v5013_v29 = vmax.f32 %v4328_v50, 0.0  ;;  %v5015_v11 = vmax.f32 %v4441_v7, 0.0  ;;  %v7775_v15 = vpack.c.bf16 %v10432_v10, %v10423_v42  ;;  %v10487_v55 = vld [vmem:[%s10963_s10 + $0x710] sm:$0xff]  ;;  %v10492_v0 = vld [vmem:[%s10963_s10 + $0x718] sm:$0xff]  ;;  %v10500_v52 = vld [vmem:[%s10963_s10 + $0x6a0] sm:$0xff] }
 0xf22   :  { %v5014_v36 = vmax.f32 %v4330_v6, 0.0  ;;  %v5016_v13 = vmax.f32 %v4443_v17, 0.0  ;;  %v4511_v22 = vpop.f32.mrb[70].mxu1  ;;  %v4624_v9 = vpop.f32.mrb[74].mxu0  ;;  %7736 = vmatpush3.bf16.msra.mxu1 %v7735_v40  ;;  %7768 = vmatpush3.bf16.msra.mxu0 %v7767_v61  ;;  %v10473_v61 = vld [vmem:[%s10963_s10 + $0x610] sm:$0xff]  ;;  %v7807_v45 = vpack.c.bf16 %v10442_v2, %v10437_v21  ;;  %v7809_v43 = vpack.c.bf16 %v5268_v53, %v10463_v37  ;;  %v10505_v38 = vld [vmem:[%s10963_s10 + $0x6a8] sm:$0xff] }
 0xf23   :  { %v4512_v30 = vadd.f32 %v4511_v22, %v10327_v33  ;;  %v4625_v19 = vadd.f32 %v4624_v9, %v10356_v51  ;;  %v4513_v20 = vpop.f32.mrb[71].mxu1  ;;  %v4626_v23 = vpop.f32.mrb[75].mxu0  ;;  %7738 = vmatprep.subr.bf16.mxu1 %v7737_v32  ;;  %7770 = vmatprep.subr.bf16.mxu0 %v7769_v47  ;;  %v10512_v6 = vld [vmem:[%s10963_s10 + $0x7a0] sm:$0xff]  ;;  %v5270_v17 = vld [vmem:[%s10963_s10 + $0x7a8] sm:$0xff]  ;;  %v7779_v10 = vpack.c.bf16 %v10482_v46, %v10473_v61 }
 0xf24   :  { %v4514_v60 = vadd.f32 %v4513_v20, %v10370_v12  ;;  %v4627_v40 = vadd.f32 %v4626_v23, %v10418_v58  ;;  %5597 = vmatprep.mubr.f32.mxu1 %v5014_v36  ;;  %5702 = vmatprep.mubr.f32.mxu0 %v5016_v13  ;;  %v7811_v21 = vpack.c.bf16 %v10492_v0, %v10487_v55  ;;  %v10531_v2 = vld [vmem:[%s10963_s10 + $0x628] sm:$0xff]  ;;  %v10536_v36 = vld [vmem:[%s10963_s10 + $0x720] sm:$0xff]  ;;  %v10580_v0 = vld [vmem:[%s10963_s10 + $0x638] sm:$0xff] }
 0xf25   :  { %5598 = vmatmul.mubr.f32.gmra.mrb[132].mxu1 %v5013_v29  ;;  %5703 = vmatmul.mubr.f32.gmra.mrb[136].mxu0 %v5015_v11  ;;  %v4905_v50 = vmax.f32 %v4512_v30, 0.0  ;;  %v4907_v7 = vmax.f32 %v4625_v19, 0.0  ;;  %v10541_v13 = vld [vmem:[%s10963_s10 + $0x728] sm:$0xff]  ;;  %v7781_v54 = vpack.c.bf16 %v10505_v38, %v10500_v52  ;;  %v7813_v31 = vpack.c.bf16 %v5270_v17, %v10512_v6  ;;  %v10549_v29 = vld [vmem:[%s10963_s10 + $0x6b0] sm:$0xff]  ;;  %v10554_v11 = vld [vmem:[%s10963_s10 + $0x6b8] sm:$0xff] }
 0xf26   :  { %v4906_v24 = vmax.f32 %v4514_v60, 0.0  ;;  %v4908_v63 = vmax.f32 %v4627_v40, 0.0  ;;  %v4517_v32 = vpop.f32.mrb[72].mxu1  ;;  %v4630_v47 = vpop.f32.mrb[76].mxu0  ;;  %7740 = vmatpush3.bf16.msra.mxu1 %v7739_v16  ;;  %7772 = vmatpush3.bf16.msra.mxu0 %v7771_v28  ;;  %v10522_v28 = vld [vmem:[%s10963_s10 + $0x620] sm:$0xff]  ;;  %v10561_v60 = vld [vmem:[%s10963_s10 + $0x7b0] sm:$0xff]  ;;  %v7815_v55 = vpack.c.bf16 %v10541_v13, %v10536_v36  ;;  %v7785_v52 = vpack.c.bf16 %v10554_v11, %v10549_v29 }
 0xf27   :  { %v4518_v48 = vadd.f32 %v4517_v32, %v10327_v33  ;;  %v4631_v34 = vadd.f32 %v4630_v47, %v10356_v51  ;;  %v4519_v25 = vpop.f32.mrb[73].mxu1  ;;  %v4632_v41 = vpop.f32.mrb[77].mxu0  ;;  %7774 = vmatprep.subr.bf16.mxu1 %v7773_v18  ;;  %7806 = vmatprep.subr.bf16.mxu0 %v7805_v1  ;;  %v5272_v40 = vld [vmem:[%s10963_s10 + $0x7b8] sm:$0xff]  ;;  %v7783_v46 = vpack.c.bf16 %v10531_v2, %v10522_v28  ;;  %v10629_v13 = vld [vmem:[%s10963_s10 + $0x648] sm:$0xff] }
 0xf28   :  { %v4520_v42 = vadd.f32 %v4519_v25, %v10370_v12  ;;  %v4633_v16 = vadd.f32 %v4632_v41, %v10418_v58  ;;  %5772 = vmatprep.mubr.f32.mxu1 %v4906_v24  ;;  %5877 = vmatprep.mubr.f32.mxu0 %v4908_v63  ;;  %v10585_v24 = vld [vmem:[%s10963_s10 + $0x730] sm:$0xff]  ;;  %v10590_v63 = vld [vmem:[%s10963_s10 + $0x738] sm:$0xff]  ;;  %v7817_v38 = vpack.c.bf16 %v5272_v40, %v10561_v60 }
 0xf29   :  { %5773 = vmatmul.mubr.f32.vlgmr.msra.gmra.mrb[134].mxu1 %v4905_v50  ;;  %5878 = vmatmul.mubr.f32.vlgmr.msra.gmra.mrb[138].mxu0 %v4907_v7  ;;  %v4921_v30 = vmax.f32 %v4518_v48, 0.0  ;;  %v4923_v19 = vmax.f32 %v4631_v34, 0.0  ;;  %v10598_v50 = vld [vmem:[%s10963_s10 + $0x6c0] sm:$0xff]  ;;  %v10603_v7 = vld [vmem:[%s10963_s10 + $0x6c8] sm:$0xff]  ;;  %v7819_v36 = vpack.c.bf16 %v10590_v63, %v10585_v24  ;;  %v10680_v63 = vld [vmem:[%s10963_s10 + $0x658] sm:$0xff] }
 0xf2a   :  { %v4922_v22 = vmax.f32 %v4520_v42, 0.0  ;;  %v4924_v9 = vmax.f32 %v4633_v16, 0.0  ;;  %v4523_v18 = vpop.f32.mrb[74].mxu1  ;;  %v4636_v1 = vpop.f32.mrb[78].mxu0  ;;  %7776 = vmatpush3.bf16.msra.mxu1 %v7775_v15  ;;  %7808 = vmatpush3.bf16.msra.mxu0 %v7807_v45  ;;  %v10571_v45 = vld [vmem:[%s10963_s10 + $0x630] sm:$0xff]  ;;  %v10610_v42 = vld [vmem:[%s10963_s10 + $0x7c0] sm:$0xff]  ;;  %v7789_v29 = vpack.c.bf16 %v10603_v7, %v10598_v50 }
 0xf2b   :  { %v4524_v20 = vadd.f32 %v4523_v18, %v10327_v33  ;;  %v4637_v23 = vadd.f32 %v4636_v1, %v10356_v51  ;;  %v4525_v37 = vpop.f32.mrb[75].mxu1  ;;  %v4638_v53 = vpop.f32.mrb[79].mxu0  ;;  %7778 = vmatprep.subr.bf16.mxu1 %v7777_v39  ;;  %7810 = vmatprep.subr.bf16.mxu0 %v7809_v43  ;;  %v5274_v16 = vld [vmem:[%s10963_s10 + $0x7c8] sm:$0xff]  ;;  %v7787_v2 = vpack.c.bf16 %v10580_v0, %v10571_v45 }
 0xf2c   :  { %v4526_v61 = vadd.f32 %v4525_v37, %v10370_v12  ;;  %v4639_v15 = vadd.f32 %v4638_v53, %v10418_v58  ;;  %5777 = vmatprep.mubr.f32.mxu1 %v4922_v22  ;;  %5882 = vmatprep.mubr.f32.mxu0 %v4924_v9  ;;  %v10634_v22 = vld [vmem:[%s10963_s10 + $0x740] sm:$0xff]  ;;  %v10639_v9 = vld [vmem:[%s10963_s10 + $0x748] sm:$0xff]  ;;  %v7821_v11 = vpack.c.bf16 %v5274_v16, %v10610_v42 }
 0xf2d   :  { %5778 = vmatmul.mubr.f32.gmra.mrb[136].mxu1 %v4921_v30  ;;  %5883 = vmatmul.mubr.f32.gmra.mrb[140].mxu0 %v4923_v19  ;;  %v4937_v48 = vmax.f32 %v4524_v20, 0.0  ;;  %v4939_v34 = vmax.f32 %v4637_v23, 0.0  ;;  %v10647_v30 = vld [vmem:[%s10963_s10 + $0x6d0] sm:$0xff]  ;;  %v10652_v19 = vld [vmem:[%s10963_s10 + $0x6d8] sm:$0xff]  ;;  %v7823_v24 = vpack.c.bf16 %v10639_v9, %v10634_v22  ;;  %v10728_v9 = vrot.slane %v10292_v57, %v3907_v44 }
 0xf2e   :  { %v4938_v32 = vmax.f32 %v4526_v61, 0.0  ;;  %v4940_v47 = vmax.f32 %v4639_v15, 0.0  ;;  %v4529_v39 = vpop.f32.mrb[76].mxu1  ;;  %v4642_v43 = vpop.f32.mrb[80].mxu0  ;;  %7780 = vmatpush3.bf16.msra.mxu1 %v7779_v10  ;;  %7812 = vmatpush3.bf16.msra.mxu0 %v7811_v21  ;;  %v10620_v21 = vld [vmem:[%s10963_s10 + $0x640] sm:$0xff]  ;;  %v10659_v61 = vld [vmem:[%s10963_s10 + $0x7d0] sm:$0xff]  ;;  %v7793_v50 = vpack.c.bf16 %v10652_v19, %v10647_v30 }
 0xf2f   :  { %v4530_v25 = vadd.f32 %v4529_v39, %v10327_v33  ;;  %v4643_v41 = vadd.f32 %v4642_v43, %v10356_v51  ;;  %v4531_v6 = vpop.f32.mrb[77].mxu1  ;;  %v4644_v17 = vpop.f32.mrb[81].mxu0  ;;  %7782 = vmatprep.subr.bf16.mxu1 %v7781_v54  ;;  %7814 = vmatprep.subr.bf16.mxu0 %v7813_v31  ;;  %v10664_v15 = vld [vmem:[%s10963_s10 + $0x7d8] sm:$0xff]  ;;  %v7791_v0 = vpack.c.bf16 %v10629_v13, %v10620_v21 }
 0xf30   :  { %v4532_v28 = vadd.f32 %v4531_v6, %v10370_v12  ;;  %v4645_v10 = vadd.f32 %v4644_v17, %v10418_v58  ;;  %5782 = vmatprep.mubr.f32.mxu1 %v4938_v32  ;;  %5887 = vmatprep.mubr.f32.mxu0 %v4940_v47  ;;  %v10685_v32 = vld [vmem:[%s10963_s10 + $0x750] sm:$0xff]  ;;  %v10690_v47 = vld [vmem:[%s10963_s10 + $0x758] sm:$0xff]  ;;  %v7825_v7 = vpack.c.bf16 %v10664_v15, %v10659_v61 }
 0xf31   :  { %5783 = vmatmul.mubr.f32.gmra.mrb[138].mxu1 %v4937_v48  ;;  %5888 = vmatmul.mubr.f32.gmra.mrb[142].mxu0 %v4939_v34  ;;  %v4953_v20 = vmax.f32 %v4530_v25, 0.0  ;;  %v4955_v23 = vmax.f32 %v4643_v41, 0.0  ;;  %v10699_v48 = vld [vmem:[%s10963_s10 + $0x6e0] sm:$0xff]  ;;  %v10704_v34 = vld [vmem:[%s10963_s10 + $0x6e8] sm:$0xff]  ;;  %v7827_v22 = vpack.c.bf16 %v10690_v47, %v10685_v32  ;;  %v10777_v47 = vrot.slane %v10292_v57, %v3911_v56 }
 0xf32   :  { %v4954_v18 = vmax.f32 %v4532_v28, 0.0  ;;  %v4956_v1 = vmax.f32 %v4645_v10, 0.0  ;;  %v4535_v54 = vpop.f32.mrb[78].mxu1  ;;  %v4648_v31 = vpop.f32.mrb[82].mxu0  ;;  %7784 = vmatpush3.bf16.msra.mxu1 %v7783_v46  ;;  %7816 = vmatpush3.bf16.msra.mxu0 %v7815_v55  ;;  %v10671_v55 = vld [vmem:[%s10963_s10 + $0x650] sm:$0xff]  ;;  %v5277_v28 = vld [vmem:[%s10963_s10 + $0x7e0] sm:$0xff]  ;;  %v7797_v30 = vpack.c.bf16 %v10704_v34, %v10699_v48 }
 0xf33   :  { %v4536_v37 = vadd.f32 %v4535_v54, %v10327_v33  ;;  %v4649_v53 = vadd.f32 %v4648_v31, %v10356_v51  ;;  %v4537_v60 = vpop.f32.mrb[79].mxu1  ;;  %v4650_v40 = vpop.f32.mrb[83].mxu0  ;;  %7786 = vmatprep.subr.bf16.mxu1 %v7785_v52  ;;  %7818 = vmatprep.subr.bf16.mxu0 %v7817_v38  ;;  %v5278_v10 = vld [vmem:[%s10963_s10 + $0x7e8] sm:$0xff]  ;;  %v7795_v13 = vpack.c.bf16 %v10680_v63, %v10671_v55  ;;  %v5232_v48 = vld [vmem:[%s10963_s10 + $0x678] sm:$0xff] }
 0xf34   :  { %v4538_v45 = vadd.f32 %v4537_v60, %v10370_v12  ;;  %v4651_v46 = vadd.f32 %v4650_v40, %v10418_v58  ;;  %5787 = vmatprep.mubr.f32.mxu1 %v4954_v18  ;;  %5892 = vmatprep.mubr.f32.mxu0 %v4956_v1  ;;  %v10733_v18 = vld [vmem:[%s10963_s10 + $0x668] sm:$0xff]  ;;  %v10738_v1 = vld [vmem:[%s10963_s10 + $0x760] sm:$0xff]  ;;  %v7829_v19 = vpack.c.bf16 %v5278_v10, %v5277_v28 }
 0xf35   :  { %5788 = vmatmul.mubr.f32.gmra.mrb[140].mxu1 %v4953_v20  ;;  %5893 = vmatmul.mubr.f32.gmra.mrb[144].mxu0 %v4955_v23  ;;  %v4969_v25 = vmax.f32 %v4536_v37, 0.0  ;;  %v4971_v41 = vmax.f32 %v4649_v53, 0.0  ;;  %v10743_v54 = vld [vmem:[%s10963_s10 + $0x768] sm:$0xff]  ;;  %v10750_v20 = vld [vmem:[%s10963_s10 + $0x6f0] sm:$0xff]  ;;  %v5248_v23 = vld [vmem:[%s10963_s10 + $0x6f8] sm:$0xff] }
 0xf36   :  { %v4970_v39 = vmax.f32 %v4538_v45, 0.0  ;;  %v4972_v43 = vmax.f32 %v4651_v46, 0.0  ;;  %v4541_v52 = vpop.f32.mrb[80].mxu1  ;;  %v4654_v38 = vpop.f32.mrb[84].mxu0  ;;  %7788 = vmatpush3.bf16.msra.mxu1 %v7787_v2  ;;  %7820 = vmatpush3.bf16.msra.mxu0 %v7819_v36  ;;  %v10719_v36 = vld [vmem:[%s10963_s10 + $0x660] sm:$0xff]  ;;  %v5279_v45 = vld [vmem:[%s10963_s10 + $0x7f0] sm:$0xff]  ;;  %v7831_v32 = vpack.c.bf16 %v10743_v54, %v10738_v1 }
 0xf37   :  { %v4542_v6 = vadd.f32 %v4541_v52, %v10327_v33  ;;  %v4655_v17 = vadd.f32 %v4654_v38, %v10356_v51  ;;  %v4543_v42 = vpop.f32.mrb[81].mxu1  ;;  %v4656_v16 = vpop.f32.mrb[85].mxu0  ;;  %7790 = vmatprep.subr.bf16.mxu1 %v7789_v29  ;;  %7822 = vmatprep.subr.bf16.mxu0 %v7821_v11  ;;  %v5280_v46 = vld [vmem:[%s10963_s10 + $0x7f8] sm:$0xff]  ;;  %v7799_v63 = vpack.c.bf16 %v10733_v18, %v10719_v36 }
 0xf38   :  { %v4544_v21 = vadd.f32 %v4543_v42, %v10370_v12  ;;  %v4657_v2 = vadd.f32 %v4656_v16, %v10418_v58  ;;  %5792 = vmatprep.mubr.f32.mxu1 %v4970_v39  ;;  %5897 = vmatprep.mubr.f32.mxu0 %v4972_v43  ;;  %v5263_v42 = vld [vmem:[%s10963_s10 + $0x770] sm:$0xff]  ;;  %v5264_v16 = vld [vmem:[%s10963_s10 + $0x778] sm:$0xff] }
 0xf39   :  { %5793 = vmatmul.mubr.f32.gmra.mrb[142].mxu1 %v4969_v25  ;;  %5898 = vmatmul.mubr.f32.gmra.mrb[146].mxu0 %v4971_v41  ;;  %v4985_v37 = vmax.f32 %v4542_v6, 0.0  ;;  %v4987_v53 = vmax.f32 %v4655_v17, 0.0 }
 0xf3a   :  { %v4986_v31 = vmax.f32 %v4544_v21, 0.0  ;;  %v4988_v29 = vmax.f32 %v4657_v2, 0.0  ;;  %v4547_v11 = vpop.f32.mrb[82].mxu1  ;;  %v4660_v44 = vpop.f32.mrb[86].mxu0  ;;  %7792 = vmatpush3.bf16.msra.mxu1 %v7791_v0  ;;  %7824 = vmatpush3.bf16.msra.mxu0 %v7823_v24  ;;  %v10768_v24 = vrot.slane %v10292_v57, %v3915_v3  ;;  %v7801_v3 = vpack.c.bf16 %v5248_v23, %v10750_v20 }
 0xf3b   :  { %v4548_v60 = vadd.f32 %v4547_v11, %v10327_v33  ;;  %v4661_v40 = vadd.f32 %v4660_v44, %v10356_v51  ;;  %v4549_v61 = vpop.f32.mrb[83].mxu1  ;;  %v4662_v15 = vpop.f32.mrb[87].mxu0  ;;  %7794 = vmatprep.subr.bf16.mxu1 %v7793_v50  ;;  %7826 = vmatprep.subr.bf16.mxu0 %v7825_v7  ;;  %v7833_v50 = vpack.c.bf16 %v5280_v46, %v5279_v45  ;;  %v5231_v7 = vld [vmem:[%s10963_s10 + $0x670] sm:$0xff] }
 0xf3c   :  { %v4550_v55 = vadd.f32 %v4549_v61, %v10370_v12  ;;  %v4663_v0 = vadd.f32 %v4662_v15, %v10418_v58  ;;  %5797 = vmatprep.mubr.f32.mxu1 %v4986_v31  ;;  %5902 = vmatprep.mubr.f32.mxu0 %v4988_v29 }
 0xf3d   :  { %5798 = vmatmul.mubr.f32.gmra.mrb[144].mxu1 %v4985_v37  ;;  %5903 = vmatmul.mubr.f32.gmra.mrb[148].mxu0 %v4987_v53  ;;  %v5001_v34 = vmax.f32 %v4548_v60, 0.0  ;;  %v5003_v56 = vmax.f32 %v4661_v40, 0.0 }
 0xf3e   :  { %v5002_v39 = vmax.f32 %v4550_v55, 0.0  ;;  %v5004_v43 = vmax.f32 %v4663_v0, 0.0  ;;  %v4553_v52 = vpop.f32.mrb[84].mxu1  ;;  %v4666_v38 = vpop.f32.mrb[88].mxu0  ;;  %7796 = vmatpush3.bf16.msra.mxu1 %v7795_v13  ;;  %7828 = vmatpush3.bf16.msra.mxu0 %v7827_v22  ;;  %v7803_v13 = vpack.c.bf16 %v5232_v48, %v5231_v7  ;;  %v7835_v22 = vpack.c.bf16 %v5264_v16, %v5263_v42 }
 0xf3f   :  { %v4554_v25 = vadd.f32 %v4553_v52, %v10327_v33  ;;  %v4667_v41 = vadd.f32 %v4666_v38, %v10356_v51  ;;  %v4555_v6 = vpop.f32.mrb[85].mxu1  ;;  %v4668_v17 = vpop.f32.mrb[89].mxu0  ;;  %7798 = vmatprep.subr.bf16.mxu1 %v7797_v30  ;;  %7830 = vmatprep.subr.bf16.mxu0 %v7829_v19  ;;  %v10799_v33 = vrot.slane %v10292_v57, %v3919_v62 }
 0xf40   :  { %v4556_v28 = vadd.f32 %v4555_v6, %v10370_v12  ;;  %v4669_v10 = vadd.f32 %v4668_v17, %v10418_v58  ;;  %5802 = vmatprep.mubr.f32.mxu1 %v5002_v39  ;;  %5907 = vmatprep.mubr.f32.mxu0 %v5004_v43 }
 0xf41   :  { %5803 = vmatmul.mubr.f32.gmra.mrb[146].mxu1 %v5001_v34  ;;  %5908 = vmatmul.mubr.f32.gmra.mrb[150].mxu0 %v5003_v56  ;;  %v5017_v12 = vmax.f32 %v4554_v25, 0.0  ;;  %v5019_v18 = vmax.f32 %v4667_v41, 0.0 }
 0xf42   :  { %v5018_v51 = vmax.f32 %v4556_v28, 0.0  ;;  %v5020_v21 = vmax.f32 %v4669_v10, 0.0  ;;  %v4737_v2 = vpop.f32.mrb[86].mxu1  ;;  %v4850_v36 = vpop.f32.mrb[90].mxu0  ;;  %7800 = vmatpush3.bf16.msra.mxu1 %v7799_v63  ;;  %7832 = vmatpush3.bf16.msra.mxu0 %v7831_v32 }
 0xf43   :  { %v4738_v58 = vadd.f32 %v4737_v2, %v10728_v9  ;;  %v4851_v1 = vadd.f32 %v4850_v36, %v10768_v24  ;;  %v4739_v35 = vpop.f32.mrb[87].mxu1  ;;  %v4852_v54 = vpop.f32.mrb[91].mxu0  ;;  %7802 = vmatprep.subr.bf16.mxu1 %v7801_v3  ;;  %7834 = vmatprep.subr.bf16.mxu0 %v7833_v50 }
 0xf44   :  { %v4740_v62 = vadd.f32 %v4739_v35, %v10777_v47  ;;  %v4853_v57 = vadd.f32 %v4852_v54, %v10799_v33  ;;  %5807 = vmatprep.mubr.f32.mxu1 %v5018_v51  ;;  %5912 = vmatprep.mubr.f32.mxu0 %v5020_v21 }
 0xf45   :  { %5808 = vmatmul.mubr.f32.gmra.mrb[148].mxu1 %v5017_v12  ;;  %5913 = vmatmul.mubr.f32.gmra.mrb[152].mxu0 %v5019_v18  ;;  %v4909_v30 = vmax.f32 %v4738_v58, 0.0  ;;  %v4911_v19 = vmax.f32 %v4851_v1, 0.0 }
 0xf46   :  { %v4910_v31 = vmax.f32 %v4740_v62, 0.0  ;;  %v4912_v29 = vmax.f32 %v4853_v57, 0.0  ;;  %v4743_v11 = vpop.f32.mrb[88].mxu1  ;;  %v4856_v44 = vpop.f32.mrb[92].mxu0  ;;  %7804 = vmatpush3.bf16.msra.mxu1 %v7803_v13  ;;  %7836 = vmatpush3.bf16.msra.mxu0 %v7835_v22 }
 0xf47   :  { %v4744_v20 = vadd.f32 %v4743_v11, %v10728_v9  ;;  %v4857_v23 = vadd.f32 %v4856_v44, %v10768_v24  ;;  %v4745_v37 = vpop.f32.mrb[89].mxu1  ;;  %v4858_v53 = vpop.f32.mrb[93].mxu0 }
 0xf48   :  { %v4746_v60 = vadd.f32 %v4745_v37, %v10777_v47  ;;  %v4859_v40 = vadd.f32 %v4858_v53, %v10799_v33  ;;  %5982 = vmatprep.mubr.f32.mxu1 %v4910_v31  ;;  %6087 = vmatprep.mubr.f32.mxu0 %v4912_v29 }
 0xf49   :  { %5983 = vmatmul.mubr.f32.vlgmr.msra.gmra.mrb[150].mxu1 %v4909_v30  ;;  %6088 = vmatmul.mubr.f32.vlgmr.msra.gmra.mrb[154].mxu0 %v4911_v19  ;;  %v4925_v55 = vmax.f32 %v4744_v20, 0.0  ;;  %v4927_v0 = vmax.f32 %v4857_v23, 0.0 }
 0xf4a   :  { %v4926_v61 = vmax.f32 %v4746_v60, 0.0  ;;  %v4928_v15 = vmax.f32 %v4859_v40, 0.0  ;;  %v4749_v45 = vpop.f32.mrb[90].mxu1  ;;  %v4862_v46 = vpop.f32.mrb[94].mxu0 }
 0xf4b   :  { %v4750_v63 = vadd.f32 %v4749_v45, %v10728_v9  ;;  %v4863_v32 = vadd.f32 %v4862_v46, %v10768_v24  ;;  %v4751_v39 = vpop.f32.mrb[91].mxu1  ;;  %v4864_v43 = vpop.f32.mrb[95].mxu0 }
 0xf4c   :  { %v4752_v52 = vadd.f32 %v4751_v39, %v10777_v47  ;;  %v4865_v38 = vadd.f32 %v4864_v43, %v10799_v33  ;;  %5987 = vmatprep.mubr.f32.mxu1 %v4926_v61  ;;  %6092 = vmatprep.mubr.f32.mxu0 %v4928_v15 }
 0xf4d   :  { %5988 = vmatmul.mubr.f32.gmra.mrb[152].mxu1 %v4925_v55  ;;  %6093 = vmatmul.mubr.f32.gmra.mrb[156].mxu0 %v4927_v0  ;;  %v4941_v34 = vmax.f32 %v4750_v63, 0.0  ;;  %v4943_v56 = vmax.f32 %v4863_v32, 0.0 }
 0xf4e   :  { %v4942_v3 = vmax.f32 %v4752_v52, 0.0  ;;  %v4944_v50 = vmax.f32 %v4865_v38, 0.0  ;;  %v4755_v7 = vpop.f32.mrb[92].mxu1  ;;  %v4868_v48 = vpop.f32.mrb[96].mxu0 }
 0xf4f   :  { %v4756_v25 = vadd.f32 %v4755_v7, %v10728_v9  ;;  %v4869_v41 = vadd.f32 %v4868_v48, %v10768_v24  ;;  %v4757_v6 = vpop.f32.mrb[93].mxu1  ;;  %v4870_v17 = vpop.f32.mrb[97].mxu0 }
 0xf50   :  { %v4758_v42 = vadd.f32 %v4757_v6, %v10777_v47  ;;  %v4871_v16 = vadd.f32 %v4870_v17, %v10799_v33  ;;  %5992 = vmatprep.mubr.f32.mxu1 %v4942_v3  ;;  %6097 = vmatprep.mubr.f32.mxu0 %v4944_v50 }
 0xf51   :  { %5993 = vmatmul.mubr.f32.gmra.mrb[154].mxu1 %v4941_v34  ;;  %6098 = vmatmul.mubr.f32.gmra.mrb[158].mxu0 %v4943_v56  ;;  %v4957_v2 = vmax.f32 %v4756_v25, 0.0  ;;  %v4959_v36 = vmax.f32 %v4869_v41, 0.0 }
 0xf52   :  { %v4958_v28 = vmax.f32 %v4758_v42, 0.0  ;;  %v4960_v10 = vmax.f32 %v4871_v16, 0.0  ;;  %v4761_v51 = vpop.f32.mrb[94].mxu1  ;;  %v4874_v21 = vpop.f32.mrb[98].mxu0 }
 0xf53   :  { %v4762_v13 = vadd.f32 %v4761_v51, %v10728_v9  ;;  %v4875_v22 = vadd.f32 %v4874_v21, %v10768_v24  ;;  %v4763_v12 = vpop.f32.mrb[95].mxu1  ;;  %v4876_v18 = vpop.f32.mrb[99].mxu0 }
 0xf54   :  { %v4764_v58 = vadd.f32 %v4763_v12, %v10777_v47  ;;  %v4877_v1 = vadd.f32 %v4876_v18, %v10799_v33  ;;  %5997 = vmatprep.mubr.f32.mxu1 %v4958_v28  ;;  %6102 = vmatprep.mubr.f32.mxu0 %v4960_v10 }
 0xf55   :  { %5998 = vmatmul.mubr.f32.gmra.mrb[156].mxu1 %v4957_v2  ;;  %6103 = vmatmul.mubr.f32.gmra.mrb[160].mxu0 %v4959_v36  ;;  %v4973_v31 = vmax.f32 %v4762_v13, 0.0  ;;  %v4975_v29 = vmax.f32 %v4875_v22, 0.0 }
 0xf56   :  { %v4974_v35 = vmax.f32 %v4764_v58, 0.0  ;;  %v4976_v54 = vmax.f32 %v4877_v1, 0.0  ;;  %v4767_v62 = vpop.f32.mrb[96].mxu1  ;;  %v4880_v57 = vpop.f32.mrb[100].mxu0 }
 0xf57   :  { %v4768_v11 = vadd.f32 %v4767_v62, %v10728_v9  ;;  %v4881_v44 = vadd.f32 %v4880_v57, %v10768_v24  ;;  %v4769_v30 = vpop.f32.mrb[97].mxu1  ;;  %v4882_v19 = vpop.f32.mrb[101].mxu0 }
 0xf58   :  { %v4770_v20 = vadd.f32 %v4769_v30, %v10777_v47  ;;  %v4883_v23 = vadd.f32 %v4882_v19, %v10799_v33  ;;  %6002 = vmatprep.mubr.f32.mxu1 %v4974_v35  ;;  %6107 = vmatprep.mubr.f32.mxu0 %v4976_v54 }
 0xf59   :  { %6003 = vmatmul.mubr.f32.gmra.mrb[158].mxu1 %v4973_v31  ;;  %6108 = vmatmul.mubr.f32.gmra.mrb[162].mxu0 %v4975_v29  ;;  %v4989_v61 = vmax.f32 %v4768_v11, 0.0  ;;  %v4991_v15 = vmax.f32 %v4881_v44, 0.0 }
 0xf5a   :  { %v4990_v37 = vmax.f32 %v4770_v20, 0.0  ;;  %v4992_v53 = vmax.f32 %v4883_v23, 0.0  ;;  %v4773_v60 = vpop.f32.mrb[98].mxu1  ;;  %v4886_v40 = vpop.f32.mrb[102].mxu0 }
 0xf5b   :  { %v4774_v45 = vadd.f32 %v4773_v60, %v10728_v9  ;;  %v4887_v46 = vadd.f32 %v4886_v40, %v10768_v24  ;;  %v4775_v55 = vpop.f32.mrb[99].mxu1  ;;  %v4888_v0 = vpop.f32.mrb[103].mxu0 }
 0xf5c   :  { %v4776_v63 = vadd.f32 %v4775_v55, %v10777_v47  ;;  %v4889_v32 = vadd.f32 %v4888_v0, %v10799_v33  ;;  %6007 = vmatprep.mubr.f32.mxu1 %v4990_v37  ;;  %6112 = vmatprep.mubr.f32.mxu0 %v4992_v53 }
 0xf5d   :  { %6008 = vmatmul.mubr.f32.gmra.mrb[160].mxu1 %v4989_v61  ;;  %6113 = vmatmul.mubr.f32.gmra.mrb[164].mxu0 %v4991_v15  ;;  %v5005_v3 = vmax.f32 %v4774_v45, 0.0  ;;  %v5007_v50 = vmax.f32 %v4887_v46, 0.0 }
 0xf5e   :  { %v5006_v39 = vmax.f32 %v4776_v63, 0.0  ;;  %v5008_v43 = vmax.f32 %v4889_v32, 0.0  ;;  %v4779_v52 = vpop.f32.mrb[100].mxu1  ;;  %v4892_v38 = vpop.f32.mrb[104].mxu0 }
 0xf5f   :  { %v4780_v7 = vadd.f32 %v4779_v52, %v10728_v9  ;;  %v4893_v48 = vadd.f32 %v4892_v38, %v10768_v24  ;;  %v4781_v34 = vpop.f32.mrb[101].mxu1  ;;  %v4894_v56 = vpop.f32.mrb[105].mxu0 }
 0xf60   :  { %v4782_v25 = vadd.f32 %v4781_v34, %v10777_v47  ;;  %v4895_v41 = vadd.f32 %v4894_v56, %v10799_v33  ;;  %6012 = vmatprep.mubr.f32.mxu1 %v5006_v39  ;;  %6117 = vmatprep.mubr.f32.mxu0 %v5008_v43  ;;  %v6474_v47 = vld [vmem:[%s10964_s11] ss:$0 sm:$0xff] }
 0xf61   :  { %6013 = vmatmul.mubr.f32.gmra.mrb[162].mxu1 %v5005_v3  ;;  %6118 = vmatmul.mubr.f32.gmra.mrb[166].mxu0 %v5007_v50  ;;  %v5021_v42 = vmax.f32 %v4780_v7, 0.0  ;;  %v5023_v16 = vmax.f32 %v4893_v48, 0.0 }
 0xf62   :  { %v5022_v6 = vmax.f32 %v4782_v25, 0.0  ;;  %v5024_v17 = vmax.f32 %v4895_v41, 0.0 }
 0xf64   :  { %6017 = vmatprep.mubr.f32.mxu1 %v5022_v6  ;;  %6122 = vmatprep.mubr.f32.mxu0 %v5024_v17 }
 0xf65   :  { %6018 = vmatmul.mubr.f32.gmra.mrb[164].mxu1 %v5021_v42  ;;  %6123 = vmatmul.mubr.f32.gmra.mrb[168].mxu0 %v5023_v16 }
 0xf81   :  { %v6661_v9 = vpop.f32.mrb[102].mxu1  ;;  %v6717_v24 = vpop.f32.mrb[106].mxu0 }
 0xf82   :  { %v6662_v28 = vpop.f32.mrb[103].mxu1  ;;  %v6718_v33 = vpop.f32.mrb[107].mxu0 }
 0xf83   :  { %v6663_v10 = vadd.f32 %v6662_v28, %v6661_v9  ;;  %v6719_v51 = vadd.f32 %v6718_v33, %v6717_v24 }
 0xf85   :  { %v5355_v21 = vadd.f32 %v6663_v10, %v6474_v47  ;;  %v6664_v2 = vpop.f32.mrb[104].mxu1  ;;  %v6720_v36 = vpop.f32.mrb[108].mxu0 }
 0xf86   :  { %v6665_v13 = vpop.f32.mrb[105].mxu1  ;;  %v6721_v22 = vpop.f32.mrb[109].mxu0 }
 0xf87   :  { %v5460_v12 = vadd.f32 %v6719_v51, %v5355_v21  ;;  %v6666_v18 = vadd.f32 %v6665_v13, %v6664_v2  ;;  %v6722_v58 = vadd.f32 %v6721_v22, %v6720_v36 }
 0xf89   :  { %v5360_v1 = vadd.f32 %v6666_v18, %v6474_v47 }
 0xf8b   :  { %v10836_v35 = vadd.f32 %v6722_v58, %v5360_v1 }
 0xfc4   :  { %v6667_v54 = vpop.f32.mrb[106].mxu1  ;;  %v6723_v62 = vpop.f32.mrb[110].mxu0 }
 0xfc5   :  { %v6668_v57 = vpop.f32.mrb[107].mxu1  ;;  %v6724_v31 = vpop.f32.mrb[111].mxu0 }
 0xfc6   :  { %v6669_v29 = vadd.f32 %v6668_v57, %v6667_v54  ;;  %v6725_v11 = vadd.f32 %v6724_v31, %v6723_v62 }
 0xfc8   :  { %v5365_v44 = vadd.f32 %v6669_v29, %v6474_v47  ;;  %v6670_v30 = vpop.f32.mrb[108].mxu1  ;;  %v6726_v19 = vpop.f32.mrb[112].mxu0 }
 0xfc9   :  { %v6671_v20 = vpop.f32.mrb[109].mxu1  ;;  %v6727_v23 = vpop.f32.mrb[113].mxu0 }
 0xfca   :  { %v5470_v37 = vadd.f32 %v6725_v11, %v5365_v44  ;;  %v6672_v53 = vadd.f32 %v6671_v20, %v6670_v30  ;;  %v6728_v60 = vadd.f32 %v6727_v23, %v6726_v19 }
 0xfcc   :  { %v5370_v40 = vadd.f32 %v6672_v53, %v6474_v47  ;;  %v6673_v61 = vpop.f32.mrb[110].mxu1  ;;  %v6729_v15 = vpop.f32.mrb[114].mxu0 }
 0xfcd   :  { %v6674_v45 = vpop.f32.mrb[111].mxu1  ;;  %v6730_v46 = vpop.f32.mrb[115].mxu0 }
 0xfce   :  { %v5475_v55 = vadd.f32 %v6728_v60, %v5370_v40  ;;  %v6675_v0 = vadd.f32 %v6674_v45, %v6673_v61  ;;  %v6731_v63 = vadd.f32 %v6730_v46, %v6729_v15 }
 0xfd0   :  { %v5375_v32 = vadd.f32 %v6675_v0, %v6474_v47  ;;  %v6676_v39 = vpop.f32.mrb[112].mxu1  ;;  %v6732_v43 = vpop.f32.mrb[116].mxu0 }
 0xfd1   :  { %v6677_v52 = vpop.f32.mrb[113].mxu1  ;;  %v6733_v38 = vpop.f32.mrb[117].mxu0 }
 0xfd2   :  { %v5480_v3 = vadd.f32 %v6731_v63, %v5375_v32  ;;  %v6678_v50 = vadd.f32 %v6677_v52, %v6676_v39  ;;  %v6734_v7 = vadd.f32 %v6733_v38, %v6732_v43 }
 0xfd4   :  { %v5380_v48 = vadd.f32 %v6678_v50, %v6474_v47  ;;  %v6679_v34 = vpop.f32.mrb[114].mxu1  ;;  %v6735_v56 = vpop.f32.mrb[118].mxu0 }
 0xfd5   :  { %v6680_v25 = vpop.f32.mrb[115].mxu1  ;;  %v6736_v41 = vpop.f32.mrb[119].mxu0 }
 0xfd6   :  { %v5485_v6 = vadd.f32 %v6734_v7, %v5380_v48  ;;  %v6681_v17 = vadd.f32 %v6680_v25, %v6679_v34  ;;  %v6737_v42 = vadd.f32 %v6736_v41, %v6735_v56 }
 0xfd8   :  { %v5385_v16 = vadd.f32 %v6681_v17, %v6474_v47  ;;  %v6682_v9 = vpop.f32.mrb[116].mxu1  ;;  %v6738_v24 = vpop.f32.mrb[120].mxu0 }
 0xfd9   :  { %v6683_v28 = vpop.f32.mrb[117].mxu1  ;;  %v6739_v33 = vpop.f32.mrb[121].mxu0 }
 0xfda   :  { %v5490_v10 = vadd.f32 %v6737_v42, %v5385_v16  ;;  %v6684_v51 = vadd.f32 %v6683_v28, %v6682_v9  ;;  %v6740_v21 = vadd.f32 %v6739_v33, %v6738_v24 }
 0xfdc   :  { %v5390_v2 = vadd.f32 %v6684_v51, %v6474_v47  ;;  %v6773_v36 = vpop.f32.mrb[118].mxu1  ;;  %v6829_v13 = vpop.f32.mrb[122].mxu0 }
 0xfdd   :  { %v6774_v22 = vpop.f32.mrb[119].mxu1  ;;  %v6830_v18 = vpop.f32.mrb[123].mxu0 }
 0xfde   :  { %v5495_v58 = vadd.f32 %v6740_v21, %v5390_v2  ;;  %v6775_v1 = vadd.f32 %v6774_v22, %v6773_v36  ;;  %v6831_v54 = vadd.f32 %v6830_v18, %v6829_v13 }
 0xfe0   :  { %v5565_v62 = vadd.f32 %v6775_v1, %v5460_v12  ;;  %v6776_v57 = vpop.f32.mrb[120].mxu1  ;;  %v6832_v31 = vpop.f32.mrb[124].mxu0 }
 0xfe1   :  { %v6777_v29 = vpop.f32.mrb[121].mxu1  ;;  %v6833_v11 = vpop.f32.mrb[125].mxu0 }
 0xfe2   :  { %v5670_v44 = vadd.f32 %v6831_v54, %v5565_v62  ;;  %v6778_v30 = vadd.f32 %v6777_v29, %v6776_v57  ;;  %v6834_v19 = vadd.f32 %v6833_v11, %v6832_v31 }
 0xfe4   :  { %v5570_v20 = vadd.f32 %v6778_v30, %v10836_v35  ;;  %v6779_v23 = vpop.f32.mrb[122].mxu1  ;;  %v6835_v53 = vpop.f32.mrb[126].mxu0 }
 0xfe5   :  { %v6780_v47 = vpop.f32.mrb[123].mxu1  ;;  %v6836_v60 = vpop.f32.mrb[127].mxu0 }
 0xfe6   :  { %v5675_v40 = vadd.f32 %v6834_v19, %v5570_v20  ;;  %v6781_v61 = vadd.f32 %v6780_v47, %v6779_v23  ;;  %v6837_v15 = vadd.f32 %v6836_v60, %v6835_v53 }
 0xfe8   :  { %v5575_v45 = vadd.f32 %v6781_v61, %v5470_v37  ;;  %v6782_v46 = vpop.f32.mrb[124].mxu1  ;;  %v6838_v0 = vpop.f32.mrb[128].mxu0 }
 0xfe9   :  { %v6783_v12 = vpop.f32.mrb[125].mxu1  ;;  %v6839_v63 = vpop.f32.mrb[129].mxu0 }
 0xfea   :  { %v5680_v32 = vadd.f32 %v6837_v15, %v5575_v45  ;;  %v6784_v39 = vadd.f32 %v6783_v12, %v6782_v46  ;;  %v6840_v43 = vadd.f32 %v6839_v63, %v6838_v0 }
 0xfec   :  { %v5580_v52 = vadd.f32 %v6784_v39, %v5475_v55  ;;  %v6785_v38 = vpop.f32.mrb[126].mxu1  ;;  %v6841_v50 = vpop.f32.mrb[130].mxu0 }
 0xfed   :  { %v6786_v7 = vpop.f32.mrb[127].mxu1  ;;  %v6842_v35 = vpop.f32.mrb[131].mxu0 }
 0xfee   :  { %v5685_v48 = vadd.f32 %v6840_v43, %v5580_v52  ;;  %v6787_v34 = vadd.f32 %v6786_v7, %v6785_v38  ;;  %v6843_v56 = vadd.f32 %v6842_v35, %v6841_v50 }
 0xff0   :  { %v5585_v25 = vadd.f32 %v6787_v34, %v5480_v3  ;;  %v6788_v41 = vpop.f32.mrb[128].mxu1  ;;  %v6844_v17 = vpop.f32.mrb[132].mxu0 }
 0xff1   :  { %v6789_v42 = vpop.f32.mrb[129].mxu1  ;;  %v6845_v37 = vpop.f32.mrb[133].mxu0 }
 0xff2   :  { %v5690_v16 = vadd.f32 %v6843_v56, %v5585_v25  ;;  %v6790_v9 = vadd.f32 %v6789_v42, %v6788_v41  ;;  %v6846_v24 = vadd.f32 %v6845_v37, %v6844_v17 }
 0xff4   :  { %v5590_v28 = vadd.f32 %v6790_v9, %v5485_v6  ;;  %v6791_v33 = vpop.f32.mrb[130].mxu1  ;;  %v6847_v51 = vpop.f32.mrb[134].mxu0 }
 0xff5   :  { %v6792_v21 = vpop.f32.mrb[131].mxu1  ;;  %v6848_v55 = vpop.f32.mrb[135].mxu0 }
 0xff6   :  { %v5695_v2 = vadd.f32 %v6846_v24, %v5590_v28  ;;  %v6793_v36 = vadd.f32 %v6792_v21, %v6791_v33  ;;  %v6849_v13 = vadd.f32 %v6848_v55, %v6847_v51 }
 0xff8   :  { %v5595_v22 = vadd.f32 %v6793_v36, %v5490_v10  ;;  %v6794_v18 = vpop.f32.mrb[132].mxu1  ;;  %v6850_v1 = vpop.f32.mrb[136].mxu0 }
 0xff9   :  { %v6795_v54 = vpop.f32.mrb[133].mxu1  ;;  %v6851_v3 = vpop.f32.mrb[137].mxu0 }
 0xffa   :  { %v5700_v62 = vadd.f32 %v6849_v13, %v5595_v22  ;;  %v6796_v57 = vadd.f32 %v6795_v54, %v6794_v18  ;;  %v6852_v31 = vadd.f32 %v6851_v3, %v6850_v1 }
 0xffc   :  { %v5600_v29 = vadd.f32 %v6796_v57, %v5495_v58  ;;  %v6885_v11 = vpop.f32.mrb[134].mxu1  ;;  %v6941_v30 = vpop.f32.mrb[138].mxu0 }
 0xffd   :  { %v6886_v19 = vpop.f32.mrb[135].mxu1  ;;  %v6942_v6 = vpop.f32.mrb[139].mxu0 }
 0xffe   :  { %v5705_v20 = vadd.f32 %v6852_v31, %v5600_v29  ;;  %v6887_v23 = vadd.f32 %v6886_v19, %v6885_v11  ;;  %v6943_v53 = vadd.f32 %v6942_v6, %v6941_v30 }
0x1000   :  { %v5775_v47 = vadd.f32 %v6887_v23, %v5670_v44  ;;  %v6888_v60 = vpop.f32.mrb[136].mxu1  ;;  %v6944_v61 = vpop.f32.mrb[140].mxu0 }
0x1001   :  { %v6889_v15 = vpop.f32.mrb[137].mxu1  ;;  %v6945_v10 = vpop.f32.mrb[141].mxu0 }
0x1002   :  { %v5880_v45 = vadd.f32 %v6943_v53, %v5775_v47  ;;  %v6890_v46 = vadd.f32 %v6889_v15, %v6888_v60  ;;  %v6946_v0 = vadd.f32 %v6945_v10, %v6944_v61 }
0x1004   :  { %v5780_v12 = vadd.f32 %v6890_v46, %v5675_v40  ;;  %v6891_v63 = vpop.f32.mrb[138].mxu1  ;;  %v6947_v39 = vpop.f32.mrb[142].mxu0 }
0x1005   :  { %v6892_v43 = vpop.f32.mrb[139].mxu1  ;;  %v6948_v58 = vpop.f32.mrb[143].mxu0 }
0x1006   :  { %v5885_v52 = vadd.f32 %v6946_v0, %v5780_v12  ;;  %v6893_v38 = vadd.f32 %v6892_v43, %v6891_v63  ;;  %v6949_v50 = vadd.f32 %v6948_v58, %v6947_v39 }
0x1008   :  { %v5785_v7 = vadd.f32 %v6893_v38, %v5680_v32  ;;  %v6894_v35 = vpop.f32.mrb[140].mxu1  ;;  %v6950_v34 = vpop.f32.mrb[144].mxu0 }
0x1009   :  { %v6895_v56 = vpop.f32.mrb[141].mxu1  ;;  %v6951_v44 = vpop.f32.mrb[145].mxu0 }
0x100a   :  { %v5890_v25 = vadd.f32 %v6949_v50, %v5785_v7  ;;  %v6896_v41 = vadd.f32 %v6895_v56, %v6894_v35  ;;  %v6952_v17 = vadd.f32 %v6951_v44, %v6950_v34 }
0x100c   :  { %v5790_v42 = vadd.f32 %v6896_v41, %v5685_v48  ;;  %v6897_v37 = vpop.f32.mrb[142].mxu1  ;;  %v6953_v9 = vpop.f32.mrb[146].mxu0 }
0x100d   :  { %v6898_v24 = vpop.f32.mrb[143].mxu1  ;;  %v6954_v40 = vpop.f32.mrb[147].mxu0 }
0x100e   :  { %v10839_v28 = vadd.f32 %v6952_v17, %v5790_v42  ;;  %v6899_v33 = vadd.f32 %v6898_v24, %v6897_v37  ;;  %v6955_v51 = vadd.f32 %v6954_v40, %v6953_v9 }
0x1010   :  { %v5795_v21 = vadd.f32 %v6899_v33, %v5690_v16  ;;  %v6900_v55 = vpop.f32.mrb[144].mxu1  ;;  %v6956_v36 = vpop.f32.mrb[148].mxu0 }
0x1011   :  { %v6901_v32 = vpop.f32.mrb[145].mxu1  ;;  %v6957_v13 = vpop.f32.mrb[149].mxu0 }
0x1012   :  { %v10841_v22 = vadd.f32 %v6955_v51, %v5795_v21  ;;  %v6902_v18 = vadd.f32 %v6901_v32, %v6900_v55  ;;  %v6958_v1 = vadd.f32 %v6957_v13, %v6956_v36 }
0x1014   :  { %v5800_v54 = vadd.f32 %v6902_v18, %v5695_v2  ;;  %v6903_v3 = vpop.f32.mrb[146].mxu1  ;;  %v6959_v48 = vpop.f32.mrb[150].mxu0 }
0x1015   :  { %v6904_v57 = vpop.f32.mrb[147].mxu1  ;;  %v6960_v31 = vpop.f32.mrb[151].mxu0 }
0x1016   :  { %v10843_v29 = vadd.f32 %v6958_v1, %v5800_v54  ;;  %v6905_v11 = vadd.f32 %v6904_v57, %v6903_v3  ;;  %v6961_v30 = vadd.f32 %v6960_v31, %v6959_v48 }
0x1018   :  { %v5805_v19 = vadd.f32 %v6905_v11, %v5700_v62  ;;  %v6906_v6 = vpop.f32.mrb[148].mxu1  ;;  %v6962_v16 = vpop.f32.mrb[152].mxu0 }
0x1019   :  { %v6907_v23 = vpop.f32.mrb[149].mxu1  ;;  %v6963_v53 = vpop.f32.mrb[153].mxu0 }
0x101a   :  { %v10845_v47 = vadd.f32 %v6961_v30, %v5805_v19  ;;  %v6908_v60 = vadd.f32 %v6907_v23, %v6906_v6  ;;  %v6964_v61 = vadd.f32 %v6963_v53, %v6962_v16 }
0x101c   :  { %v5810_v15 = vadd.f32 %v6908_v60, %v5705_v20  ;;  %v6997_v10 = vpop.f32.mrb[150].mxu1  ;;  %v7053_v2 = vpop.f32.mrb[154].mxu0 }
0x101d   :  { %v6998_v46 = vpop.f32.mrb[151].mxu1  ;;  %v7054_v0 = vpop.f32.mrb[155].mxu0 }
0x101e   :  { %v10847_v12 = vadd.f32 %v6964_v61, %v5810_v15  ;;  %v6999_v63 = vadd.f32 %v6998_v46, %v6997_v10  ;;  %v7055_v39 = vadd.f32 %v7054_v0, %v7053_v2 }
0x1020   :  { %v5985_v43 = vadd.f32 %v6999_v63, %v5880_v45  ;;  %v7000_v58 = vpop.f32.mrb[152].mxu1  ;;  %v7056_v62 = vpop.f32.mrb[156].mxu0 }
0x1021   :  { %v7001_v38 = vpop.f32.mrb[153].mxu1  ;;  %v7057_v50 = vpop.f32.mrb[157].mxu0 }
0x1022   :  { %v6090_v7 = vadd.f32 %v7055_v39, %v5985_v43  ;;  %v7002_v35 = vadd.f32 %v7001_v38, %v7000_v58  ;;  %v7058_v34 = vadd.f32 %v7057_v50, %v7056_v62 }
0x1024   :  { %v5990_v56 = vadd.f32 %v7002_v35, %v5885_v52  ;;  %v7003_v44 = vpop.f32.mrb[154].mxu1  ;;  %v7059_v41 = vpop.f32.mrb[158].mxu0  ;;  %v10850_v20 = vadd.f32 %v6090_v7, %v9192_v59 }
0x1025   :  { %v7004_v17 = vpop.f32.mrb[155].mxu1  ;;  %v7060_v42 = vpop.f32.mrb[159].mxu0 }
0x1026   :  { %v6095_v37 = vadd.f32 %v7058_v34, %v5990_v56  ;;  %v7005_v9 = vadd.f32 %v7004_v17, %v7003_v44  ;;  %v7061_v24 = vadd.f32 %v7060_v42, %v7059_v41  ;;  %v6138_v45 = vsel %vm77_vm0, %v10850_v20, 0.0 }
0x1027   :  { %6139 = vadd.xlane.f32.xlu1 %v6138_v45 }
0x1028   :  { %v5995_v40 = vadd.f32 %v7005_v9, %v5890_v25  ;;  %v7006_v33 = vpop.f32.mrb[156].mxu1  ;;  %v7062_v51 = vpop.f32.mrb[160].mxu0  ;;  %v10855_v21 = vadd.f32 %v6095_v37, %v9225_v8 }
0x1029   :  { %v7007_v52 = vpop.f32.mrb[157].mxu1  ;;  %v7063_v55 = vpop.f32.mrb[161].mxu0 }
0x102a   :  { %v6100_v36 = vadd.f32 %v7061_v24, %v5995_v40  ;;  %v7008_v59 = vadd.f32 %v7007_v52, %v7006_v33  ;;  %v7064_v32 = vadd.f32 %v7063_v55, %v7062_v51  ;;  %v6141_v13 = vsel %vm77_vm0, %v10855_v21, 0.0 }
0x102b   :  { %6142 = vadd.xlane.f32.xlu0 %v6141_v13 }
0x102c   :  { %v6000_v18 = vadd.f32 %v7008_v59, %v10839_v28  ;;  %v7009_v1 = vpop.f32.mrb[158].mxu1  ;;  %v7065_v54 = vpop.f32.mrb[162].mxu0  ;;  %v6130_v25 = vadd.f32 %v6100_v36, %v9236_v5 }
0x102d   :  { %v7010_v3 = vpop.f32.mrb[159].mxu1  ;;  %v7066_v48 = vpop.f32.mrb[163].mxu0 }
0x102e   :  { %v6105_v57 = vadd.f32 %v7064_v32, %v6000_v18  ;;  %v7011_v8 = vadd.f32 %v7010_v3, %v7009_v1  ;;  %v7067_v31 = vadd.f32 %v7066_v48, %v7065_v54  ;;  %v6144_v11 = vsel %vm77_vm0, %v6130_v25, 0.0 }
0x102f   :  { %6145 = vadd.xlane.f32.xlu1 %v6144_v11 }
0x1030   :  { %v6005_v30 = vadd.f32 %v7011_v8, %v10841_v22  ;;  %v7012_v19 = vpop.f32.mrb[160].mxu1  ;;  %v7068_v6 = vpop.f32.mrb[164].mxu0  ;;  %v6131_v16 = vadd.f32 %v6105_v57, %v9247_v4 }
0x1031   :  { %v7013_v23 = vpop.f32.mrb[161].mxu1  ;;  %v7069_v28 = vpop.f32.mrb[165].mxu0 }
0x1032   :  { %v6110_v53 = vadd.f32 %v7067_v31, %v6005_v30  ;;  %v7014_v60 = vadd.f32 %v7013_v23, %v7012_v19  ;;  %v7070_v61 = vadd.f32 %v7069_v28, %v7068_v6  ;;  %v6147_v5 = vsel %vm77_vm0, %v6131_v16, 0.0 }
0x1033   :  { %6148 = vadd.xlane.f32.xlu0 %v6147_v5 }
0x1034   :  { %v6010_v15 = vadd.f32 %v7014_v60, %v10843_v29  ;;  %v7015_v10 = vpop.f32.mrb[162].mxu1  ;;  %v7071_v2 = vpop.f32.mrb[166].mxu0  ;;  %v6132_v46 = vadd.f32 %v6110_v53, %v9259_v14 }
0x1035   :  { %v7016_v0 = vpop.f32.mrb[163].mxu1  ;;  %v7072_v22 = vpop.f32.mrb[167].mxu0 }
0x1036   :  { %v6115_v63 = vadd.f32 %v7070_v61, %v6010_v15  ;;  %v7017_v39 = vadd.f32 %v7016_v0, %v7015_v10  ;;  %v7073_v43 = vadd.f32 %v7072_v22, %v7071_v2  ;;  %v6150_v4 = vsel %vm77_vm0, %v6132_v46, 0.0 }
0x1037   :  { %6151 = vadd.xlane.f32.xlu1 %v6150_v4 }
0x1038   :  { %v6015_v58 = vadd.f32 %v7017_v39, %v10845_v47  ;;  %v7018_v62 = vpop.f32.mrb[164].mxu1  ;;  %v7074_v38 = vpop.f32.mrb[168].mxu0  ;;  %v6133_v50 = vadd.f32 %v6115_v63, %v9269_v49 }
0x1039   :  { %v7019_v7 = vpop.f32.mrb[165].mxu1  ;;  %v7075_v29 = vpop.f32.mrb[169].mxu0 }
0x103a   :  { %v6120_v35 = vadd.f32 %v7073_v43, %v6015_v58  ;;  %v7020_v34 = vadd.f32 %v7019_v7, %v7018_v62  ;;  %v7076_v56 = vadd.f32 %v7075_v29, %v7074_v38  ;;  %v6153_v14 = vsel %vm77_vm0, %v6133_v50, 0.0  ;;  %v6475_v7 = vld [vmem:[%s10965_s12] ss:$0 sm:$0xff]  ;;  %s8217_s12 = smov [#allocation2]  }
0x103b   :  { %6154 = vadd.xlane.f32.xlu0 %v6153_v14 }
0x103c   :  { %v6020_v44 = vadd.f32 %v7020_v34, %v10847_v12  ;;  %v6134_v41 = vadd.f32 %v6120_v35, %v9282_v26 }
0x103e   :  { %v6125_v17 = vadd.f32 %v7076_v56, %v6020_v44  ;;  %v6156_v42 = vsel %vm77_vm0, %v6134_v41, 0.0  ;;  %v6476_v56 = vld [vmem:[%s10966_s13] ss:$0 sm:$0xff]  ;;  %s6283_s13 = sshll.u32 %s8217_s12, 4  ;;  %s6284_s13 = int_to_ptr.vmem [resolvable:$true] %s6283_s13 }
0x103f   :  { %6157 = vadd.xlane.f32.xlu1 %v6156_v42  ;;  %s8178_s30 = scalar_lea.vmem %s6284_s13, 1024  ;;  %p8183_p1 = scmp.lt.s32.totalorder %s6284_s13, %s6284_s13 }
0x1040   :  { %v6135_v47 = vadd.f32 %v6125_v17, %v9291_v27  ;;  %p8179_p0 = scmp.ne.s32.totalorder %s6284_s13, %s8178_s30  ;;  %p8184_p2 = scmp.lt.s32.totalorder %s8178_s30, %s8178_s30 }
0x1042   :  { %v6159_v49 = vsel %vm77_vm0, %v6135_v47, 0.0  ;;  %p8185_p3 = por %p8184_p2, %p8183_p1 }
0x1043   :  { %6160 = vadd.xlane.f32.xlu0 %v6159_v49 }
0x1044   :  { %p8186_p4 = pnand %p8185_p3, %p8179_p0 }
0x10b4   :  { %v6140_v37 = vpop.xlane.xlu1 %6139 }
0x10b5   :  { %v6162_v9 = vmul.f32 0.03125, %v6140_v37 }
0x10b7   :  { %v10877_v24 = vsub.f32 %v10850_v20, %v6162_v9 }
0x10b8   :  { %v6143_v45 = vpop.xlane.xlu0 %6142 }
0x10b9   :  { %v6163_v40 = vmul.f32 0.03125, %v6143_v45  ;;  %v6178_v12 = vmul.f32 %v10877_v24, %v10877_v24 }
0x10bb   :  { %v10882_v26 = vsub.f32 %v10855_v21, %v6163_v40  ;;  %v6186_v33 = vsel %vm77_vm0, %v6178_v12, 0.0 }
0x10bc   :  { %6187 = vadd.xlane.f32.xlu1 %v6186_v33  ;;  %v6146_v27 = vpop.xlane.xlu1 %6145 }
0x10bd   :  { %v6164_v51 = vmul.f32 0.03125, %v6146_v27  ;;  %v6179_v52 = vmul.f32 %v10882_v26, %v10882_v26 }
0x10bf   :  { %v10887_v55 = vsub.f32 %v6130_v25, %v6164_v51  ;;  %v6189_v20 = vsel %vm77_vm0, %v6179_v52, 0.0 }
0x10c0   :  { %v6149_v36 = vpop.xlane.xlu0 %6148  ;;  %6190 = vadd.xlane.f32.xlu0 %v6189_v20 }
0x10c1   :  { %v6165_v59 = vmul.f32 0.03125, %v6149_v36  ;;  %v6180_v32 = vmul.f32 %v10887_v55, %v10887_v55 }
0x10c3   :  { %v10892_v21 = vsub.f32 %v6131_v16, %v6165_v59  ;;  %v6192_v13 = vsel %vm77_vm0, %v6180_v32, 0.0 }
0x10c4   :  { %6193 = vadd.xlane.f32.xlu1 %v6192_v13  ;;  %v6152_v18 = vpop.xlane.xlu1 %6151 }
0x10c5   :  { %v6166_v1 = vmul.f32 0.03125, %v6152_v18  ;;  %v6181_v54 = vmul.f32 %v10892_v21, %v10892_v21 }
0x10c7   :  { %v10897_v25 = vsub.f32 %v6132_v46, %v6166_v1  ;;  %v6195_v3 = vsel %vm77_vm0, %v6181_v54, 0.0 }
0x10c8   :  { %v6155_v48 = vpop.xlane.xlu0 %6154  ;;  %6196 = vadd.xlane.f32.xlu0 %v6195_v3 }
0x10c9   :  { %v6167_v57 = vmul.f32 0.03125, %v6155_v48  ;;  %v6182_v8 = vmul.f32 %v10897_v25, %v10897_v25 }
0x10cb   :  { %v10902_v31 = vsub.f32 %v6133_v50, %v6167_v57  ;;  %v6198_v11 = vsel %vm77_vm0, %v6182_v8, 0.0 }
0x10cc   :  { %6199 = vadd.xlane.f32.xlu1 %v6198_v11  ;;  %v6158_v30 = vpop.xlane.xlu1 %6157 }
0x10cd   :  { %v6168_v19 = vmul.f32 0.03125, %v6158_v30  ;;  %v6183_v6 = vmul.f32 %v10902_v31, %v10902_v31 }
0x10cf   :  { %v10907_v16 = vsub.f32 %v6134_v41, %v6168_v19  ;;  %v6201_v23 = vsel %vm77_vm0, %v6183_v6, 0.0 }
0x10d0   :  { %6202 = vadd.xlane.f32.xlu0 %v6201_v23  ;;  %v6161_v28 = vpop.xlane.xlu0 %6160 }
0x10d1   :  { %v6169_v53 = vmul.f32 0.03125, %v6161_v28  ;;  %v6184_v60 = vmul.f32 %v10907_v16, %v10907_v16 }
0x10d3   :  { %v10912_v61 = vsub.f32 %v6135_v47, %v6169_v53  ;;  %v6204_v5 = vsel %vm77_vm0, %v6184_v60, 0.0 }
0x10d4   :  { %6205 = vadd.xlane.f32.xlu1 %v6204_v5 }
0x10d5   :  { %v6185_v15 = vmul.f32 %v10912_v61, %v10912_v61 }
0x10d7   :  { %v6207_v10 = vsel %vm77_vm0, %v6185_v15, 0.0 }
0x10d8   :  { %6208 = vadd.xlane.f32.xlu0 %v6207_v10 }
0x1149   :  { %v6188_v2 = vpop.xlane.xlu1 %6187 }
0x114a   :  { %v6210_v46 = vmul.f32 0.03125, %v6188_v2 }
0x114c   :  { %v6218_v0 = vadd.f32 1e-05, %v6210_v46 }
0x114d   :  { %v6191_v22 = vpop.xlane.xlu0 %6190 }
0x114e   :  { %8162 = vrsqrt.f32 %v6218_v0  ;;  %v6211_v63 = vmul.f32 0.03125, %v6191_v22 }
0x1150   :  { %v6219_v39 = vadd.f32 1e-05, %v6211_v63 }
0x1151   :  { %v6194_v43 = vpop.xlane.xlu1 %6193 }
0x1152   :  { %8164 = vrsqrt.f32 %v6219_v39  ;;  %v6212_v4 = vmul.f32 0.03125, %v6194_v43 }
0x1154   :  { %v6220_v58 = vadd.f32 1e-05, %v6212_v4 }
0x1155   :  { %v6197_v62 = vpop.xlane.xlu0 %6196 }
0x1156   :  { %8166 = vrsqrt.f32 %v6220_v58  ;;  %v6213_v38 = vmul.f32 0.03125, %v6197_v62 }
0x1158   :  { %v8163_v50 = vpop.eup %8162  ;;  %v6221_v29 = vadd.f32 1e-05, %v6213_v38 }
0x1159   :  { %v6234_v35 = vmul.f32 %v8163_v50, %v10877_v24  ;;  %v6200_v34 = vpop.xlane.xlu1 %6199 }
0x115a   :  { %8168 = vrsqrt.f32 %v6221_v29  ;;  %v6214_v14 = vmul.f32 0.03125, %v6200_v34 }
0x115b   :  { %v6248_v44 = vmul.f32 %v6475_v7, %v6234_v35 }
0x115c   :  { %v8165_v41 = vpop.eup %8164  ;;  %v6222_v17 = vadd.f32 1e-05, %v6214_v14 }
0x115d   :  { %v6262_v42 = vadd.f32 %v6476_v56, %v6248_v44  ;;  %v6235_v47 = vmul.f32 %v8165_v41, %v10882_v26  ;;  %v6203_v49 = vpop.xlane.xlu0 %6202 }
0x115e   :  { %8170 = vrsqrt.f32 %v6222_v17  ;;  %v6215_v37 = vmul.f32 0.03125, %v6203_v49 }
0x115f   :  { %6270 = vst.msk [vmem:[#allocation2] sm:$0xff] %vm77_vm0, %v6262_v42  ;;  %v6249_v9 = vmul.f32 %v6475_v7, %v6235_v47 }
0x1160   :  { %v8167_v24 = vpop.eup %8166  ;;  %v6223_v45 = vadd.f32 1e-05, %v6215_v37 }
0x1161   :  { %v6263_v40 = vadd.f32 %v6476_v56, %v6249_v9  ;;  %v6236_v12 = vmul.f32 %v8167_v24, %v10887_v55  ;;  %v6206_v33 = vpop.xlane.xlu1 %6205 }
0x1162   :  { %8172 = vrsqrt.f32 %v6223_v45  ;;  %v6216_v27 = vmul.f32 0.03125, %v6206_v33 }
0x1163   :  { %6271 = vst.msk [vmem:[#allocation2 + $0x8] sm:$0xff] %vm77_vm0, %v6263_v40  ;;  %v6250_v51 = vmul.f32 %v6475_v7, %v6236_v12 }
0x1164   :  { %v8169_v52 = vpop.eup %8168  ;;  %v6224_v20 = vadd.f32 1e-05, %v6216_v27 }
0x1165   :  { %v6264_v26 = vadd.f32 %v6476_v56, %v6250_v51  ;;  %v6237_v36 = vmul.f32 %v8169_v52, %v10892_v21  ;;  %v6209_v59 = vpop.xlane.xlu0 %6208 }
0x1166   :  { %8174 = vrsqrt.f32 %v6224_v20  ;;  %v6217_v32 = vmul.f32 0.03125, %v6209_v59 }
0x1167   :  { %6272 = vst.msk [vmem:[#allocation2 + $0x10] sm:$0xff] %vm77_vm0, %v6264_v26  ;;  %v6251_v13 = vmul.f32 %v6475_v7, %v6237_v36 }
0x1168   :  { %v8171_v18 = vpop.eup %8170  ;;  %v6225_v1 = vadd.f32 1e-05, %v6217_v32 }
0x1169   :  { %v6265_v55 = vadd.f32 %v6476_v56, %v6251_v13  ;;  %v6238_v54 = vmul.f32 %v8171_v18, %v10897_v25 }
0x116a   :  { %8176 = vrsqrt.f32 %v6225_v1 }
0x116b   :  { %6273 = vst.msk [vmem:[#allocation2 + $0x18] sm:$0xff] %vm77_vm0, %v6265_v55  ;;  %v6252_v3 = vmul.f32 %v6475_v7, %v6238_v54 }
0x116c   :  { %v8173_v48 = vpop.eup %8172 }
0x116d   :  { %v6266_v57 = vadd.f32 %v6476_v56, %v6252_v3  ;;  %v6239_v8 = vmul.f32 %v8173_v48, %v10902_v31 }
0x116f   :  { %6274 = vst.msk [vmem:[#allocation2 + $0x20] sm:$0xff] %vm77_vm0, %v6266_v57  ;;  %v6253_v21 = vmul.f32 %v6475_v7, %v6239_v8 }
0x1170   :  { %v8175_v11 = vpop.eup %8174 }
0x1171   :  { %v6267_v30 = vadd.f32 %v6476_v56, %v6253_v21  ;;  %v6240_v19 = vmul.f32 %v8175_v11, %v10907_v16 }
0x1173   :  { %6275 = vst.msk [vmem:[#allocation2 + $0x28] sm:$0xff] %vm77_vm0, %v6267_v30  ;;  %v6254_v6 = vmul.f32 %v6475_v7, %v6240_v19 }
0x1174   :  { %v8177_v23 = vpop.eup %8176 }
0x1175   :  { %v6268_v25 = vadd.f32 %v6476_v56, %v6254_v6  ;;  %v6241_v28 = vmul.f32 %v8177_v23, %v10912_v61 }
0x1177   :  { %6276 = vst.msk [vmem:[#allocation2 + $0x30] sm:$0xff] %vm77_vm0, %v6268_v25  ;;  %v6255_v53 = vmul.f32 %v6475_v7, %v6241_v28 }
0x1179   :  { %v6269_v31 = vadd.f32 %v6476_v56, %v6255_v53 }
0x117b   :  { %6277 = vst.msk [vmem:[#allocation2 + $0x38] sm:$0xff] %vm77_vm0, %v6269_v31 }
0x117c   :  { %8189 = shalt.err (!%p8186_p4)
}
0x117d   :  { %s8190_s16 = scalar_lea.hbm %s10967_s14, 1024 }
0x117e   :  { %p8191_p5 = scmp.ne.s32.totalorder %s10967_s14, %s8190_s16  ;;  %p8194_p6 = scmp.lt.u32.totalorder %s8190_s16, %s10967_s14 }
0x1180   :  { %p8196_p7 = pnand %p8194_p6, %p8191_p5 }
0x1182   :  { %8199 = shalt.err (!%p8196_p7)
}
0x1183   :  { %s8218_s20 = smov 128  }
0x1184   :  { %6289 = dma.vmem_to_hbm [thread:$0]  %s6284_s13, 1024, %s10967_s14, [#allocation3], %s8218_s20, %s8218_s20, %s8213_s17  }
0x1185   :  { %8200 = dma.done.wait [#allocation3], 1024  }
0x1186   :  { %8201 = vsyncadd [#allocation3], 4294966272 }
0x1187   :  { %6293 = vsyncpa [#allocation3], 1 }

</bundles_post_ra>
